<compile_context>
chip_gen: v6e
topology: v6e:2x2x1
jax: 0.10.0
libtpu: 0.0.40
codegen_flags: <defaults>
</compile_context>

<pallas_src>
import functools

import jax
import jax.numpy as jnp
from jax.experimental import pallas as pl
from jax.experimental.pallas import tpu as pltpu

IN_DIM = 3 * 32 * 32   # 3072
H1 = 512
H2 = 256
NUM_CLASSES = 10
NC_PAD = 128           # lane-dense padded output width
BATCH = 8              # small example batch (8 keeps sublanes full)


def mlp_kernel(x_ref, w1_ref, b1_ref, w2_ref, b2_ref, w3_ref, b3_ref, o_ref):
    # fc1 + ReLU : (B, 3072) @ (3072, 512), bf16 MXU inputs, f32 accumulation.
    h1 = jnp.dot(x_ref[...], w1_ref[...], preferred_element_type=jnp.float32)
    h1 = jnp.maximum(h1 + b1_ref[...], 0.0)

    # fc2 + ReLU : (B, 512) @ (512, 256)
    h2 = jnp.dot(h1.astype(jnp.bfloat16), w2_ref[...],
                 preferred_element_type=jnp.float32)
    h2 = jnp.maximum(h2 + b2_ref[...], 0.0)

    # fc3 : (B, 256) @ (256, 128-padded); full-lane store, wrapper slices to 10.
    out = jnp.dot(h2.astype(jnp.bfloat16), w3_ref[...],
                  preferred_element_type=jnp.float32)
    o_ref[...] = (out + b3_ref[...]).astype(o_ref.dtype)


def prepare_params(w1, b1, w2, b2, w3, b3):
    """One-time weight prep: cast to bf16, pad fc3 to a 128-lane output.

    Call once (e.g. at model load) and reuse the result for every forward;
    this keeps the per-call HBM traffic down to just the kernel's own stream.
    Weights are stored transposed vs PyTorch, i.e. shape (in, out), so the
    kernel computes x @ W + b (identical math to nn.Linear).
    """
    nc = w3.shape[1]
    w1b = w1.astype(jnp.bfloat16)
    w2b = w2.astype(jnp.bfloat16)
    w3p = jnp.zeros((H2, NC_PAD), jnp.bfloat16).at[:, :nc].set(
        w3.astype(jnp.bfloat16))
    b1r = b1.reshape(1, H1).astype(jnp.float32)
    b2r = b2.reshape(1, H2).astype(jnp.float32)
    b3p = jnp.zeros((1, NC_PAD), jnp.float32).at[:, :nc].set(
        b3.reshape(1, nc).astype(jnp.float32))
    return (w1b, b1r, w2b, b2r, w3p, b3p)


@functools.partial(jax.jit, static_argnames=("num_classes",))
def mlp_forward(x, params, num_classes=NUM_CLASSES):
    """x: (B, 3072) f32; params from prepare_params; returns (B, num_classes) f32."""
    w1b, b1r, w2b, b2r, w3p, b3p = params
    B = x.shape[0]
    xb = x.astype(jnp.bfloat16)  # only per-call cast: 48 KiB at B=8

    vmem_specs = [pl.BlockSpec(memory_space=pltpu.MemorySpace.VMEM)
                  for _ in range(7)]

    out_padded = pl.pallas_call(
        mlp_kernel,
        out_shape=jax.ShapeDtypeStruct((B, NC_PAD), jnp.float32),
        in_specs=vmem_specs,
        out_specs=pl.BlockSpec(memory_space=pltpu.MemorySpace.VMEM),
    )(xb, w1b, b1r, w2b, b2r, w3p, b3p)

    return out_padded[:, :num_classes]


def init_linear(key, fan_in, fan_out):
    # Mimic PyTorch nn.Linear default init: U(-1/sqrt(fan_in), 1/sqrt(fan_in))
    kw, kb = jax.random.split(key)
    bound = 1.0 / jnp.sqrt(fan_in)
    w = jax.random.uniform(kw, (fan_in, fan_out), jnp.float32, -bound, bound)
    b = jax.random.uniform(kb, (1, fan_out), jnp.float32, -bound, bound)
    return w, b


if __name__ == "__main__":
    key = jax.random.PRNGKey(0)
    kx, k1, k2, k3 = jax.random.split(key, 4)

    x = jax.random.normal(kx, (BATCH, IN_DIM), jnp.float32)
    w1, b1 = init_linear(k1, IN_DIM, H1)
    w2, b2 = init_linear(k2, H1, H2)
    w3, b3 = init_linear(k3, H2, NUM_CLASSES)

    # One-time weight prep (hoisted out of the forward path).
    params = jax.block_until_ready(prepare_params(w1, b1, w2, b2, w3, b3))

    out = mlp_forward(x, params)
    out = jax.block_until_ready(out)
    assert out.shape == (BATCH, NUM_CLASSES)

    # Pure-JAX reference using the same bf16-weight / f32-accumulate recipe.
    xb = x.astype(jnp.bfloat16)
    w1b = w1.astype(jnp.bfloat16)
    w2b = w2.astype(jnp.bfloat16)
    w3b = w3.astype(jnp.bfloat16)
    h1 = jnp.maximum(
        jnp.dot(xb, w1b, preferred_element_type=jnp.float32) + b1, 0.0)
    h2 = jnp.maximum(
        jnp.dot(h1.astype(jnp.bfloat16), w2b,
                preferred_element_type=jnp.float32) + b2, 0.0)
    ref = jnp.dot(h2.astype(jnp.bfloat16), w3b,
                  preferred_element_type=jnp.float32) + b3

    assert jnp.allclose(out, ref, atol=1e-2, rtol=1e-2), (
        float(jnp.max(jnp.abs(out - ref))))

    # Sanity vs the full-f32 math (bf16 weight quantization error only).
    ref_f32 = jnp.maximum(x @ w1 + b1, 0.0)
    ref_f32 = jnp.maximum(ref_f32 @ w2 + b2, 0.0)
    ref_f32 = ref_f32 @ w3 + b3
    assert jnp.allclose(out, ref_f32, atol=1e-1, rtol=1e-1)

    print("KERNEL_OK")
</pallas_src>

<mosaic_0001>
module attributes {stable_mosaic.version = 11 : i64} {
  func.func @mlp_kernel(%arg0: memref<8x3072xbf16, #tpu.memory_space<vmem>>, %arg1: memref<3072x512xbf16, #tpu.memory_space<vmem>>, %arg2: memref<1x512xf32, #tpu.memory_space<vmem>>, %arg3: memref<512x256xbf16, #tpu.memory_space<vmem>>, %arg4: memref<1x256xf32, #tpu.memory_space<vmem>>, %arg5: memref<256x128xbf16, #tpu.memory_space<vmem>>, %arg6: memref<1x128xf32, #tpu.memory_space<vmem>>, %arg7: memref<8x128xf32, #tpu.memory_space<vmem>>) attributes {dimension_semantics = [], scalar_prefetch = 0 : i64, scratch_operands = 0 : i64, tpu.core_type = #tpu.core_type<tc>} {
    %c0 = arith.constant 0 : index
    %c0_0 = arith.constant 0 : index
    %0 = vector.load %arg0[%c0, %c0_0] : memref<8x3072xbf16, #tpu.memory_space<vmem>>, vector<8x3072xbf16>
    %c0_1 = arith.constant 0 : index
    %c0_2 = arith.constant 0 : index
    %1 = vector.load %arg1[%c0_1, %c0_2] : memref<3072x512xbf16, #tpu.memory_space<vmem>>, vector<3072x512xbf16>
    %cst = arith.constant dense<0.000000e+00> : vector<8x512xf32>
    %2 = tpu.matmul %0, %1, %cst {dimension_numbers = #tpu.dot_dimension_numbers<[1], [0], [0], [1], [0, 0, 1, 1], [], []>} : vector<8x3072xbf16>, vector<3072x512xbf16>, vector<8x512xf32> -> vector<8x512xf32>
    %c0_3 = arith.constant 0 : index
    %c0_4 = arith.constant 0 : index
    %3 = vector.load %arg2[%c0_3, %c0_4] : memref<1x512xf32, #tpu.memory_space<vmem>>, vector<1x512xf32>
    %4 = vector.broadcast %3 : vector<1x512xf32> to vector<8x512xf32>
    %5 = arith.addf %2, %4 : vector<8x512xf32>
    %cst_5 = arith.constant 0.000000e+00 : f32
    %6 = vector.broadcast %cst_5 : f32 to vector<8x512xf32>
    %7 = arith.maximumf %5, %6 : vector<8x512xf32>
    %8 = arith.truncf %7 : vector<8x512xf32> to vector<8x512xbf16>
    %c0_6 = arith.constant 0 : index
    %c0_7 = arith.constant 0 : index
    %9 = vector.load %arg3[%c0_6, %c0_7] : memref<512x256xbf16, #tpu.memory_space<vmem>>, vector<512x256xbf16>
    %cst_8 = arith.constant dense<0.000000e+00> : vector<8x256xf32>
    %10 = tpu.matmul %8, %9, %cst_8 {dimension_numbers = #tpu.dot_dimension_numbers<[1], [0], [0], [1], [0, 0, 1, 1], [], []>} : vector<8x512xbf16>, vector<512x256xbf16>, vector<8x256xf32> -> vector<8x256xf32>
    %c0_9 = arith.constant 0 : index
    %c0_10 = arith.constant 0 : index
    %11 = vector.load %arg4[%c0_9, %c0_10] : memref<1x256xf32, #tpu.memory_space<vmem>>, vector<1x256xf32>
    %12 = vector.broadcast %11 : vector<1x256xf32> to vector<8x256xf32>
    %13 = arith.addf %10, %12 : vector<8x256xf32>
    %cst_11 = arith.constant 0.000000e+00 : f32
    %14 = vector.broadcast %cst_11 : f32 to vector<8x256xf32>
    %15 = arith.maximumf %13, %14 : vector<8x256xf32>
    %16 = arith.truncf %15 : vector<8x256xf32> to vector<8x256xbf16>
    %c0_12 = arith.constant 0 : index
    %c0_13 = arith.constant 0 : index
    %17 = vector.load %arg5[%c0_12, %c0_13] : memref<256x128xbf16, #tpu.memory_space<vmem>>, vector<256x128xbf16>
    %cst_14 = arith.constant dense<0.000000e+00> : vector<8x128xf32>
    %18 = tpu.matmul %16, %17, %cst_14 {dimension_numbers = #tpu.dot_dimension_numbers<[1], [0], [0], [1], [0, 0, 1, 1], [], []>} : vector<8x256xbf16>, vector<256x128xbf16>, vector<8x128xf32> -> vector<8x128xf32>
    %c0_15 = arith.constant 0 : index
    %c0_16 = arith.constant 0 : index
    %19 = vector.load %arg6[%c0_15, %c0_16] : memref<1x128xf32, #tpu.memory_space<vmem>>, vector<1x128xf32>
    %20 = vector.broadcast %19 : vector<1x128xf32> to vector<8x128xf32>
    %21 = arith.addf %18, %20 : vector<8x128xf32>
    %c0_17 = arith.constant 0 : index
    %c0_18 = arith.constant 0 : index
    %22 = vector.load %arg7[%c0_17, %c0_18] : memref<8x128xf32, #tpu.memory_space<vmem>>, vector<8x128xf32>
    tpu.vector_store %arg7[%c0_17, %c0_18], %21 {strides = array<i32>} : memref<8x128xf32, #tpu.memory_space<vmem>>, vector<8x128xf32>,
    return
  }
}

</mosaic_0001>

<bundles_post_ra>
// kernel: mlp_forward.1
= control target key start
LH: loop header
LB: loop body
LE: loop exit
PB: predicated region body
PF: predicated region fallthrough
CT: control target
= control target key end

     0   :  { %12 = vsyncpa [#allocation3], 0  ;;  %s9179_s0 = inlined_call_operand.vmem [shape: bf16[8,3072], index: 0, kind: input, shape index: {}]   ;;  %s9180_s1 = inlined_call_operand.hbm [shape: bf16[3072,512], index: 1, kind: input, shape index: {}]   ;;  %s9181_s2 = inlined_call_operand.hbm [shape: f32[1,512], index: 2, kind: input, shape index: {}]   ;;  %s9182_s3 = inlined_call_operand.hbm [shape: bf16[512,256], index: 3, kind: input, shape index: {}]   ;;  %s9183_s4 = inlined_call_operand.hbm [shape: f32[1,256], index: 4, kind: input, shape index: {}]   ;;  %s9184_s5 = inlined_call_operand.hbm [shape: bf16[256,128], index: 5, kind: input, shape index: {}]   ;;  %s9185_s6 = inlined_call_operand.hbm [shape: f32[1,128], index: 6, kind: input, shape index: {}]   ;;  %s9186_s7 = inlined_call_operand.hbm [shape: f32[8,128], index: 7, kind: output, shape index: {}]  }
   0x1   :  { %13 = vsyncpa [#allocation6], 0 }
   0x2   :  { %14 = vsyncpa [#allocation9], 0 }
   0x3   :  { %15 = vsyncpa [#allocation12], 0 }
   0x4   :  { %16 = vsyncpa [#allocation4], 0  ;;  %s8845_s24 = smov [#allocation5]   ;;  %s8846_s26 = smov [#allocation8]  }
   0x5   :  { %s37_s25 = sshll.u32 %s8845_s24, 4  ;;  %s59_s27 = sshll.u32 %s8846_s26, 4  ;;  %s38_s25 = int_to_ptr.vmem [resolvable:$true] %s37_s25  ;;  %s60_s27 = int_to_ptr.vmem [resolvable:$true] %s59_s27 }
   0x6   :  { %s8703_s28 = scalar_lea.vmem %s38_s25, 64  ;;  %p8708_p1 = scmp.lt.s32.totalorder %s38_s25, %s38_s25 }
   0x7   :  { %p8704_p0 = scmp.ne.s32.totalorder %s38_s25, %s8703_s28  ;;  %p8709_p2 = scmp.lt.s32.totalorder %s8703_s28, %s8703_s28 }
   0x9   :  { %p8710_p3 = por %p8709_p2, %p8708_p1 }
   0xb   :  { %p8711_p4 = pnand %p8710_p3, %p8704_p0 }
   0xd   :  { %8714 = shalt.err (!%p8711_p4)
}
   0xe   :  { %40 = dma.hbm_to_vmem [thread:$0]  %s9181_s2, 64, %s38_s25, [#allocation6]  }
   0xf   :  { %s8723_s8 = scalar_lea.vmem %s60_s27, 32  ;;  %p8728_p6 = scmp.lt.s32.totalorder %s60_s27, %s60_s27 }
  0x10   :  { %p8724_p5 = scmp.ne.s32.totalorder %s60_s27, %s8723_s8  ;;  %p8729_p7 = scmp.lt.s32.totalorder %s8723_s8, %s8723_s8 }
  0x12   :  { %p8730_p8 = por %p8729_p7, %p8728_p6 }
  0x14   :  { %p8731_p9 = pnand %p8730_p8, %p8724_p5 }
  0x16   :  { %8734 = shalt.err (!%p8731_p9)
}
  0x17   :  { %62 = dma.hbm_to_vmem [thread:$0]  %s9183_s4, 32, %s60_s27, [#allocation9]  }
  0x18   :  { %s8847_s11 = smov [#allocation2]  }
  0x19   :  { %s24_s12 = sshll.u32 %s8847_s11, 4  ;;  %s25_s12 = int_to_ptr.vmem [resolvable:$true] %s24_s12 }
  0x1a   :  { %s8743_s13 = scalar_lea.vmem %s25_s12, 98304  ;;  %p8748_p11 = scmp.lt.s32.totalorder %s25_s12, %s25_s12 }
  0x1b   :  { %p8744_p10 = scmp.ne.s32.totalorder %s25_s12, %s8743_s13  ;;  %p8749_p12 = scmp.lt.s32.totalorder %s8743_s13, %s8743_s13 }
  0x1d   :  { %p8750_p13 = por %p8749_p12, %p8748_p11 }
  0x1f   :  { %p8751_p0 = pnand %p8750_p13, %p8744_p10 }
  0x21   :  { %8754 = shalt.err (!%p8751_p0)
}
  0x22   :  { %s8848_s2 = smov 256   ;;  %s8849_s14 = smov 16  }
  0x23   :  { %30 = dma.hbm_to_vmem [thread:$0]  %s9180_s1, 98304, %s25_s12, [#allocation3], %s8848_s2, %s8848_s2, %s8849_s14  }
  0x24   :  { %s8850_s17 = smov [#allocation7]  }
  0x25   :  { %s46_s18 = sshll.u32 %s8850_s17, 4  ;;  %s47_s18 = int_to_ptr.vmem [resolvable:$true] %s46_s18 }
  0x26   :  { %s8763_s4 = scalar_lea.vmem %s47_s18, 8192  ;;  %p8768_p2 = scmp.lt.s32.totalorder %s47_s18, %s47_s18 }
  0x27   :  { %p8764_p1 = scmp.ne.s32.totalorder %s47_s18, %s8763_s4  ;;  %p8769_p3 = scmp.lt.s32.totalorder %s8763_s4, %s8763_s4 }
  0x29   :  { %p8770_p4 = por %p8769_p3, %p8768_p2 }
  0x2b   :  { %p8771_p5 = pnand %p8770_p4, %p8764_p1 }
  0x2d   :  { %8774 = shalt.err (!%p8771_p5)
}
  0x2e   :  { %s8851_s19 = smov 128   ;;  %s8852_s20 = smov 8  }
  0x2f   :  { %52 = dma.hbm_to_vmem [thread:$0]  %s9182_s3, 8192, %s47_s18, [#allocation6], %s8851_s19, %s8851_s19, %s8852_s20  }
  0x30   :  { %s8853_s23 = smov [#allocation10]  }
  0x31   :  { %s68_s24 = sshll.u32 %s8853_s23, 4  ;;  %s69_s24 = int_to_ptr.vmem [resolvable:$true] %s68_s24 }
  0x32   :  { %s8783_s1 = scalar_lea.vmem %s69_s24, 2048  ;;  %p8788_p7 = scmp.lt.s32.totalorder %s69_s24, %s69_s24 }
  0x33   :  { %p8784_p6 = scmp.ne.s32.totalorder %s69_s24, %s8783_s1  ;;  %p8789_p8 = scmp.lt.s32.totalorder %s8783_s1, %s8783_s1 }
  0x35   :  { %p8790_p9 = por %p8789_p8, %p8788_p7 }
  0x37   :  { %p8791_p10 = pnand %p8790_p9, %p8784_p6 }
  0x39   :  { %8794 = shalt.err (!%p8791_p10)
}
  0x3a   :  { %s8854_s25 = smov 64   ;;  %s8855_s26 = smov 4  }
  0x3b   :  { %74 = dma.hbm_to_vmem [thread:$0]  %s9184_s5, 2048, %s69_s24, [#allocation9], %s8854_s25, %s8854_s25, %s8855_s26  }
  0x3c   :  { %s8856_s29 = smov [#allocation11]  }
  0x3d   :  { %s81_s30 = sshll.u32 %s8856_s29, 4  ;;  %s82_s30 = int_to_ptr.vmem [resolvable:$true] %s81_s30 }
  0x3e   :  { %s8803_s3 = scalar_lea.vmem %s82_s30, 16  ;;  %s8807_s8 = scalar_lea.vmem %s82_s30, 32 }
  0x3f   :  { %p8804_p11 = scmp.ne.s32.totalorder %s82_s30, %s8803_s3  ;;  %p8808_p12 = scmp.lt.s32.totalorder %s82_s30, %s82_s30 }
  0x40   :  { %p8809_p13 = scmp.lt.s32.totalorder %s8807_s8, %s8803_s3 }
  0x42   :  { %p8810_p0 = por %p8809_p13, %p8808_p12 }
  0x44   :  { %p8811_p1 = pnand %p8810_p0, %p8804_p11 }
  0x46   :  { %8814 = shalt.err (!%p8811_p1)
}
  0x47   :  { %84 = dma.hbm_to_vmem [thread:$0]  %s9185_s6, 16, %s82_s30, [#allocation12]  }
  0x48   :  { %8835 = dma.done.wait [#allocation3], 98304  }
  0x49   :  { %8836 = vsyncadd [#allocation3], 4294868992 }
  0x4a   :  { %8837 = dma.done.wait [#allocation6], 8256  }
  0x4b   :  { %8838 = vsyncadd [#allocation6], 4294959040 }
  0x4c   :  { %8839 = dma.done.wait [#allocation9], 2080  }
  0x4d   :  { %8840 = vsyncadd [#allocation9], 4294965216 }
  0x4e   :  { %8841 = dma.done.wait [#allocation12], 16  }
  0x4f   :  { %8842 = vsyncadd [#allocation12], 4294967280  ;;  %v7406_v0 = vld [vmem:[#allocation2 + $0xe4] ss:$16 sps:$4 sm:$0xff]   ;;  %v7410_v2 = vld [vmem:[#allocation2 + $0xe0] ss:$16 sps:$4 sm:$0xff]  }
  0x50   :  { %v7408_v1 = vld [vmem:[#allocation2 + $0x2e4] ss:$16 sps:$4 sm:$0xff]   ;;  %4830 = vmatprep.subr.bf16.mxu0 %v7406_v0  ;;  %v7411_v3 = vld [vmem:[#allocation2 + $0x2e0] ss:$16 sps:$4 sm:$0xff]   ;;  %v105_v48 = vld [vmem:[%s9179_s0 + $0x8] sm:$0xff] }
  0x51   :  { %4871 = vmatprep.subr.bf16.mxu1 %v7408_v1  ;;  %v7412_v4 = vld [vmem:[#allocation2 + $0xc4] ss:$16 sps:$4 sm:$0xff]   ;;  %4831 = vmatpush1.bf16.msra.mxu0 %v7410_v2  ;;  %v7416_v6 = vld [vmem:[#allocation2 + $0xc0] ss:$16 sps:$4 sm:$0xff]   ;;  %v8924_v51 = vcombine.high %v105_v48, %v105_v48 }
  0x52   :  { %4872 = vmatpush1.bf16.msra.mxu1 %v7411_v3  ;;  %v7414_v5 = vld [vmem:[#allocation2 + $0x2c4] ss:$16 sps:$4 sm:$0xff]   ;;  %4832 = vmatprep.subr.bf16.mxu0 %v7412_v4  ;;  %v7417_v7 = vld [vmem:[#allocation2 + $0x2c0] ss:$16 sps:$4 sm:$0xff]  }
  0x53   :  { %4873 = vmatprep.subr.bf16.mxu1 %v7414_v5  ;;  %v7418_v8 = vld [vmem:[#allocation2 + $0xa4] ss:$16 sps:$4 sm:$0xff]   ;;  %v7422_v10 = vld [vmem:[#allocation2 + $0xa0] ss:$16 sps:$4 sm:$0xff]   ;;  %4903 = vmatprep.mubr.bf16.mxu1 %v8924_v51 }
  0x54   :  { %v7420_v9 = vld [vmem:[#allocation2 + $0x2a4] ss:$16 sps:$4 sm:$0xff]   ;;  %v7423_v11 = vld [vmem:[#allocation2 + $0x2a0] ss:$16 sps:$4 sm:$0xff]  }
  0x55   :  { %4833 = vmatpush1.bf16.msra.mxu0 %v7416_v6  ;;  %v7424_v12 = vld [vmem:[#allocation2 + $0x84] ss:$16 sps:$4 sm:$0xff]   ;;  %v7428_v14 = vld [vmem:[#allocation2 + $0x80] ss:$16 sps:$4 sm:$0xff]  }
  0x56   :  { %4874 = vmatpush1.bf16.msra.mxu1 %v7417_v7  ;;  %4834 = vmatprep.subr.bf16.mxu0 %v7418_v8  ;;  %v7426_v13 = vld [vmem:[#allocation2 + $0x284] ss:$16 sps:$4 sm:$0xff]   ;;  %v7429_v15 = vld [vmem:[#allocation2 + $0x280] ss:$16 sps:$4 sm:$0xff]   ;;  %v8930_v7 = vcombine.low %v105_v48, %v105_v48 }
  0x57   :  { %4875 = vmatprep.subr.bf16.mxu1 %v7420_v9  ;;  %v7430_v16 = vld [vmem:[#allocation2 + $0x64] ss:$16 sps:$4 sm:$0xff]   ;;  %v7434_v18 = vld [vmem:[#allocation2 + $0x60] ss:$16 sps:$4 sm:$0xff]  }
  0x58   :  { %v7432_v17 = vld [vmem:[#allocation2 + $0x264] ss:$16 sps:$4 sm:$0xff]   ;;  %v7435_v19 = vld [vmem:[#allocation2 + $0x260] ss:$16 sps:$4 sm:$0xff]  }
  0x59   :  { %4835 = vmatpush1.bf16.msra.mxu0 %v7422_v10  ;;  %v7436_v20 = vld [vmem:[#allocation2 + $0x44] ss:$16 sps:$4 sm:$0xff]   ;;  %v7440_v22 = vld [vmem:[#allocation2 + $0x40] ss:$16 sps:$4 sm:$0xff]  }
  0x5a   :  { %4876 = vmatpush1.bf16.msra.mxu1 %v7423_v11  ;;  %4836 = vmatprep.subr.bf16.mxu0 %v7424_v12  ;;  %v7438_v21 = vld [vmem:[#allocation2 + $0x244] ss:$16 sps:$4 sm:$0xff]   ;;  %v7441_v23 = vld [vmem:[#allocation2 + $0x240] ss:$16 sps:$4 sm:$0xff]  }
  0x5b   :  { %4877 = vmatprep.subr.bf16.mxu1 %v7426_v13  ;;  %v7442_v24 = vld [vmem:[#allocation2 + $0x24] ss:$16 sps:$4 sm:$0xff]   ;;  %v7446_v26 = vld [vmem:[#allocation2 + $0x20] ss:$16 sps:$4 sm:$0xff]  }
  0x5c   :  { %v7444_v25 = vld [vmem:[#allocation2 + $0x224] ss:$16 sps:$4 sm:$0xff]   ;;  %v7447_v27 = vld [vmem:[#allocation2 + $0x220] ss:$16 sps:$4 sm:$0xff]  }
  0x5d   :  { %4837 = vmatpush1.bf16.msra.mxu0 %v7428_v14  ;;  %v7448_v28 = vld [vmem:[#allocation2 + $0x4] ss:$16 sps:$4 sm:$0xff]   ;;  %v7452_v30 = vld [vmem:[#allocation2] ss:$16 sps:$4 sm:$0xff]  }
  0x5e   :  { %4878 = vmatpush1.bf16.msra.mxu1 %v7429_v15  ;;  %4838 = vmatprep.subr.bf16.mxu0 %v7430_v16  ;;  %v7450_v29 = vld [vmem:[#allocation2 + $0x204] ss:$16 sps:$4 sm:$0xff]   ;;  %v7453_v31 = vld [vmem:[#allocation2 + $0x200] ss:$16 sps:$4 sm:$0xff]  }
  0x5f   :  { %4879 = vmatprep.subr.bf16.mxu1 %v7432_v17  ;;  %v7454_v32 = vld [vmem:[#allocation2 + $0x1e4] ss:$16 sps:$4 sm:$0xff]   ;;  %v7458_v34 = vld [vmem:[#allocation2 + $0x1e0] ss:$16 sps:$4 sm:$0xff]  }
  0x60   :  { %v7456_v33 = vld [vmem:[#allocation2 + $0x3e4] ss:$16 sps:$4 sm:$0xff]   ;;  %v7459_v35 = vld [vmem:[#allocation2 + $0x3e0] ss:$16 sps:$4 sm:$0xff]  }
  0x61   :  { %4839 = vmatpush1.bf16.msra.mxu0 %v7434_v18  ;;  %v7460_v36 = vld [vmem:[#allocation2 + $0x1c4] ss:$16 sps:$4 sm:$0xff]   ;;  %v7464_v38 = vld [vmem:[#allocation2 + $0x1c0] ss:$16 sps:$4 sm:$0xff]  }
  0x62   :  { %4880 = vmatpush1.bf16.msra.mxu1 %v7435_v19  ;;  %4840 = vmatprep.subr.bf16.mxu0 %v7436_v20  ;;  %v7462_v37 = vld [vmem:[#allocation2 + $0x3c4] ss:$16 sps:$4 sm:$0xff]   ;;  %v7465_v39 = vld [vmem:[#allocation2 + $0x3c0] ss:$16 sps:$4 sm:$0xff]  }
  0x63   :  { %4881 = vmatprep.subr.bf16.mxu1 %v7438_v21  ;;  %v7466_v40 = vld [vmem:[#allocation2 + $0x1a4] ss:$16 sps:$4 sm:$0xff]   ;;  %v7470_v42 = vld [vmem:[#allocation2 + $0x1a0] ss:$16 sps:$4 sm:$0xff]  }
  0x64   :  { %v7468_v41 = vld [vmem:[#allocation2 + $0x3a4] ss:$16 sps:$4 sm:$0xff]   ;;  %v7471_v43 = vld [vmem:[#allocation2 + $0x3a0] ss:$16 sps:$4 sm:$0xff]  }
  0x65   :  { %4841 = vmatpush1.bf16.msra.mxu0 %v7440_v22  ;;  %v7472_v44 = vld [vmem:[#allocation2 + $0x184] ss:$16 sps:$4 sm:$0xff]   ;;  %v7476_v49 = vld [vmem:[#allocation2 + $0x180] ss:$16 sps:$4 sm:$0xff]  }
  0x66   :  { %4882 = vmatpush1.bf16.msra.mxu1 %v7441_v23  ;;  %4842 = vmatprep.subr.bf16.mxu0 %v7442_v24  ;;  %v7474_v45 = vld [vmem:[#allocation2 + $0x384] ss:$16 sps:$4 sm:$0xff]   ;;  %v7477_v50 = vld [vmem:[#allocation2 + $0x380] ss:$16 sps:$4 sm:$0xff]  }
  0x67   :  { %4883 = vmatprep.subr.bf16.mxu1 %v7444_v25  ;;  %v104_v46 = vld [vmem:[%s9179_s0] sm:$0xff] }
  0x68   :  { %v8919_v47 = vcombine.high %v104_v46, %v104_v46  ;;  %v7478_v52 = vld [vmem:[#allocation2 + $0x164] ss:$16 sps:$4 sm:$0xff]   ;;  %v7482_v54 = vld [vmem:[#allocation2 + $0x160] ss:$16 sps:$4 sm:$0xff]   ;;  %v8928_v6 = vcombine.low %v104_v46, %v104_v46 }
  0x69   :  { %4843 = vmatpush1.bf16.msra.mxu0 %v7446_v26  ;;  %v7480_v53 = vld [vmem:[#allocation2 + $0x364] ss:$16 sps:$4 sm:$0xff]   ;;  %v7483_v55 = vld [vmem:[#allocation2 + $0x360] ss:$16 sps:$4 sm:$0xff]  }
  0x6a   :  { %4884 = vmatpush1.bf16.msra.mxu1 %v7447_v27  ;;  %4844 = vmatprep.subr.bf16.mxu0 %v7448_v28  ;;  %v7484_v56 = vld [vmem:[#allocation2 + $0x144] ss:$16 sps:$4 sm:$0xff]   ;;  %v7488_v58 = vld [vmem:[#allocation2 + $0x140] ss:$16 sps:$4 sm:$0xff]  }
  0x6b   :  { %4885 = vmatprep.subr.bf16.mxu1 %v7450_v29  ;;  %4862 = vmatprep.mubr.bf16.mxu0 %v8919_v47  ;;  %v7486_v57 = vld [vmem:[#allocation2 + $0x344] ss:$16 sps:$4 sm:$0xff]   ;;  %v7489_v59 = vld [vmem:[#allocation2 + $0x340] ss:$16 sps:$4 sm:$0xff]  }
  0x6c   :  { %v7490_v60 = vld [vmem:[#allocation2 + $0x124] ss:$16 sps:$4 sm:$0xff]   ;;  %v7494_v62 = vld [vmem:[#allocation2 + $0x120] ss:$16 sps:$4 sm:$0xff]  }
  0x6d   :  { %4845 = vmatpush1.bf16.msra.mxu0 %v7452_v30  ;;  %v7492_v61 = vld [vmem:[#allocation2 + $0x324] ss:$16 sps:$4 sm:$0xff]   ;;  %v7495_v63 = vld [vmem:[#allocation2 + $0x320] ss:$16 sps:$4 sm:$0xff]  }
  0x6e   :  { %4886 = vmatpush1.bf16.msra.mxu1 %v7453_v31  ;;  %4846 = vmatprep.subr.bf16.mxu0 %v7454_v32  ;;  %v7496_v0 = vld [vmem:[#allocation2 + $0x104] ss:$16 sps:$4 sm:$0xff]   ;;  %v7500_v2 = vld [vmem:[#allocation2 + $0x100] ss:$16 sps:$4 sm:$0xff]  }
  0x6f   :  { %4887 = vmatprep.subr.bf16.mxu1 %v7456_v33  ;;  %v7498_v1 = vld [vmem:[#allocation2 + $0x304] ss:$16 sps:$4 sm:$0xff]   ;;  %v7501_v3 = vld [vmem:[#allocation2 + $0x300] ss:$16 sps:$4 sm:$0xff]   ;;  %v8942_v33 = vld [vmem:[%s9179_s0 + $0x18] sm:$0xff] }
  0x70   :  { %v7508_v4 = vld [vmem:[#allocation2 + $0x4e4] ss:$16 sps:$4 sm:$0xff]   ;;  %v7506_v8 = vld [vmem:[#allocation2 + $0x4e0] ss:$16 sps:$4 sm:$0xff]  }
  0x71   :  { %4847 = vmatpush2.bf16.msra.mxu0 %v7458_v34  ;;  %v7511_v5 = vld [vmem:[#allocation2 + $0x6e4] ss:$16 sps:$4 sm:$0xff]   ;;  %v7509_v9 = vld [vmem:[#allocation2 + $0x6e0] ss:$16 sps:$4 sm:$0xff]  }
  0x72   :  { %4888 = vmatpush2.bf16.msra.mxu1 %v7459_v35  ;;  %4848 = vmatprep.subr.bf16.mxu0 %v7460_v36  ;;  %v7514_v10 = vld [vmem:[#allocation2 + $0x4c4] ss:$16 sps:$4 sm:$0xff]   ;;  %v7512_v12 = vld [vmem:[#allocation2 + $0x4c0] ss:$16 sps:$4 sm:$0xff]  }
  0x73   :  { %4889 = vmatprep.subr.bf16.mxu1 %v7462_v37  ;;  %v7517_v11 = vld [vmem:[#allocation2 + $0x6c4] ss:$16 sps:$4 sm:$0xff]   ;;  %v7515_v13 = vld [vmem:[#allocation2 + $0x6c0] ss:$16 sps:$4 sm:$0xff]   ;;  %v8950_v37 = vcombine.high %v8942_v33, %v8942_v33 }
  0x74   :  { %v7520_v14 = vld [vmem:[#allocation2 + $0x4a4] ss:$16 sps:$4 sm:$0xff]   ;;  %v7518_v16 = vld [vmem:[#allocation2 + $0x4a0] ss:$16 sps:$4 sm:$0xff]  }
  0x75   :  { %4849 = vmatpush2.bf16.msra.mxu0 %v7464_v38  ;;  %v7523_v15 = vld [vmem:[#allocation2 + $0x6a4] ss:$16 sps:$4 sm:$0xff]   ;;  %v7521_v17 = vld [vmem:[#allocation2 + $0x6a0] ss:$16 sps:$4 sm:$0xff]  }
  0x76   :  { %4890 = vmatpush2.bf16.msra.mxu1 %v7465_v39  ;;  %4850 = vmatprep.subr.bf16.mxu0 %v7466_v40  ;;  %v7526_v18 = vld [vmem:[#allocation2 + $0x484] ss:$16 sps:$4 sm:$0xff]   ;;  %v7524_v20 = vld [vmem:[#allocation2 + $0x480] ss:$16 sps:$4 sm:$0xff]  }
  0x77   :  { %4891 = vmatprep.subr.bf16.mxu1 %v7468_v41  ;;  %v7529_v19 = vld [vmem:[#allocation2 + $0x684] ss:$16 sps:$4 sm:$0xff]   ;;  %v7527_v21 = vld [vmem:[#allocation2 + $0x680] ss:$16 sps:$4 sm:$0xff]  }
  0x78   :  { %v7532_v22 = vld [vmem:[#allocation2 + $0x464] ss:$16 sps:$4 sm:$0xff]   ;;  %v7530_v24 = vld [vmem:[#allocation2 + $0x460] ss:$16 sps:$4 sm:$0xff]  }
  0x79   :  { %4851 = vmatpush2.bf16.msra.mxu0 %v7470_v42  ;;  %v7535_v23 = vld [vmem:[#allocation2 + $0x664] ss:$16 sps:$4 sm:$0xff]   ;;  %v7533_v25 = vld [vmem:[#allocation2 + $0x660] ss:$16 sps:$4 sm:$0xff]  }
  0x7a   :  { %4892 = vmatpush2.bf16.msra.mxu1 %v7471_v43  ;;  %4852 = vmatprep.subr.bf16.mxu0 %v7472_v44  ;;  %v7538_v26 = vld [vmem:[#allocation2 + $0x444] ss:$16 sps:$4 sm:$0xff]   ;;  %v7536_v28 = vld [vmem:[#allocation2 + $0x440] ss:$16 sps:$4 sm:$0xff]  }
  0x7b   :  { %4893 = vmatprep.subr.bf16.mxu1 %v7474_v45  ;;  %v7541_v27 = vld [vmem:[#allocation2 + $0x644] ss:$16 sps:$4 sm:$0xff]   ;;  %v7539_v29 = vld [vmem:[#allocation2 + $0x640] ss:$16 sps:$4 sm:$0xff]  }
  0x7c   :  { %v7544_v30 = vld [vmem:[#allocation2 + $0x424] ss:$16 sps:$4 sm:$0xff]   ;;  %v7542_v34 = vld [vmem:[#allocation2 + $0x420] ss:$16 sps:$4 sm:$0xff]  }
  0x7d   :  { %4853 = vmatpush2.bf16.msra.mxu0 %v7476_v49  ;;  %v7547_v31 = vld [vmem:[#allocation2 + $0x624] ss:$16 sps:$4 sm:$0xff]   ;;  %v7545_v35 = vld [vmem:[#allocation2 + $0x620] ss:$16 sps:$4 sm:$0xff]  }
  0x7e   :  { %4894 = vmatpush2.bf16.msra.mxu1 %v7477_v50  ;;  %4854 = vmatprep.subr.bf16.mxu0 %v7478_v52  ;;  %v8937_v32 = vld [vmem:[%s9179_s0 + $0x10] sm:$0xff] }
  0x7f   :  { %4895 = vmatprep.subr.bf16.mxu1 %v7480_v53  ;;  %v8946_v36 = vcombine.high %v8937_v32, %v8937_v32  ;;  %v7550_v38 = vld [vmem:[#allocation2 + $0x404] ss:$16 sps:$4 sm:$0xff]   ;;  %v7548_v40 = vld [vmem:[#allocation2 + $0x400] ss:$16 sps:$4 sm:$0xff]  }
  0x80   :  { %v7553_v39 = vld [vmem:[#allocation2 + $0x604] ss:$16 sps:$4 sm:$0xff]   ;;  %v7551_v41 = vld [vmem:[#allocation2 + $0x600] ss:$16 sps:$4 sm:$0xff]  }
  0x81   :  { %4855 = vmatpush2.bf16.msra.mxu0 %v7482_v54  ;;  %v7556_v42 = vld [vmem:[#allocation2 + $0x5e4] ss:$16 sps:$4 sm:$0xff]   ;;  %v7554_v44 = vld [vmem:[#allocation2 + $0x5e0] ss:$16 sps:$4 sm:$0xff]  }
  0x82   :  { %4896 = vmatpush2.bf16.msra.mxu1 %v7483_v55  ;;  %4856 = vmatprep.subr.bf16.mxu0 %v7484_v56  ;;  %v7559_v43 = vld [vmem:[#allocation2 + $0x7e4] ss:$16 sps:$4 sm:$0xff]   ;;  %v7557_v45 = vld [vmem:[#allocation2 + $0x7e0] ss:$16 sps:$4 sm:$0xff]  }
  0x83   :  { %4897 = vmatprep.subr.bf16.mxu1 %v7486_v57  ;;  %v7562_v46 = vld [vmem:[#allocation2 + $0x5c4] ss:$16 sps:$4 sm:$0xff]   ;;  %v7560_v49 = vld [vmem:[#allocation2 + $0x5c0] ss:$16 sps:$4 sm:$0xff]  }
  0x84   :  { %v7565_v48 = vld [vmem:[#allocation2 + $0x7c4] ss:$16 sps:$4 sm:$0xff]   ;;  %v7563_v50 = vld [vmem:[#allocation2 + $0x7c0] ss:$16 sps:$4 sm:$0xff]  }
  0x85   :  { %4857 = vmatpush2.bf16.msra.mxu0 %v7488_v58  ;;  %v7568_v52 = vld [vmem:[#allocation2 + $0x5a4] ss:$16 sps:$4 sm:$0xff]   ;;  %v7566_v54 = vld [vmem:[#allocation2 + $0x5a0] ss:$16 sps:$4 sm:$0xff]  }
  0x86   :  { %4898 = vmatpush2.bf16.msra.mxu1 %v7489_v59  ;;  %4858 = vmatprep.subr.bf16.mxu0 %v7490_v60  ;;  %v7571_v53 = vld [vmem:[#allocation2 + $0x7a4] ss:$16 sps:$4 sm:$0xff]   ;;  %v7569_v55 = vld [vmem:[#allocation2 + $0x7a0] ss:$16 sps:$4 sm:$0xff]  }
  0x87   :  { %4899 = vmatprep.subr.bf16.mxu1 %v7492_v61  ;;  %v7574_v56 = vld [vmem:[#allocation2 + $0x584] ss:$16 sps:$4 sm:$0xff]   ;;  %v7572_v58 = vld [vmem:[#allocation2 + $0x580] ss:$16 sps:$4 sm:$0xff]  }
  0x88   :  { %v7577_v57 = vld [vmem:[#allocation2 + $0x784] ss:$16 sps:$4 sm:$0xff]   ;;  %v7575_v59 = vld [vmem:[#allocation2 + $0x780] ss:$16 sps:$4 sm:$0xff]  }
  0x89   :  { %4859 = vmatpush2.bf16.msra.mxu0 %v7494_v62  ;;  %v7580_v60 = vld [vmem:[#allocation2 + $0x564] ss:$16 sps:$4 sm:$0xff]   ;;  %v7578_v62 = vld [vmem:[#allocation2 + $0x560] ss:$16 sps:$4 sm:$0xff]  }
  0x8a   :  { %4900 = vmatpush2.bf16.msra.mxu1 %v7495_v63  ;;  %4860 = vmatprep.subr.bf16.mxu0 %v7496_v0  ;;  %v7583_v61 = vld [vmem:[#allocation2 + $0x764] ss:$16 sps:$4 sm:$0xff]   ;;  %v7581_v63 = vld [vmem:[#allocation2 + $0x760] ss:$16 sps:$4 sm:$0xff]  }
  0x8b   :  { %4901 = vmatprep.subr.bf16.mxu1 %v7498_v1  ;;  %v7586_v0 = vld [vmem:[#allocation2 + $0x544] ss:$16 sps:$4 sm:$0xff]  }
  0x8c   :  { %v7589_v1 = vld [vmem:[#allocation2 + $0x744] ss:$16 sps:$4 sm:$0xff]  }
  0x8d   :  { %4861 = vmatpush2.bf16.msra.mxu0 %v7500_v2  ;;  %v7584_v2 = vld [vmem:[#allocation2 + $0x540] ss:$16 sps:$4 sm:$0xff]  }
  0x8e   :  { %4902 = vmatpush2.bf16.msra.mxu1 %v7501_v3  ;;  %4912 = vmatprep.subr.bf16.mxu0 %v7508_v4  ;;  %v7587_v3 = vld [vmem:[#allocation2 + $0x740] ss:$16 sps:$4 sm:$0xff]   ;;  %v7592_v4 = vld [vmem:[#allocation2 + $0x524] ss:$16 sps:$4 sm:$0xff]  }
  0x8f   :  { %4953 = vmatprep.subr.bf16.mxu1 %v7511_v5  ;;  %v7595_v5 = vld [vmem:[#allocation2 + $0x724] ss:$16 sps:$4 sm:$0xff]  }
  0x90   :  { %4863 = vmatmul.mubr.bf16.vlgmr.msra.gmra.mxu0 %v8928_v6 }
  0x91   :  { %4904 = vmatmul.mubr.bf16.vlgmr.msra.gmra.mxu1 %v8930_v7  ;;  %4913 = vmatpush1.bf16.msra.mxu0 %v7506_v8  ;;  %v7590_v8 = vld [vmem:[#allocation2 + $0x520] ss:$16 sps:$4 sm:$0xff]  }
  0x92   :  { %4954 = vmatpush1.bf16.msra.mxu1 %v7509_v9  ;;  %4914 = vmatprep.subr.bf16.mxu0 %v7514_v10  ;;  %v7593_v9 = vld [vmem:[#allocation2 + $0x720] ss:$16 sps:$4 sm:$0xff]   ;;  %v7598_v10 = vld [vmem:[#allocation2 + $0x504] ss:$16 sps:$4 sm:$0xff]  }
  0x93   :  { %4955 = vmatprep.subr.bf16.mxu1 %v7517_v11  ;;  %4944 = vmatprep.mubr.bf16.mxu0 %v8946_v36  ;;  %v7601_v11 = vld [vmem:[#allocation2 + $0x704] ss:$16 sps:$4 sm:$0xff]  }
  0x94   :  { %4985 = vmatprep.mubr.bf16.mxu1 %v8950_v37 }
  0x95   :  { %4915 = vmatpush1.bf16.msra.mxu0 %v7512_v12  ;;  %v7596_v12 = vld [vmem:[#allocation2 + $0x500] ss:$16 sps:$4 sm:$0xff]  }
  0x96   :  { %4956 = vmatpush1.bf16.msra.mxu1 %v7515_v13  ;;  %4916 = vmatprep.subr.bf16.mxu0 %v7520_v14  ;;  %v7599_v13 = vld [vmem:[#allocation2 + $0x700] ss:$16 sps:$4 sm:$0xff]   ;;  %v7608_v14 = vld [vmem:[#allocation2 + $0x8e4] ss:$16 sps:$4 sm:$0xff]  }
  0x97   :  { %4957 = vmatprep.subr.bf16.mxu1 %v7523_v15  ;;  %v7611_v15 = vld [vmem:[#allocation2 + $0xae4] ss:$16 sps:$4 sm:$0xff]  }
  0x99   :  { %4917 = vmatpush1.bf16.msra.mxu0 %v7518_v16  ;;  %v8956_v16 = vcombine.low %v8937_v32, %v8937_v32  ;;  %v7626_v32 = vld [vmem:[#allocation2 + $0x884] ss:$16 sps:$4 sm:$0xff]  }
  0x9a   :  { %4958 = vmatpush1.bf16.msra.mxu1 %v7521_v17  ;;  %4918 = vmatprep.subr.bf16.mxu0 %v7526_v18  ;;  %v8960_v17 = vcombine.low %v8942_v33, %v8942_v33  ;;  %v7606_v18 = vld [vmem:[#allocation2 + $0x8e0] ss:$16 sps:$4 sm:$0xff]   ;;  %v7629_v33 = vld [vmem:[#allocation2 + $0xa84] ss:$16 sps:$4 sm:$0xff]  }
  0x9b   :  { %4959 = vmatprep.subr.bf16.mxu1 %v7529_v19  ;;  %v7609_v19 = vld [vmem:[#allocation2 + $0xae0] ss:$16 sps:$4 sm:$0xff]  }
  0x9d   :  { %4919 = vmatpush1.bf16.msra.mxu0 %v7524_v20  ;;  %v7614_v20 = vld [vmem:[#allocation2 + $0x8c4] ss:$16 sps:$4 sm:$0xff]  }
  0x9e   :  { %4960 = vmatpush1.bf16.msra.mxu1 %v7527_v21  ;;  %4920 = vmatprep.subr.bf16.mxu0 %v7532_v22  ;;  %v7617_v21 = vld [vmem:[#allocation2 + $0xac4] ss:$16 sps:$4 sm:$0xff]  }
  0x9f   :  { %4961 = vmatprep.subr.bf16.mxu1 %v7535_v23  ;;  %v8965_v22 = vld [vmem:[%s9179_s0 + $0x20] sm:$0xff]  ;;  %v8970_v23 = vld [vmem:[%s9179_s0 + $0x28] sm:$0xff] }
  0xa1   :  { %4921 = vmatpush1.bf16.msra.mxu0 %v7530_v24  ;;  %v8974_v24 = vcombine.high %v8965_v22, %v8965_v22 }
  0xa2   :  { %4962 = vmatpush1.bf16.msra.mxu1 %v7533_v25  ;;  %4922 = vmatprep.subr.bf16.mxu0 %v7538_v26  ;;  %v8978_v25 = vcombine.high %v8970_v23, %v8970_v23  ;;  %v7612_v26 = vld [vmem:[#allocation2 + $0x8c0] ss:$16 sps:$4 sm:$0xff]  }
  0xa3   :  { %4963 = vmatprep.subr.bf16.mxu1 %v7541_v27  ;;  %v7615_v27 = vld [vmem:[#allocation2 + $0xac0] ss:$16 sps:$4 sm:$0xff]  }
  0xa5   :  { %4923 = vmatpush1.bf16.msra.mxu0 %v7536_v28  ;;  %v7620_v28 = vld [vmem:[#allocation2 + $0x8a4] ss:$16 sps:$4 sm:$0xff]  }
  0xa6   :  { %4964 = vmatpush1.bf16.msra.mxu1 %v7539_v29  ;;  %4924 = vmatprep.subr.bf16.mxu0 %v7544_v30  ;;  %v7623_v29 = vld [vmem:[#allocation2 + $0xaa4] ss:$16 sps:$4 sm:$0xff]   ;;  %v7618_v30 = vld [vmem:[#allocation2 + $0x8a0] ss:$16 sps:$4 sm:$0xff]  }
  0xa7   :  { %4965 = vmatprep.subr.bf16.mxu1 %v7547_v31  ;;  %v7621_v31 = vld [vmem:[#allocation2 + $0xaa0] ss:$16 sps:$4 sm:$0xff]  }
  0xa9   :  { %4925 = vmatpush1.bf16.msra.mxu0 %v7542_v34  ;;  %v7624_v34 = vld [vmem:[#allocation2 + $0x880] ss:$16 sps:$4 sm:$0xff]  }
  0xaa   :  { %4966 = vmatpush1.bf16.msra.mxu1 %v7545_v35  ;;  %4926 = vmatprep.subr.bf16.mxu0 %v7550_v38  ;;  %v7627_v35 = vld [vmem:[#allocation2 + $0xa80] ss:$16 sps:$4 sm:$0xff]   ;;  %v7632_v38 = vld [vmem:[#allocation2 + $0x864] ss:$16 sps:$4 sm:$0xff]  }
  0xab   :  { %4967 = vmatprep.subr.bf16.mxu1 %v7553_v39  ;;  %v7635_v39 = vld [vmem:[#allocation2 + $0xa64] ss:$16 sps:$4 sm:$0xff]  }
  0xad   :  { %4927 = vmatpush1.bf16.msra.mxu0 %v7548_v40  ;;  %v7630_v40 = vld [vmem:[#allocation2 + $0x860] ss:$16 sps:$4 sm:$0xff]  }
  0xae   :  { %4968 = vmatpush1.bf16.msra.mxu1 %v7551_v41  ;;  %4928 = vmatprep.subr.bf16.mxu0 %v7556_v42  ;;  %v7633_v41 = vld [vmem:[#allocation2 + $0xa60] ss:$16 sps:$4 sm:$0xff]   ;;  %v7638_v42 = vld [vmem:[#allocation2 + $0x844] ss:$16 sps:$4 sm:$0xff]  }
  0xaf   :  { %4969 = vmatprep.subr.bf16.mxu1 %v7559_v43  ;;  %v7641_v43 = vld [vmem:[#allocation2 + $0xa44] ss:$16 sps:$4 sm:$0xff]  }
  0xb1   :  { %4929 = vmatpush2.bf16.msra.mxu0 %v7554_v44  ;;  %v7636_v44 = vld [vmem:[#allocation2 + $0x840] ss:$16 sps:$4 sm:$0xff]  }
  0xb2   :  { %4970 = vmatpush2.bf16.msra.mxu1 %v7557_v45  ;;  %4930 = vmatprep.subr.bf16.mxu0 %v7562_v46  ;;  %v7639_v45 = vld [vmem:[#allocation2 + $0xa40] ss:$16 sps:$4 sm:$0xff]   ;;  %v7644_v46 = vld [vmem:[#allocation2 + $0x824] ss:$16 sps:$4 sm:$0xff]  }
  0xb3   :  { %4971 = vmatprep.subr.bf16.mxu1 %v7565_v48  ;;  %v7647_v48 = vld [vmem:[#allocation2 + $0xa24] ss:$16 sps:$4 sm:$0xff]  }
  0xb5   :  { %4931 = vmatpush2.bf16.msra.mxu0 %v7560_v49  ;;  %v7642_v49 = vld [vmem:[#allocation2 + $0x820] ss:$16 sps:$4 sm:$0xff]  }
  0xb6   :  { %4972 = vmatpush2.bf16.msra.mxu1 %v7563_v50  ;;  %4932 = vmatprep.subr.bf16.mxu0 %v7568_v52  ;;  %v7645_v50 = vld [vmem:[#allocation2 + $0xa20] ss:$16 sps:$4 sm:$0xff]   ;;  %v7650_v52 = vld [vmem:[#allocation2 + $0x804] ss:$16 sps:$4 sm:$0xff]  }
  0xb7   :  { %4973 = vmatprep.subr.bf16.mxu1 %v7571_v53  ;;  %v7653_v53 = vld [vmem:[#allocation2 + $0xa04] ss:$16 sps:$4 sm:$0xff]  }
  0xb9   :  { %4933 = vmatpush2.bf16.msra.mxu0 %v7566_v54  ;;  %v7648_v54 = vld [vmem:[#allocation2 + $0x800] ss:$16 sps:$4 sm:$0xff]  }
  0xba   :  { %4974 = vmatpush2.bf16.msra.mxu1 %v7569_v55  ;;  %4934 = vmatprep.subr.bf16.mxu0 %v7574_v56  ;;  %v7651_v55 = vld [vmem:[#allocation2 + $0xa00] ss:$16 sps:$4 sm:$0xff]   ;;  %v7656_v56 = vld [vmem:[#allocation2 + $0x9e4] ss:$16 sps:$4 sm:$0xff]  }
  0xbb   :  { %4975 = vmatprep.subr.bf16.mxu1 %v7577_v57  ;;  %v7659_v57 = vld [vmem:[#allocation2 + $0xbe4] ss:$16 sps:$4 sm:$0xff]  }
  0xbd   :  { %4935 = vmatpush2.bf16.msra.mxu0 %v7572_v58  ;;  %v7654_v58 = vld [vmem:[#allocation2 + $0x9e0] ss:$16 sps:$4 sm:$0xff]  }
  0xbe   :  { %4976 = vmatpush2.bf16.msra.mxu1 %v7575_v59  ;;  %4936 = vmatprep.subr.bf16.mxu0 %v7580_v60  ;;  %v7657_v59 = vld [vmem:[#allocation2 + $0xbe0] ss:$16 sps:$4 sm:$0xff]   ;;  %v7662_v60 = vld [vmem:[#allocation2 + $0x9c4] ss:$16 sps:$4 sm:$0xff]  }
  0xbf   :  { %4977 = vmatprep.subr.bf16.mxu1 %v7583_v61  ;;  %v7665_v61 = vld [vmem:[#allocation2 + $0xbc4] ss:$16 sps:$4 sm:$0xff]  }
  0xc1   :  { %4937 = vmatpush2.bf16.msra.mxu0 %v7578_v62  ;;  %v7660_v62 = vld [vmem:[#allocation2 + $0x9c0] ss:$16 sps:$4 sm:$0xff]  }
  0xc2   :  { %4978 = vmatpush2.bf16.msra.mxu1 %v7581_v63  ;;  %4938 = vmatprep.subr.bf16.mxu0 %v7586_v0  ;;  %v7663_v63 = vld [vmem:[#allocation2 + $0xbc0] ss:$16 sps:$4 sm:$0xff]   ;;  %v7668_v0 = vld [vmem:[#allocation2 + $0x9a4] ss:$16 sps:$4 sm:$0xff]  }
  0xc3   :  { %4979 = vmatprep.subr.bf16.mxu1 %v7589_v1  ;;  %v7671_v1 = vld [vmem:[#allocation2 + $0xba4] ss:$16 sps:$4 sm:$0xff]  }
  0xc5   :  { %4939 = vmatpush2.bf16.msra.mxu0 %v7584_v2  ;;  %v7666_v2 = vld [vmem:[#allocation2 + $0x9a0] ss:$16 sps:$4 sm:$0xff]  }
  0xc6   :  { %4980 = vmatpush2.bf16.msra.mxu1 %v7587_v3  ;;  %4940 = vmatprep.subr.bf16.mxu0 %v7592_v4  ;;  %v7669_v3 = vld [vmem:[#allocation2 + $0xba0] ss:$16 sps:$4 sm:$0xff]   ;;  %v7674_v4 = vld [vmem:[#allocation2 + $0x984] ss:$16 sps:$4 sm:$0xff]  }
  0xc7   :  { %4981 = vmatprep.subr.bf16.mxu1 %v7595_v5  ;;  %v7677_v5 = vld [vmem:[#allocation2 + $0xb84] ss:$16 sps:$4 sm:$0xff]  }
  0xc9   :  { %4941 = vmatpush2.bf16.msra.mxu0 %v7590_v8  ;;  %v7672_v8 = vld [vmem:[#allocation2 + $0x980] ss:$16 sps:$4 sm:$0xff]  }
  0xca   :  { %4982 = vmatpush2.bf16.msra.mxu1 %v7593_v9  ;;  %4942 = vmatprep.subr.bf16.mxu0 %v7598_v10  ;;  %v7675_v9 = vld [vmem:[#allocation2 + $0xb80] ss:$16 sps:$4 sm:$0xff]   ;;  %v7680_v10 = vld [vmem:[#allocation2 + $0x964] ss:$16 sps:$4 sm:$0xff]  }
  0xcb   :  { %4983 = vmatprep.subr.bf16.mxu1 %v7601_v11  ;;  %v7683_v11 = vld [vmem:[#allocation2 + $0xb64] ss:$16 sps:$4 sm:$0xff]  }
  0xcd   :  { %4943 = vmatpush2.bf16.msra.mxu0 %v7596_v12  ;;  %v7678_v12 = vld [vmem:[#allocation2 + $0x960] ss:$16 sps:$4 sm:$0xff]  }
  0xce   :  { %4984 = vmatpush2.bf16.msra.mxu1 %v7599_v13  ;;  %4994 = vmatprep.subr.bf16.mxu0 %v7608_v14  ;;  %v7681_v13 = vld [vmem:[#allocation2 + $0xb60] ss:$16 sps:$4 sm:$0xff]   ;;  %v7686_v14 = vld [vmem:[#allocation2 + $0x944] ss:$16 sps:$4 sm:$0xff]  }
  0xcf   :  { %5035 = vmatprep.subr.bf16.mxu1 %v7611_v15  ;;  %v7689_v15 = vld [vmem:[#allocation2 + $0xb44] ss:$16 sps:$4 sm:$0xff]  }
  0xd0   :  { %4945 = vmatmul.mubr.bf16.vlgmr.msra.gmra.mxu0 %v8956_v16 }
  0xd1   :  { %4986 = vmatmul.mubr.bf16.vlgmr.msra.gmra.mxu1 %v8960_v17  ;;  %4995 = vmatpush1.bf16.msra.mxu0 %v7606_v18  ;;  %v7684_v18 = vld [vmem:[#allocation2 + $0x940] ss:$16 sps:$4 sm:$0xff]  }
  0xd2   :  { %5036 = vmatpush1.bf16.msra.mxu1 %v7609_v19  ;;  %4996 = vmatprep.subr.bf16.mxu0 %v7614_v20  ;;  %v7687_v19 = vld [vmem:[#allocation2 + $0xb40] ss:$16 sps:$4 sm:$0xff]   ;;  %v7692_v20 = vld [vmem:[#allocation2 + $0x924] ss:$16 sps:$4 sm:$0xff]  }
  0xd3   :  { %5037 = vmatprep.subr.bf16.mxu1 %v7617_v21  ;;  %5026 = vmatprep.mubr.bf16.mxu0 %v8974_v24  ;;  %v7695_v21 = vld [vmem:[#allocation2 + $0xb24] ss:$16 sps:$4 sm:$0xff]  }
  0xd4   :  { %5067 = vmatprep.mubr.bf16.mxu1 %v8978_v25 }
  0xd5   :  { %4997 = vmatpush1.bf16.msra.mxu0 %v7612_v26  ;;  %v7690_v26 = vld [vmem:[#allocation2 + $0x920] ss:$16 sps:$4 sm:$0xff]  }
  0xd6   :  { %5038 = vmatpush1.bf16.msra.mxu1 %v7615_v27  ;;  %4998 = vmatprep.subr.bf16.mxu0 %v7620_v28  ;;  %v7693_v27 = vld [vmem:[#allocation2 + $0xb20] ss:$16 sps:$4 sm:$0xff]   ;;  %v7698_v28 = vld [vmem:[#allocation2 + $0x904] ss:$16 sps:$4 sm:$0xff]  }
  0xd7   :  { %5039 = vmatprep.subr.bf16.mxu1 %v7623_v29  ;;  %v7701_v29 = vld [vmem:[#allocation2 + $0xb04] ss:$16 sps:$4 sm:$0xff]  }
  0xd9   :  { %4999 = vmatpush1.bf16.msra.mxu0 %v7618_v30  ;;  %v7696_v30 = vld [vmem:[#allocation2 + $0x900] ss:$16 sps:$4 sm:$0xff]  }
  0xda   :  { %5040 = vmatpush1.bf16.msra.mxu1 %v7621_v31  ;;  %5000 = vmatprep.subr.bf16.mxu0 %v7626_v32  ;;  %v7699_v31 = vld [vmem:[#allocation2 + $0xb00] ss:$16 sps:$4 sm:$0xff]   ;;  %v7708_v32 = vld [vmem:[#allocation2 + $0xce4] ss:$16 sps:$4 sm:$0xff]  }
  0xdb   :  { %5041 = vmatprep.subr.bf16.mxu1 %v7629_v33  ;;  %v7711_v33 = vld [vmem:[#allocation2 + $0xee4] ss:$16 sps:$4 sm:$0xff]  }
  0xdd   :  { %5001 = vmatpush1.bf16.msra.mxu0 %v7624_v34  ;;  %v7706_v34 = vld [vmem:[#allocation2 + $0xce0] ss:$16 sps:$4 sm:$0xff]  }
  0xde   :  { %5042 = vmatpush1.bf16.msra.mxu1 %v7627_v35  ;;  %5002 = vmatprep.subr.bf16.mxu0 %v7632_v38  ;;  %v8987_v35 = vld [vmem:[%s9179_s0 + $0x30] sm:$0xff]  ;;  %v8991_v38 = vcombine.low %v8965_v22, %v8965_v22 }
  0xdf   :  { %5043 = vmatprep.subr.bf16.mxu1 %v7635_v39  ;;  %v8995_v39 = vcombine.low %v8970_v23, %v8970_v23  ;;  %v9004_v22 = vcombine.high %v8987_v35, %v8987_v35 }
  0xe1   :  { %5003 = vmatpush1.bf16.msra.mxu0 %v7630_v40  ;;  %v9000_v40 = vld [vmem:[%s9179_s0 + $0x38] sm:$0xff] }
  0xe2   :  { %5044 = vmatpush1.bf16.msra.mxu1 %v7633_v41  ;;  %5004 = vmatprep.subr.bf16.mxu0 %v7638_v42  ;;  %v7709_v41 = vld [vmem:[#allocation2 + $0xee0] ss:$16 sps:$4 sm:$0xff]   ;;  %v7714_v42 = vld [vmem:[#allocation2 + $0xcc4] ss:$16 sps:$4 sm:$0xff]   ;;  %v9008_v23 = vcombine.high %v9000_v40, %v9000_v40 }
  0xe3   :  { %5045 = vmatprep.subr.bf16.mxu1 %v7641_v43  ;;  %v7717_v43 = vld [vmem:[#allocation2 + $0xec4] ss:$16 sps:$4 sm:$0xff]  }
  0xe5   :  { %5005 = vmatpush1.bf16.msra.mxu0 %v7636_v44  ;;  %v7712_v44 = vld [vmem:[#allocation2 + $0xcc0] ss:$16 sps:$4 sm:$0xff]  }
  0xe6   :  { %5046 = vmatpush1.bf16.msra.mxu1 %v7639_v45  ;;  %5006 = vmatprep.subr.bf16.mxu0 %v7644_v46  ;;  %v7715_v45 = vld [vmem:[#allocation2 + $0xec0] ss:$16 sps:$4 sm:$0xff]   ;;  %v7720_v46 = vld [vmem:[#allocation2 + $0xca4] ss:$16 sps:$4 sm:$0xff]  }
  0xe7   :  { %5047 = vmatprep.subr.bf16.mxu1 %v7647_v48  ;;  %v7723_v48 = vld [vmem:[#allocation2 + $0xea4] ss:$16 sps:$4 sm:$0xff]  }
  0xe9   :  { %5007 = vmatpush1.bf16.msra.mxu0 %v7642_v49  ;;  %v7718_v49 = vld [vmem:[#allocation2 + $0xca0] ss:$16 sps:$4 sm:$0xff]  }
  0xea   :  { %5048 = vmatpush1.bf16.msra.mxu1 %v7645_v50  ;;  %5008 = vmatprep.subr.bf16.mxu0 %v7650_v52  ;;  %v7721_v50 = vld [vmem:[#allocation2 + $0xea0] ss:$16 sps:$4 sm:$0xff]   ;;  %v7726_v52 = vld [vmem:[#allocation2 + $0xc84] ss:$16 sps:$4 sm:$0xff]  }
  0xeb   :  { %5049 = vmatprep.subr.bf16.mxu1 %v7653_v53  ;;  %v7729_v53 = vld [vmem:[#allocation2 + $0xe84] ss:$16 sps:$4 sm:$0xff]  }
  0xed   :  { %5009 = vmatpush1.bf16.msra.mxu0 %v7648_v54  ;;  %v7724_v54 = vld [vmem:[#allocation2 + $0xc80] ss:$16 sps:$4 sm:$0xff]  }
  0xee   :  { %5050 = vmatpush1.bf16.msra.mxu1 %v7651_v55  ;;  %5010 = vmatprep.subr.bf16.mxu0 %v7656_v56  ;;  %v7727_v55 = vld [vmem:[#allocation2 + $0xe80] ss:$16 sps:$4 sm:$0xff]   ;;  %v7732_v56 = vld [vmem:[#allocation2 + $0xc64] ss:$16 sps:$4 sm:$0xff]  }
  0xef   :  { %5051 = vmatprep.subr.bf16.mxu1 %v7659_v57  ;;  %v7735_v57 = vld [vmem:[#allocation2 + $0xe64] ss:$16 sps:$4 sm:$0xff]  }
  0xf1   :  { %5011 = vmatpush2.bf16.msra.mxu0 %v7654_v58  ;;  %v7730_v58 = vld [vmem:[#allocation2 + $0xc60] ss:$16 sps:$4 sm:$0xff]  }
  0xf2   :  { %5052 = vmatpush2.bf16.msra.mxu1 %v7657_v59  ;;  %5012 = vmatprep.subr.bf16.mxu0 %v7662_v60  ;;  %v7733_v59 = vld [vmem:[#allocation2 + $0xe60] ss:$16 sps:$4 sm:$0xff]   ;;  %v7738_v60 = vld [vmem:[#allocation2 + $0xc44] ss:$16 sps:$4 sm:$0xff]  }
  0xf3   :  { %5053 = vmatprep.subr.bf16.mxu1 %v7665_v61  ;;  %v7741_v61 = vld [vmem:[#allocation2 + $0xe44] ss:$16 sps:$4 sm:$0xff]  }
  0xf5   :  { %5013 = vmatpush2.bf16.msra.mxu0 %v7660_v62  ;;  %v7736_v62 = vld [vmem:[#allocation2 + $0xc40] ss:$16 sps:$4 sm:$0xff]  }
  0xf6   :  { %5054 = vmatpush2.bf16.msra.mxu1 %v7663_v63  ;;  %5014 = vmatprep.subr.bf16.mxu0 %v7668_v0  ;;  %v7739_v63 = vld [vmem:[#allocation2 + $0xe40] ss:$16 sps:$4 sm:$0xff]   ;;  %v7744_v0 = vld [vmem:[#allocation2 + $0xc24] ss:$16 sps:$4 sm:$0xff]  }
  0xf7   :  { %5055 = vmatprep.subr.bf16.mxu1 %v7671_v1  ;;  %v7747_v1 = vld [vmem:[#allocation2 + $0xe24] ss:$16 sps:$4 sm:$0xff]  }
  0xf9   :  { %5015 = vmatpush2.bf16.msra.mxu0 %v7666_v2  ;;  %v7742_v2 = vld [vmem:[#allocation2 + $0xc20] ss:$16 sps:$4 sm:$0xff]  }
  0xfa   :  { %5056 = vmatpush2.bf16.msra.mxu1 %v7669_v3  ;;  %5016 = vmatprep.subr.bf16.mxu0 %v7674_v4  ;;  %v7745_v3 = vld [vmem:[#allocation2 + $0xe20] ss:$16 sps:$4 sm:$0xff]   ;;  %v7750_v4 = vld [vmem:[#allocation2 + $0xc04] ss:$16 sps:$4 sm:$0xff]  }
  0xfb   :  { %5057 = vmatprep.subr.bf16.mxu1 %v7677_v5  ;;  %v7753_v5 = vld [vmem:[#allocation2 + $0xe04] ss:$16 sps:$4 sm:$0xff]  }
  0xfd   :  { %5017 = vmatpush2.bf16.msra.mxu0 %v7672_v8  ;;  %v7748_v8 = vld [vmem:[#allocation2 + $0xc00] ss:$16 sps:$4 sm:$0xff]  }
  0xfe   :  { %5058 = vmatpush2.bf16.msra.mxu1 %v7675_v9  ;;  %5018 = vmatprep.subr.bf16.mxu0 %v7680_v10  ;;  %v7751_v9 = vld [vmem:[#allocation2 + $0xe00] ss:$16 sps:$4 sm:$0xff]   ;;  %v7756_v10 = vld [vmem:[#allocation2 + $0xde4] ss:$16 sps:$4 sm:$0xff]  }
  0xff   :  { %5059 = vmatprep.subr.bf16.mxu1 %v7683_v11  ;;  %v7759_v11 = vld [vmem:[#allocation2 + $0xfe4] ss:$16 sps:$4 sm:$0xff]  }
 0x101   :  { %5019 = vmatpush2.bf16.msra.mxu0 %v7678_v12  ;;  %v7754_v12 = vld [vmem:[#allocation2 + $0xde0] ss:$16 sps:$4 sm:$0xff]  }
 0x102   :  { %5060 = vmatpush2.bf16.msra.mxu1 %v7681_v13  ;;  %5020 = vmatprep.subr.bf16.mxu0 %v7686_v14  ;;  %v7757_v13 = vld [vmem:[#allocation2 + $0xfe0] ss:$16 sps:$4 sm:$0xff]   ;;  %v7762_v14 = vld [vmem:[#allocation2 + $0xdc4] ss:$16 sps:$4 sm:$0xff]  }
 0x103   :  { %5061 = vmatprep.subr.bf16.mxu1 %v7689_v15  ;;  %v7765_v15 = vld [vmem:[#allocation2 + $0xfc4] ss:$16 sps:$4 sm:$0xff]  }
 0x105   :  { %5021 = vmatpush2.bf16.msra.mxu0 %v7684_v18  ;;  %v7760_v18 = vld [vmem:[#allocation2 + $0xdc0] ss:$16 sps:$4 sm:$0xff]  }
 0x106   :  { %5062 = vmatpush2.bf16.msra.mxu1 %v7687_v19  ;;  %5022 = vmatprep.subr.bf16.mxu0 %v7692_v20  ;;  %v7763_v19 = vld [vmem:[#allocation2 + $0xfc0] ss:$16 sps:$4 sm:$0xff]   ;;  %v7768_v20 = vld [vmem:[#allocation2 + $0xda4] ss:$16 sps:$4 sm:$0xff]  }
 0x107   :  { %5063 = vmatprep.subr.bf16.mxu1 %v7695_v21  ;;  %v7771_v21 = vld [vmem:[#allocation2 + $0xfa4] ss:$16 sps:$4 sm:$0xff]  }
 0x109   :  { %5023 = vmatpush2.bf16.msra.mxu0 %v7690_v26  ;;  %v7766_v26 = vld [vmem:[#allocation2 + $0xda0] ss:$16 sps:$4 sm:$0xff]  }
 0x10a   :  { %5064 = vmatpush2.bf16.msra.mxu1 %v7693_v27  ;;  %5024 = vmatprep.subr.bf16.mxu0 %v7698_v28  ;;  %v7769_v27 = vld [vmem:[#allocation2 + $0xfa0] ss:$16 sps:$4 sm:$0xff]   ;;  %v7774_v28 = vld [vmem:[#allocation2 + $0xd84] ss:$16 sps:$4 sm:$0xff]  }
 0x10b   :  { %5065 = vmatprep.subr.bf16.mxu1 %v7701_v29  ;;  %v7777_v29 = vld [vmem:[#allocation2 + $0xf84] ss:$16 sps:$4 sm:$0xff]  }
 0x10d   :  { %5025 = vmatpush2.bf16.msra.mxu0 %v7696_v30  ;;  %v7772_v30 = vld [vmem:[#allocation2 + $0xd80] ss:$16 sps:$4 sm:$0xff]  }
 0x10e   :  { %5066 = vmatpush2.bf16.msra.mxu1 %v7699_v31  ;;  %5076 = vmatprep.subr.bf16.mxu0 %v7708_v32  ;;  %v7775_v31 = vld [vmem:[#allocation2 + $0xf80] ss:$16 sps:$4 sm:$0xff]   ;;  %v7780_v32 = vld [vmem:[#allocation2 + $0xd64] ss:$16 sps:$4 sm:$0xff]  }
 0x10f   :  { %5117 = vmatprep.subr.bf16.mxu1 %v7711_v33  ;;  %v7783_v33 = vld [vmem:[#allocation2 + $0xf64] ss:$16 sps:$4 sm:$0xff]  }
 0x110   :  { %5027 = vmatmul.mubr.bf16.vlgmr.msra.gmra.mxu0 %v8991_v38 }
 0x111   :  { %5068 = vmatmul.mubr.bf16.vlgmr.msra.gmra.mxu1 %v8995_v39  ;;  %5077 = vmatpush1.bf16.msra.mxu0 %v7706_v34  ;;  %v7778_v34 = vld [vmem:[#allocation2 + $0xd60] ss:$16 sps:$4 sm:$0xff]  }
 0x112   :  { %5118 = vmatpush1.bf16.msra.mxu1 %v7709_v41  ;;  %5078 = vmatprep.subr.bf16.mxu0 %v7714_v42  ;;  %v7781_v41 = vld [vmem:[#allocation2 + $0xf60] ss:$16 sps:$4 sm:$0xff]   ;;  %v7786_v42 = vld [vmem:[#allocation2 + $0xd44] ss:$16 sps:$4 sm:$0xff]  }
 0x113   :  { %5119 = vmatprep.subr.bf16.mxu1 %v7717_v43  ;;  %5108 = vmatprep.mubr.bf16.mxu0 %v9004_v22  ;;  %v7789_v43 = vld [vmem:[#allocation2 + $0xf44] ss:$16 sps:$4 sm:$0xff]  }
 0x114   :  { %5149 = vmatprep.mubr.bf16.mxu1 %v9008_v23 }
 0x115   :  { %5079 = vmatpush1.bf16.msra.mxu0 %v7712_v44  ;;  %v7784_v44 = vld [vmem:[#allocation2 + $0xd40] ss:$16 sps:$4 sm:$0xff]  }
 0x116   :  { %5120 = vmatpush1.bf16.msra.mxu1 %v7715_v45  ;;  %5080 = vmatprep.subr.bf16.mxu0 %v7720_v46  ;;  %v7787_v45 = vld [vmem:[#allocation2 + $0xf40] ss:$16 sps:$4 sm:$0xff]   ;;  %v7792_v46 = vld [vmem:[#allocation2 + $0xd24] ss:$16 sps:$4 sm:$0xff]  }
 0x117   :  { %5121 = vmatprep.subr.bf16.mxu1 %v7723_v48  ;;  %v886_v48 = vlaneseq }
 0x119   :  { %5081 = vmatpush1.bf16.msra.mxu0 %v7718_v49  ;;  %v7795_v49 = vld [vmem:[#allocation2 + $0xf24] ss:$16 sps:$4 sm:$0xff]  }
 0x11a   :  { %5122 = vmatpush1.bf16.msra.mxu1 %v7721_v50  ;;  %5082 = vmatprep.subr.bf16.mxu0 %v7726_v52  ;;  %v7790_v50 = vld [vmem:[#allocation2 + $0xd20] ss:$16 sps:$4 sm:$0xff]  }
 0x11b   :  { %5123 = vmatprep.subr.bf16.mxu1 %v7729_v53  ;;  %v7793_v52 = vld [vmem:[#allocation2 + $0xf20] ss:$16 sps:$4 sm:$0xff]   ;;  %v7798_v53 = vld [vmem:[#allocation2 + $0xd04] ss:$16 sps:$4 sm:$0xff]  }
 0x11d   :  { %5083 = vmatpush1.bf16.msra.mxu0 %v7724_v54  ;;  %v9014_v54 = vshrl.u32 %v886_v48, 7  ;;  %v7830_v48 = vld [vmem:[#allocation2 + $0x1060] ss:$16 sps:$4 sm:$0xff]  }
 0x11e   :  { %5124 = vmatpush1.bf16.msra.mxu1 %v7727_v55  ;;  %5084 = vmatprep.subr.bf16.mxu0 %v7732_v56  ;;  %v7801_v55 = vld [vmem:[#allocation2 + $0xf04] ss:$16 sps:$4 sm:$0xff]   ;;  %v7796_v56 = vld [vmem:[#allocation2 + $0xd00] ss:$16 sps:$4 sm:$0xff]  }
 0x11f   :  { %5125 = vmatprep.subr.bf16.mxu1 %v7735_v57  ;;  %v7799_v57 = vld [vmem:[#allocation2 + $0xf00] ss:$16 sps:$4 sm:$0xff]  }
 0x121   :  { %5085 = vmatpush1.bf16.msra.mxu0 %v7730_v58  ;;  %v884_v58 = vld [vmem:[#allocation5] sm:$0xf] }
 0x122   :  { %5126 = vmatpush1.bf16.msra.mxu1 %v7733_v59  ;;  %5086 = vmatprep.subr.bf16.mxu0 %v7738_v60  ;;  %v888_v59 = vsub.s32 0, %v9014_v54  ;;  %v7808_v60 = vld [vmem:[#allocation2 + $0x10e4] ss:$16 sps:$4 sm:$0xff]  }
 0x123   :  { %5127 = vmatprep.subr.bf16.mxu1 %v7741_v61  ;;  %v7811_v61 = vld [vmem:[#allocation2 + $0x12e4] ss:$16 sps:$4 sm:$0xff]  }
 0x125   :  { %5087 = vmatpush1.bf16.msra.mxu0 %v7736_v62  ;;  %v7806_v62 = vld [vmem:[#allocation2 + $0x10e0] ss:$16 sps:$4 sm:$0xff]  }
 0x126   :  { %5128 = vmatpush1.bf16.msra.mxu1 %v7739_v63  ;;  %5088 = vmatprep.subr.bf16.mxu0 %v7744_v0  ;;  %v892_v63 = vsub.s32 1, %v9014_v54  ;;  %v9020_v0 = vcombine.low %v8987_v35, %v8987_v35  ;;  %v889_v35 = vrot.slane %v884_v58, %v888_v59 }
 0x127   :  { %5129 = vmatprep.subr.bf16.mxu1 %v7747_v1  ;;  %v9024_v1 = vcombine.low %v9000_v40, %v9000_v40  ;;  %v7817_v40 = vld [vmem:[#allocation2 + $0x12c4] ss:$16 sps:$4 sm:$0xff]  }
 0x129   :  { %5089 = vmatpush1.bf16.msra.mxu0 %v7742_v2  ;;  %v9029_v2 = vld [vmem:[%s9179_s0 + $0x40] sm:$0xff] }
 0x12a   :  { %5130 = vmatpush1.bf16.msra.mxu1 %v7745_v3  ;;  %5090 = vmatprep.subr.bf16.mxu0 %v7750_v4  ;;  %v9034_v3 = vld [vmem:[%s9179_s0 + $0x48] sm:$0xff]  ;;  %v7809_v4 = vld [vmem:[#allocation2 + $0x12e0] ss:$16 sps:$4 sm:$0xff]  }
 0x12b   :  { %5131 = vmatprep.subr.bf16.mxu1 %v7753_v5  ;;  %v7814_v5 = vld [vmem:[#allocation2 + $0x10c4] ss:$16 sps:$4 sm:$0xff]  }
 0x12d   :  { %5091 = vmatpush1.bf16.msra.mxu0 %v7748_v8  ;;  %v893_v8 = vrot.slane %v884_v58, %v892_v63  ;;  %v7842_v58 = vld [vmem:[#allocation2 + $0x1020] ss:$16 sps:$4 sm:$0xff]  }
 0x12e   :  { %5132 = vmatpush1.bf16.msra.mxu1 %v7751_v9  ;;  %5092 = vmatprep.subr.bf16.mxu0 %v7756_v10  ;;  %v9042_v9 = vcombine.high %v9029_v2, %v9029_v2  ;;  %v9046_v10 = vcombine.high %v9034_v3, %v9034_v3 }
 0x12f   :  { %5133 = vmatprep.subr.bf16.mxu1 %v7759_v11 }
 0x131   :  { %5093 = vmatpush2.bf16.msra.mxu0 %v7754_v12 }
 0x132   :  { %5134 = vmatpush2.bf16.msra.mxu1 %v7757_v13  ;;  %5094 = vmatprep.subr.bf16.mxu0 %v7762_v14  ;;  %v7812_v13 = vld [vmem:[#allocation2 + $0x10c0] ss:$16 sps:$4 sm:$0xff]  }
 0x133   :  { %5135 = vmatprep.subr.bf16.mxu1 %v7765_v15  ;;  %v7815_v15 = vld [vmem:[#allocation2 + $0x12c0] ss:$16 sps:$4 sm:$0xff]  }
 0x135   :  { %5095 = vmatpush2.bf16.msra.mxu0 %v7760_v18 }
 0x136   :  { %5136 = vmatpush2.bf16.msra.mxu1 %v7763_v19  ;;  %5096 = vmatprep.subr.bf16.mxu0 %v7768_v20  ;;  %v7820_v20 = vld [vmem:[#allocation2 + $0x10a4] ss:$16 sps:$4 sm:$0xff]  }
 0x137   :  { %5137 = vmatprep.subr.bf16.mxu1 %v7771_v21  ;;  %v7823_v21 = vld [vmem:[#allocation2 + $0x12a4] ss:$16 sps:$4 sm:$0xff]  }
 0x139   :  { %5097 = vmatpush2.bf16.msra.mxu0 %v7766_v26 }
 0x13a   :  { %5138 = vmatpush2.bf16.msra.mxu1 %v7769_v27  ;;  %5098 = vmatprep.subr.bf16.mxu0 %v7774_v28 }
 0x13b   :  { %5139 = vmatprep.subr.bf16.mxu1 %v7777_v29 }
 0x13d   :  { %5099 = vmatpush2.bf16.msra.mxu0 %v7772_v30  ;;  %v7818_v30 = vld [vmem:[#allocation2 + $0x10a0] ss:$16 sps:$4 sm:$0xff]  }
 0x13e   :  { %5140 = vmatpush2.bf16.msra.mxu1 %v7775_v31  ;;  %5100 = vmatprep.subr.bf16.mxu0 %v7780_v32  ;;  %v7821_v32 = vld [vmem:[#allocation2 + $0x12a0] ss:$16 sps:$4 sm:$0xff]  }
 0x13f   :  { %5141 = vmatprep.subr.bf16.mxu1 %v7783_v33 }
 0x141   :  { %5101 = vmatpush2.bf16.msra.mxu0 %v7778_v34 }
 0x142   :  { %5142 = vmatpush2.bf16.msra.mxu1 %v7781_v41  ;;  %5102 = vmatprep.subr.bf16.mxu0 %v7786_v42  ;;  %v7826_v41 = vld [vmem:[#allocation2 + $0x1084] ss:$16 sps:$4 sm:$0xff]  }
 0x143   :  { %5143 = vmatprep.subr.bf16.mxu1 %v7789_v43  ;;  %v7829_v42 = vld [vmem:[#allocation2 + $0x1284] ss:$16 sps:$4 sm:$0xff]   ;;  %v7824_v43 = vld [vmem:[#allocation2 + $0x1080] ss:$16 sps:$4 sm:$0xff]  }
 0x145   :  { %5103 = vmatpush2.bf16.msra.mxu0 %v7784_v44  ;;  %v7827_v44 = vld [vmem:[#allocation2 + $0x1280] ss:$16 sps:$4 sm:$0xff]  }
 0x146   :  { %5144 = vmatpush2.bf16.msra.mxu1 %v7787_v45  ;;  %5104 = vmatprep.subr.bf16.mxu0 %v7792_v46  ;;  %v7832_v45 = vld [vmem:[#allocation2 + $0x1064] ss:$16 sps:$4 sm:$0xff]  }
 0x147   :  { %5145 = vmatprep.subr.bf16.mxu1 %v7795_v49  ;;  %v7835_v46 = vld [vmem:[#allocation2 + $0x1264] ss:$16 sps:$4 sm:$0xff]   ;;  %v7833_v49 = vld [vmem:[#allocation2 + $0x1260] ss:$16 sps:$4 sm:$0xff]  }
 0x149   :  { %5105 = vmatpush2.bf16.msra.mxu0 %v7790_v50  ;;  %v7838_v50 = vld [vmem:[#allocation2 + $0x1044] ss:$16 sps:$4 sm:$0xff]  }
 0x14a   :  { %5146 = vmatpush2.bf16.msra.mxu1 %v7793_v52  ;;  %5106 = vmatprep.subr.bf16.mxu0 %v7798_v53  ;;  %v7841_v52 = vld [vmem:[#allocation2 + $0x1244] ss:$16 sps:$4 sm:$0xff]   ;;  %v7836_v53 = vld [vmem:[#allocation2 + $0x1040] ss:$16 sps:$4 sm:$0xff]  }
 0x14b   :  { %5147 = vmatprep.subr.bf16.mxu1 %v7801_v55  ;;  %v7839_v55 = vld [vmem:[#allocation2 + $0x1240] ss:$16 sps:$4 sm:$0xff]  }
 0x14d   :  { %5107 = vmatpush2.bf16.msra.mxu0 %v7796_v56  ;;  %v7844_v56 = vld [vmem:[#allocation2 + $0x1024] ss:$16 sps:$4 sm:$0xff]  }
 0x14e   :  { %5148 = vmatpush2.bf16.msra.mxu1 %v7799_v57  ;;  %5158 = vmatprep.subr.bf16.mxu0 %v7808_v60  ;;  %v7847_v57 = vld [vmem:[#allocation2 + $0x1224] ss:$16 sps:$4 sm:$0xff]   ;;  %v7845_v60 = vld [vmem:[#allocation2 + $0x1220] ss:$16 sps:$4 sm:$0xff]  }
 0x14f   :  { %5199 = vmatprep.subr.bf16.mxu1 %v7811_v61  ;;  %v7850_v61 = vld [vmem:[#allocation2 + $0x1004] ss:$16 sps:$4 sm:$0xff]  }
 0x150   :  { %v4864_v11 = vpop.f32.mrf.mxu0  ;;  %5109 = vmatmul.mubr.bf16.vlgmr.msra.gmra.mxu0 %v9020_v0 }
 0x151   :  { %v4905_v12 = vpop.f32.mrf.mxu1  ;;  %5150 = vmatmul.mubr.bf16.vlgmr.msra.gmra.mxu1 %v9024_v1  ;;  %v4865_v14 = vadd.f32 %v4864_v11, %v889_v35  ;;  %5159 = vmatpush1.bf16.msra.mxu0 %v7806_v62  ;;  %v7853_v62 = vld [vmem:[#allocation2 + $0x1204] ss:$16 sps:$4 sm:$0xff]   ;;  %v7848_v35 = vld [vmem:[#allocation2 + $0x1000] ss:$16 sps:$4 sm:$0xff]  }
 0x152   :  { %5200 = vmatpush1.bf16.msra.mxu1 %v7809_v4  ;;  %v4866_v18 = vpop.f32.mrf.mxu0  ;;  %5160 = vmatprep.subr.bf16.mxu0 %v7814_v5  ;;  %v7851_v4 = vld [vmem:[#allocation2 + $0x1200] ss:$16 sps:$4 sm:$0xff]   ;;  %v7856_v5 = vld [vmem:[#allocation2 + $0x11e4] ss:$16 sps:$4 sm:$0xff]  }
 0x153   :  { %v4907_v19 = vpop.f32.mrf.mxu1  ;;  %5201 = vmatprep.subr.bf16.mxu1 %v7817_v40  ;;  %v9050_v26 = vadd.f32 %v4905_v12, %v4865_v14  ;;  %v4867_v27 = vadd.f32 %v4866_v18, %v893_v8  ;;  %5190 = vmatprep.mubr.bf16.mxu0 %v9042_v9  ;;  %v7859_v40 = vld [vmem:[#allocation2 + $0x13e4] ss:$16 sps:$4 sm:$0xff]   ;;  %v7854_v8 = vld [vmem:[#allocation2 + $0x11e0] ss:$16 sps:$4 sm:$0xff]  }
 0x154   :  { %5231 = vmatprep.mubr.bf16.mxu1 %v9046_v10  ;;  %v4868_v28 = vpop.f32.mrf.mxu0  ;;  %v7857_v11 = vld [vmem:[#allocation2 + $0x13e0] ss:$16 sps:$4 sm:$0xff]   ;;  %v7862_v12 = vld [vmem:[#allocation2 + $0x11c4] ss:$16 sps:$4 sm:$0xff]  }
 0x155   :  { %v4909_v29 = vpop.f32.mrf.mxu1  ;;  %v9054_v31 = vadd.f32 %v4907_v19, %v4867_v27  ;;  %5161 = vmatpush1.bf16.msra.mxu0 %v7812_v13  ;;  %v7865_v13 = vld [vmem:[#allocation2 + $0x13c4] ss:$16 sps:$4 sm:$0xff]   ;;  %v7860_v14 = vld [vmem:[#allocation2 + $0x11c0] ss:$16 sps:$4 sm:$0xff]  }
 0x156   :  { %5202 = vmatpush1.bf16.msra.mxu1 %v7815_v15  ;;  %v4869_v33 = vpop.f32.mrf.mxu0  ;;  %5162 = vmatprep.subr.bf16.mxu0 %v7820_v20  ;;  %v7863_v15 = vld [vmem:[#allocation2 + $0x13c0] ss:$16 sps:$4 sm:$0xff]   ;;  %v7868_v18 = vld [vmem:[#allocation2 + $0x11a4] ss:$16 sps:$4 sm:$0xff]  }
 0x157   :  { %v4910_v34 = vpop.f32.mrf.mxu1  ;;  %5203 = vmatprep.subr.bf16.mxu1 %v7823_v21  ;;  %v7871_v19 = vld [vmem:[#allocation2 + $0x13a4] ss:$16 sps:$4 sm:$0xff]   ;;  %v7866_v20 = vld [vmem:[#allocation2 + $0x11a0] ss:$16 sps:$4 sm:$0xff]  }
 0x158   :  { %v7869_v21 = vld [vmem:[#allocation2 + $0x13a0] ss:$16 sps:$4 sm:$0xff]   ;;  %v7874_v27 = vld [vmem:[#allocation2 + $0x1184] ss:$16 sps:$4 sm:$0xff]  }
 0x159   :  { %5163 = vmatpush1.bf16.msra.mxu0 %v7818_v30  ;;  %v7877_v28 = vld [vmem:[#allocation2 + $0x1384] ss:$16 sps:$4 sm:$0xff]   ;;  %v7872_v29 = vld [vmem:[#allocation2 + $0x1180] ss:$16 sps:$4 sm:$0xff]  }
 0x15a   :  { %5204 = vmatpush1.bf16.msra.mxu1 %v7821_v32  ;;  %5164 = vmatprep.subr.bf16.mxu0 %v7826_v41  ;;  %v7875_v30 = vld [vmem:[#allocation2 + $0x1380] ss:$16 sps:$4 sm:$0xff]   ;;  %v7880_v32 = vld [vmem:[#allocation2 + $0x1164] ss:$16 sps:$4 sm:$0xff]  }
 0x15b   :  { %5205 = vmatprep.subr.bf16.mxu1 %v7829_v42  ;;  %v7883_v33 = vld [vmem:[#allocation2 + $0x1364] ss:$16 sps:$4 sm:$0xff]   ;;  %v7878_v34 = vld [vmem:[#allocation2 + $0x1160] ss:$16 sps:$4 sm:$0xff]  }
 0x15c   :  { %v7881_v41 = vld [vmem:[#allocation2 + $0x1360] ss:$16 sps:$4 sm:$0xff]   ;;  %v7886_v42 = vld [vmem:[#allocation2 + $0x1144] ss:$16 sps:$4 sm:$0xff]  }
 0x15d   :  { %5165 = vmatpush1.bf16.msra.mxu0 %v7824_v43  ;;  %v7889_v43 = vld [vmem:[#allocation2 + $0x1344] ss:$16 sps:$4 sm:$0xff]  }
 0x15e   :  { %5206 = vmatpush1.bf16.msra.mxu1 %v7827_v44  ;;  %5166 = vmatprep.subr.bf16.mxu0 %v7832_v45  ;;  %v7884_v44 = vld [vmem:[#allocation2 + $0x1140] ss:$16 sps:$4 sm:$0xff]  }
 0x15f   :  { %5207 = vmatprep.subr.bf16.mxu1 %v7835_v46  ;;  %v7887_v45 = vld [vmem:[#allocation2 + $0x1340] ss:$16 sps:$4 sm:$0xff]   ;;  %v7892_v46 = vld [vmem:[#allocation2 + $0x1124] ss:$16 sps:$4 sm:$0xff]  }
 0x161   :  { %5167 = vmatpush1.bf16.msra.mxu0 %v7830_v48  ;;  %v7895_v48 = vld [vmem:[#allocation2 + $0x1324] ss:$16 sps:$4 sm:$0xff]  }
 0x162   :  { %5208 = vmatpush1.bf16.msra.mxu1 %v7833_v49  ;;  %5168 = vmatprep.subr.bf16.mxu0 %v7838_v50  ;;  %v7890_v49 = vld [vmem:[#allocation2 + $0x1120] ss:$16 sps:$4 sm:$0xff]  }
 0x163   :  { %5209 = vmatprep.subr.bf16.mxu1 %v7841_v52  ;;  %v7893_v50 = vld [vmem:[#allocation2 + $0x1320] ss:$16 sps:$4 sm:$0xff]   ;;  %v7898_v52 = vld [vmem:[#allocation2 + $0x1104] ss:$16 sps:$4 sm:$0xff]  }
 0x165   :  { %5169 = vmatpush1.bf16.msra.mxu0 %v7836_v53  ;;  %v7901_v53 = vld [vmem:[#allocation2 + $0x1304] ss:$16 sps:$4 sm:$0xff]  }
 0x166   :  { %5210 = vmatpush1.bf16.msra.mxu1 %v7839_v55  ;;  %5170 = vmatprep.subr.bf16.mxu0 %v7844_v56  ;;  %v7896_v55 = vld [vmem:[#allocation2 + $0x1100] ss:$16 sps:$4 sm:$0xff]  }
 0x167   :  { %5211 = vmatprep.subr.bf16.mxu1 %v7847_v57  ;;  %v7899_v56 = vld [vmem:[#allocation2 + $0x1300] ss:$16 sps:$4 sm:$0xff]   ;;  %v7908_v57 = vld [vmem:[#allocation2 + $0x14e4] ss:$16 sps:$4 sm:$0xff]  }
 0x169   :  { %5171 = vmatpush1.bf16.msra.mxu0 %v7842_v58  ;;  %v7911_v58 = vld [vmem:[#allocation2 + $0x16e4] ss:$16 sps:$4 sm:$0xff]  }
 0x16a   :  { %5212 = vmatpush1.bf16.msra.mxu1 %v7845_v60  ;;  %5172 = vmatprep.subr.bf16.mxu0 %v7850_v61  ;;  %v9059_v60 = vld [vmem:[%s9179_s0 + $0x50] sm:$0xff]  ;;  %v9064_v61 = vld [vmem:[%s9179_s0 + $0x58] sm:$0xff]  ;;  %s8857_s0 = smov [#allocation13]  }
 0x16b   :  { %5213 = vmatprep.subr.bf16.mxu1 %v7853_v62  ;;  %v7906_v62 = vld [vmem:[#allocation2 + $0x14e0] ss:$16 sps:$4 sm:$0xff]   ;;  %s6486_s30 = sshll.u32 %s8857_s0, 4  ;;  %s6487_s30 = int_to_ptr.vmem [resolvable:$true] %s6486_s30 }
 0x16c   :  { %s8815_s3 = scalar_lea.vmem %s6487_s30, 128  ;;  %p8820_p3 = scmp.lt.s32.totalorder %s6487_s30, %s6487_s30 }
 0x16d   :  { %5173 = vmatpush1.bf16.msra.mxu0 %v7848_v35  ;;  %v7909_v35 = vld [vmem:[#allocation2 + $0x16e0] ss:$16 sps:$4 sm:$0xff]   ;;  %p8816_p2 = scmp.ne.s32.totalorder %s6487_s30, %s8815_s3  ;;  %p8821_p4 = scmp.lt.s32.totalorder %s8815_s3, %s8815_s3 }
 0x16e   :  { %5214 = vmatpush1.bf16.msra.mxu1 %v7851_v4  ;;  %5174 = vmatprep.subr.bf16.mxu0 %v7856_v5  ;;  %v9068_v4 = vcombine.low %v9029_v2, %v9029_v2  ;;  %v9072_v5 = vcombine.low %v9034_v3, %v9034_v3  ;;  %v9080_v2 = vcombine.high %v9064_v61, %v9064_v61 }
 0x16f   :  { %5215 = vmatprep.subr.bf16.mxu1 %v7859_v40  ;;  %v7914_v40 = vld [vmem:[#allocation2 + $0x14c4] ss:$16 sps:$4 sm:$0xff]   ;;  %p8822_p5 = por %p8821_p4, %p8820_p3 }
 0x171   :  { %5175 = vmatpush2.bf16.msra.mxu0 %v7854_v8  ;;  %v7917_v8 = vld [vmem:[#allocation2 + $0x16c4] ss:$16 sps:$4 sm:$0xff]   ;;  %p8823_p6 = pnand %p8822_p5, %p8816_p2 }
 0x172   :  { %5216 = vmatpush2.bf16.msra.mxu1 %v7857_v11  ;;  %5176 = vmatprep.subr.bf16.mxu0 %v7862_v12  ;;  %v7912_v11 = vld [vmem:[#allocation2 + $0x14c0] ss:$16 sps:$4 sm:$0xff]  }
 0x173   :  { %5217 = vmatprep.subr.bf16.mxu1 %v7865_v13  ;;  %v7915_v12 = vld [vmem:[#allocation2 + $0x16c0] ss:$16 sps:$4 sm:$0xff]   ;;  %v9076_v13 = vcombine.high %v9059_v60, %v9059_v60 }
 0x175   :  { %5177 = vmatpush2.bf16.msra.mxu0 %v7860_v14 }
 0x176   :  { %5218 = vmatpush2.bf16.msra.mxu1 %v7863_v15  ;;  %5178 = vmatprep.subr.bf16.mxu0 %v7868_v18 }
 0x177   :  { %5219 = vmatprep.subr.bf16.mxu1 %v7871_v19 }
 0x179   :  { %5179 = vmatpush2.bf16.msra.mxu0 %v7866_v20  ;;  %v7920_v20 = vld [vmem:[#allocation2 + $0x14a4] ss:$16 sps:$4 sm:$0xff]  }
 0x17a   :  { %5220 = vmatpush2.bf16.msra.mxu1 %v7869_v21  ;;  %5180 = vmatprep.subr.bf16.mxu0 %v7874_v27  ;;  %v7923_v21 = vld [vmem:[#allocation2 + $0x16a4] ss:$16 sps:$4 sm:$0xff]  }
 0x17b   :  { %5221 = vmatprep.subr.bf16.mxu1 %v7877_v28 }
 0x17d   :  { %5181 = vmatpush2.bf16.msra.mxu0 %v7872_v29  ;;  %v7918_v29 = vld [vmem:[#allocation2 + $0x14a0] ss:$16 sps:$4 sm:$0xff]  }
 0x17e   :  { %5222 = vmatpush2.bf16.msra.mxu1 %v7875_v30  ;;  %5182 = vmatprep.subr.bf16.mxu0 %v7880_v32  ;;  %v7921_v30 = vld [vmem:[#allocation2 + $0x16a0] ss:$16 sps:$4 sm:$0xff]  }
 0x17f   :  { %5223 = vmatprep.subr.bf16.mxu1 %v7883_v33 }
 0x181   :  { %5183 = vmatpush2.bf16.msra.mxu0 %v7878_v34 }
 0x182   :  { %5224 = vmatpush2.bf16.msra.mxu1 %v7881_v41  ;;  %5184 = vmatprep.subr.bf16.mxu0 %v7886_v42  ;;  %v7926_v42 = vld [vmem:[#allocation2 + $0x1484] ss:$16 sps:$4 sm:$0xff]  }
 0x183   :  { %5225 = vmatprep.subr.bf16.mxu1 %v7889_v43  ;;  %v7929_v43 = vld [vmem:[#allocation2 + $0x1684] ss:$16 sps:$4 sm:$0xff]  }
 0x185   :  { %5185 = vmatpush2.bf16.msra.mxu0 %v7884_v44  ;;  %v7927_v44 = vld [vmem:[#allocation2 + $0x1680] ss:$16 sps:$4 sm:$0xff]  }
 0x186   :  { %5226 = vmatpush2.bf16.msra.mxu1 %v7887_v45  ;;  %5186 = vmatprep.subr.bf16.mxu0 %v7892_v46  ;;  %v7932_v45 = vld [vmem:[#allocation2 + $0x1464] ss:$16 sps:$4 sm:$0xff]  }
 0x187   :  { %5227 = vmatprep.subr.bf16.mxu1 %v7895_v48  ;;  %v7935_v46 = vld [vmem:[#allocation2 + $0x1664] ss:$16 sps:$4 sm:$0xff]   ;;  %v7930_v48 = vld [vmem:[#allocation2 + $0x1460] ss:$16 sps:$4 sm:$0xff]  }
 0x189   :  { %5187 = vmatpush2.bf16.msra.mxu0 %v7890_v49  ;;  %v7933_v49 = vld [vmem:[#allocation2 + $0x1660] ss:$16 sps:$4 sm:$0xff]  }
 0x18a   :  { %5228 = vmatpush2.bf16.msra.mxu1 %v7893_v50  ;;  %5188 = vmatprep.subr.bf16.mxu0 %v7898_v52  ;;  %v7938_v50 = vld [vmem:[#allocation2 + $0x1444] ss:$16 sps:$4 sm:$0xff]  }
 0x18b   :  { %5229 = vmatprep.subr.bf16.mxu1 %v7901_v53  ;;  %v7941_v52 = vld [vmem:[#allocation2 + $0x1644] ss:$16 sps:$4 sm:$0xff]   ;;  %v7936_v53 = vld [vmem:[#allocation2 + $0x1440] ss:$16 sps:$4 sm:$0xff]  }
 0x18d   :  { %5189 = vmatpush2.bf16.msra.mxu0 %v7896_v55  ;;  %v7939_v55 = vld [vmem:[#allocation2 + $0x1640] ss:$16 sps:$4 sm:$0xff]  }
 0x18e   :  { %5230 = vmatpush2.bf16.msra.mxu1 %v7899_v56  ;;  %5240 = vmatprep.subr.bf16.mxu0 %v7908_v57  ;;  %v7944_v56 = vld [vmem:[#allocation2 + $0x1424] ss:$16 sps:$4 sm:$0xff]  }
 0x18f   :  { %5281 = vmatprep.subr.bf16.mxu1 %v7911_v58  ;;  %v7947_v57 = vld [vmem:[#allocation2 + $0x1624] ss:$16 sps:$4 sm:$0xff]   ;;  %v7942_v58 = vld [vmem:[#allocation2 + $0x1420] ss:$16 sps:$4 sm:$0xff]  }
 0x190   :  { %v4946_v14 = vpop.f32.mrf.mxu0  ;;  %5191 = vmatmul.mubr.bf16.vlgmr.msra.gmra.mxu0 %v9068_v4 }
 0x191   :  { %v4987_v15 = vpop.f32.mrf.mxu1  ;;  %5232 = vmatmul.mubr.bf16.vlgmr.msra.gmra.mxu1 %v9072_v5  ;;  %v4947_v3 = vadd.f32 %v4946_v14, %v9050_v26  ;;  %5241 = vmatpush1.bf16.msra.mxu0 %v7906_v62  ;;  %v7945_v62 = vld [vmem:[#allocation2 + $0x1620] ss:$16 sps:$4 sm:$0xff]   ;;  %v7959_v14 = vld [vmem:[#allocation2 + $0x17e4] ss:$16 sps:$4 sm:$0xff]  }
 0x192   :  { %5282 = vmatpush1.bf16.msra.mxu1 %v7909_v35  ;;  %v4948_v18 = vpop.f32.mrf.mxu0  ;;  %5242 = vmatprep.subr.bf16.mxu0 %v7914_v40  ;;  %v7950_v35 = vld [vmem:[#allocation2 + $0x1404] ss:$16 sps:$4 sm:$0xff]  }
 0x193   :  { %v4989_v19 = vpop.f32.mrf.mxu1  ;;  %5283 = vmatprep.subr.bf16.mxu1 %v7917_v8  ;;  %v9085_v27 = vadd.f32 %v4987_v15, %v4947_v3  ;;  %v4949_v28 = vadd.f32 %v4948_v18, %v9054_v31  ;;  %5272 = vmatprep.mubr.bf16.mxu0 %v9076_v13  ;;  %v7924_v31 = vld [vmem:[#allocation2 + $0x1480] ss:$16 sps:$4 sm:$0xff]   ;;  %v7953_v40 = vld [vmem:[#allocation2 + $0x1604] ss:$16 sps:$4 sm:$0xff]  }
 0x194   :  { %5313 = vmatprep.mubr.bf16.mxu1 %v9080_v2  ;;  %v4950_v32 = vpop.f32.mrf.mxu0  ;;  %v7948_v8 = vld [vmem:[#allocation2 + $0x1400] ss:$16 sps:$4 sm:$0xff]   ;;  %v7962_v18 = vld [vmem:[#allocation2 + $0x15c4] ss:$16 sps:$4 sm:$0xff]  }
 0x195   :  { %v4991_v26 = vpop.f32.mrf.mxu1  ;;  %v9090_v33 = vadd.f32 %v4989_v19, %v4949_v28  ;;  %5243 = vmatpush1.bf16.msra.mxu0 %v7912_v11  ;;  %v7951_v11 = vld [vmem:[#allocation2 + $0x1600] ss:$16 sps:$4 sm:$0xff]   ;;  %v7965_v19 = vld [vmem:[#allocation2 + $0x17c4] ss:$16 sps:$4 sm:$0xff]  }
 0x196   :  { %5284 = vmatpush1.bf16.msra.mxu1 %v7915_v12  ;;  %v4951_v34 = vpop.f32.mrf.mxu0  ;;  %5244 = vmatprep.subr.bf16.mxu0 %v7920_v20  ;;  %v7956_v12 = vld [vmem:[#allocation2 + $0x15e4] ss:$16 sps:$4 sm:$0xff]   ;;  %v7954_v15 = vld [vmem:[#allocation2 + $0x15e0] ss:$16 sps:$4 sm:$0xff]  }
 0x197   :  { %v4992_v41 = vpop.f32.mrf.mxu1  ;;  %5285 = vmatprep.subr.bf16.mxu1 %v7923_v21  ;;  %v7957_v3 = vld [vmem:[#allocation2 + $0x17e0] ss:$16 sps:$4 sm:$0xff]   ;;  %v7968_v28 = vld [vmem:[#allocation2 + $0x15a4] ss:$16 sps:$4 sm:$0xff]  }
 0x198   :  { %v7960_v20 = vld [vmem:[#allocation2 + $0x15c0] ss:$16 sps:$4 sm:$0xff]   ;;  %v7974_v26 = vld [vmem:[#allocation2 + $0x1584] ss:$16 sps:$4 sm:$0xff]  }
 0x199   :  { %5245 = vmatpush1.bf16.msra.mxu0 %v7918_v29  ;;  %v7963_v21 = vld [vmem:[#allocation2 + $0x17c0] ss:$16 sps:$4 sm:$0xff]   ;;  %v7971_v29 = vld [vmem:[#allocation2 + $0x17a4] ss:$16 sps:$4 sm:$0xff]  }
 0x19a   :  { %5286 = vmatpush1.bf16.msra.mxu1 %v7921_v30  ;;  %5246 = vmatprep.subr.bf16.mxu0 %v7926_v42  ;;  %v7966_v30 = vld [vmem:[#allocation2 + $0x15a0] ss:$16 sps:$4 sm:$0xff]   ;;  %v7977_v34 = vld [vmem:[#allocation2 + $0x1784] ss:$16 sps:$4 sm:$0xff]  }
 0x19b   :  { %5287 = vmatprep.subr.bf16.mxu1 %v7929_v43  ;;  %v7969_v32 = vld [vmem:[#allocation2 + $0x17a0] ss:$16 sps:$4 sm:$0xff]   ;;  %v7980_v43 = vld [vmem:[#allocation2 + $0x1564] ss:$16 sps:$4 sm:$0xff]  }
 0x19c   :  { %v7972_v41 = vld [vmem:[#allocation2 + $0x1580] ss:$16 sps:$4 sm:$0xff]  }
 0x19d   :  { %5247 = vmatpush1.bf16.msra.mxu0 %v7924_v31  ;;  %v7975_v42 = vld [vmem:[#allocation2 + $0x1780] ss:$16 sps:$4 sm:$0xff]   ;;  %v7983_v31 = vld [vmem:[#allocation2 + $0x1764] ss:$16 sps:$4 sm:$0xff]  }
 0x19e   :  { %5288 = vmatpush1.bf16.msra.mxu1 %v7927_v44  ;;  %5248 = vmatprep.subr.bf16.mxu0 %v7932_v45  ;;  %v7978_v44 = vld [vmem:[#allocation2 + $0x1560] ss:$16 sps:$4 sm:$0xff]  }
 0x19f   :  { %5289 = vmatprep.subr.bf16.mxu1 %v7935_v46  ;;  %v7981_v45 = vld [vmem:[#allocation2 + $0x1760] ss:$16 sps:$4 sm:$0xff]   ;;  %v7986_v46 = vld [vmem:[#allocation2 + $0x1544] ss:$16 sps:$4 sm:$0xff]  }
 0x1a1   :  { %5249 = vmatpush1.bf16.msra.mxu0 %v7930_v48  ;;  %v7989_v48 = vld [vmem:[#allocation2 + $0x1744] ss:$16 sps:$4 sm:$0xff]  }
 0x1a2   :  { %5290 = vmatpush1.bf16.msra.mxu1 %v7933_v49  ;;  %5250 = vmatprep.subr.bf16.mxu0 %v7938_v50  ;;  %v7984_v49 = vld [vmem:[#allocation2 + $0x1540] ss:$16 sps:$4 sm:$0xff]  }
 0x1a3   :  { %5291 = vmatprep.subr.bf16.mxu1 %v7941_v52  ;;  %v7987_v50 = vld [vmem:[#allocation2 + $0x1740] ss:$16 sps:$4 sm:$0xff]   ;;  %v7992_v52 = vld [vmem:[#allocation2 + $0x1524] ss:$16 sps:$4 sm:$0xff]  }
 0x1a5   :  { %5251 = vmatpush1.bf16.msra.mxu0 %v7936_v53  ;;  %v7995_v53 = vld [vmem:[#allocation2 + $0x1724] ss:$16 sps:$4 sm:$0xff]  }
 0x1a6   :  { %5292 = vmatpush1.bf16.msra.mxu1 %v7939_v55  ;;  %5252 = vmatprep.subr.bf16.mxu0 %v7944_v56  ;;  %v7990_v55 = vld [vmem:[#allocation2 + $0x1520] ss:$16 sps:$4 sm:$0xff]  }
 0x1a7   :  { %5293 = vmatprep.subr.bf16.mxu1 %v7947_v57  ;;  %v7993_v56 = vld [vmem:[#allocation2 + $0x1720] ss:$16 sps:$4 sm:$0xff]   ;;  %v7998_v57 = vld [vmem:[#allocation2 + $0x1504] ss:$16 sps:$4 sm:$0xff]  }
 0x1a9   :  { %5253 = vmatpush1.bf16.msra.mxu0 %v7942_v58  ;;  %v8001_v58 = vld [vmem:[#allocation2 + $0x1704] ss:$16 sps:$4 sm:$0xff]  }
 0x1aa   :  { %5294 = vmatpush1.bf16.msra.mxu1 %v7945_v62  ;;  %5254 = vmatprep.subr.bf16.mxu0 %v7950_v35  ;;  %v7996_v62 = vld [vmem:[#allocation2 + $0x1500] ss:$16 sps:$4 sm:$0xff]  }
 0x1ab   :  { %5295 = vmatprep.subr.bf16.mxu1 %v7953_v40  ;;  %v7999_v35 = vld [vmem:[#allocation2 + $0x1700] ss:$16 sps:$4 sm:$0xff]   ;;  %v8008_v40 = vld [vmem:[#allocation2 + $0xec] ss:$16 sps:$4 sm:$0xff]  }
 0x1ad   :  { %5255 = vmatpush1.bf16.msra.mxu0 %v7948_v8  ;;  %v8011_v8 = vld [vmem:[#allocation2 + $0x2ec] ss:$16 sps:$4 sm:$0xff]  }
 0x1ae   :  { %5296 = vmatpush1.bf16.msra.mxu1 %v7951_v11  ;;  %5256 = vmatprep.subr.bf16.mxu0 %v7956_v12  ;;  %v8006_v11 = vld [vmem:[#allocation2 + $0xe8] ss:$16 sps:$4 sm:$0xff]  }
 0x1af   :  { %5297 = vmatprep.subr.bf16.mxu1 %v7959_v14  ;;  %v8009_v12 = vld [vmem:[#allocation2 + $0x2e8] ss:$16 sps:$4 sm:$0xff]   ;;  %v9094_v14 = vcombine.low %v9059_v60, %v9059_v60 }
 0x1b1   :  { %5257 = vmatpush2.bf16.msra.mxu0 %v7954_v15  ;;  %v9098_v15 = vcombine.low %v9064_v61, %v9064_v61 }
 0x1b2   :  { %5298 = vmatpush2.bf16.msra.mxu1 %v7957_v3  ;;  %5258 = vmatprep.subr.bf16.mxu0 %v7962_v18  ;;  %v8014_v3 = vld [vmem:[#allocation2 + $0xcc] ss:$16 sps:$4 sm:$0xff]  }
 0x1b3   :  { %5299 = vmatprep.subr.bf16.mxu1 %v7965_v19  ;;  %v8017_v18 = vld [vmem:[#allocation2 + $0x2cc] ss:$16 sps:$4 sm:$0xff]   ;;  %v8012_v19 = vld [vmem:[#allocation2 + $0xc8] ss:$16 sps:$4 sm:$0xff]  }
 0x1b5   :  { %5259 = vmatpush2.bf16.msra.mxu0 %v7960_v20  ;;  %v8015_v20 = vld [vmem:[#allocation2 + $0x2c8] ss:$16 sps:$4 sm:$0xff]  }
 0x1b6   :  { %5300 = vmatpush2.bf16.msra.mxu1 %v7963_v21  ;;  %5260 = vmatprep.subr.bf16.mxu0 %v7968_v28 }
 0x1b7   :  { %5301 = vmatprep.subr.bf16.mxu1 %v7971_v29 }
 0x1b9   :  { %5261 = vmatpush2.bf16.msra.mxu0 %v7966_v30  ;;  %v8020_v30 = vld [vmem:[#allocation2 + $0xac] ss:$16 sps:$4 sm:$0xff]  }
 0x1ba   :  { %5302 = vmatpush2.bf16.msra.mxu1 %v7969_v32  ;;  %5262 = vmatprep.subr.bf16.mxu0 %v7974_v26  ;;  %v8023_v32 = vld [vmem:[#allocation2 + $0x2ac] ss:$16 sps:$4 sm:$0xff]  }
 0x1bb   :  { %5303 = vmatprep.subr.bf16.mxu1 %v7977_v34 }
 0x1bd   :  { %5263 = vmatpush2.bf16.msra.mxu0 %v7972_v41  ;;  %v8018_v41 = vld [vmem:[#allocation2 + $0xa8] ss:$16 sps:$4 sm:$0xff]  }
 0x1be   :  { %5304 = vmatpush2.bf16.msra.mxu1 %v7975_v42  ;;  %5264 = vmatprep.subr.bf16.mxu0 %v7980_v43  ;;  %v8021_v42 = vld [vmem:[#allocation2 + $0x2a8] ss:$16 sps:$4 sm:$0xff]  }
 0x1bf   :  { %5305 = vmatprep.subr.bf16.mxu1 %v7983_v31 }
 0x1c1   :  { %5265 = vmatpush2.bf16.msra.mxu0 %v7978_v44 }
 0x1c2   :  { %5306 = vmatpush2.bf16.msra.mxu1 %v7981_v45  ;;  %5266 = vmatprep.subr.bf16.mxu0 %v7986_v46  ;;  %v8026_v46 = vld [vmem:[#allocation2 + $0x8c] ss:$16 sps:$4 sm:$0xff]  }
 0x1c3   :  { %5307 = vmatprep.subr.bf16.mxu1 %v7989_v48  ;;  %v8029_v48 = vld [vmem:[#allocation2 + $0x28c] ss:$16 sps:$4 sm:$0xff]  }
 0x1c5   :  { %5267 = vmatpush2.bf16.msra.mxu0 %v7984_v49  ;;  %v8027_v49 = vld [vmem:[#allocation2 + $0x288] ss:$16 sps:$4 sm:$0xff]  }
 0x1c6   :  { %5308 = vmatpush2.bf16.msra.mxu1 %v7987_v50  ;;  %5268 = vmatprep.subr.bf16.mxu0 %v7992_v52  ;;  %v8030_v50 = vld [vmem:[#allocation2 + $0x68] ss:$16 sps:$4 sm:$0xff]  }
 0x1c7   :  { %5309 = vmatprep.subr.bf16.mxu1 %v7995_v53  ;;  %v8033_v52 = vld [vmem:[#allocation2 + $0x268] ss:$16 sps:$4 sm:$0xff]   ;;  %v8038_v53 = vld [vmem:[#allocation2 + $0x4c] ss:$16 sps:$4 sm:$0xff]  }
 0x1c9   :  { %5269 = vmatpush2.bf16.msra.mxu0 %v7990_v55  ;;  %v8041_v55 = vld [vmem:[#allocation2 + $0x24c] ss:$16 sps:$4 sm:$0xff]  }
 0x1ca   :  { %5310 = vmatpush2.bf16.msra.mxu1 %v7993_v56  ;;  %5270 = vmatprep.subr.bf16.mxu0 %v7998_v57  ;;  %v8036_v56 = vld [vmem:[#allocation2 + $0x48] ss:$16 sps:$4 sm:$0xff]  }
 0x1cb   :  { %5311 = vmatprep.subr.bf16.mxu1 %v8001_v58  ;;  %v8039_v57 = vld [vmem:[#allocation2 + $0x248] ss:$16 sps:$4 sm:$0xff]   ;;  %v8044_v58 = vld [vmem:[#allocation2 + $0x2c] ss:$16 sps:$4 sm:$0xff]  }
 0x1cd   :  { %5271 = vmatpush2.bf16.msra.mxu0 %v7996_v62  ;;  %v8047_v62 = vld [vmem:[#allocation2 + $0x22c] ss:$16 sps:$4 sm:$0xff]  }
 0x1ce   :  { %5312 = vmatpush2.bf16.msra.mxu1 %v7999_v35  ;;  %5322 = vmatprep.subr.bf16.mxu0 %v8008_v40  ;;  %v8042_v35 = vld [vmem:[#allocation2 + $0x28] ss:$16 sps:$4 sm:$0xff]  }
 0x1cf   :  { %5363 = vmatprep.subr.bf16.mxu1 %v8011_v8  ;;  %v8045_v40 = vld [vmem:[#allocation2 + $0x228] ss:$16 sps:$4 sm:$0xff]   ;;  %v8050_v8 = vld [vmem:[#allocation2 + $0xc] ss:$16 sps:$4 sm:$0xff]  }
 0x1d0   :  { %v5028_v21 = vpop.f32.mrf.mxu0  ;;  %5273 = vmatmul.mubr.bf16.vlgmr.msra.gmra.mxu0 %v9094_v14 }
 0x1d1   :  { %v5069_v28 = vpop.f32.mrf.mxu1  ;;  %5314 = vmatmul.mubr.bf16.vlgmr.msra.gmra.mxu1 %v9098_v15  ;;  %v5029_v60 = vadd.f32 %v5028_v21, %v9085_v27  ;;  %5323 = vmatpush1.bf16.msra.mxu0 %v8006_v11  ;;  %v8053_v11 = vld [vmem:[#allocation2 + $0x20c] ss:$16 sps:$4 sm:$0xff]   ;;  %v8057_v21 = vld [vmem:[#allocation2 + $0x3e8] ss:$16 sps:$4 sm:$0xff]  }
 0x1d2   :  { %5364 = vmatpush1.bf16.msra.mxu1 %v8009_v12  ;;  %v5030_v61 = vpop.f32.mrf.mxu0  ;;  %5324 = vmatprep.subr.bf16.mxu0 %v8014_v3  ;;  %v8048_v12 = vld [vmem:[#allocation2 + $0x8] ss:$16 sps:$4 sm:$0xff]  }
 0x1d3   :  { %v5071_v29 = vpop.f32.mrf.mxu1  ;;  %5365 = vmatprep.subr.bf16.mxu1 %v8017_v18  ;;  %v9103_v26 = vadd.f32 %v5069_v28, %v5029_v60  ;;  %v5031_v34 = vadd.f32 %v5030_v61, %v9090_v33  ;;  %5354 = vmatprep.mubr.bf16.mxu0 %v8919_v47  ;;  %v8024_v33 = vld [vmem:[#allocation2 + $0x88] ss:$16 sps:$4 sm:$0xff]   ;;  %v8032_v47 = vld [vmem:[#allocation2 + $0x6c] ss:$16 sps:$4 sm:$0xff]  }
 0x1d4   :  { %5395 = vmatprep.mubr.bf16.mxu1 %v8924_v51  ;;  %v5032_v43 = vpop.f32.mrf.mxu0  ;;  %v8035_v51 = vld [vmem:[#allocation2 + $0x26c] ss:$16 sps:$4 sm:$0xff]   ;;  %v8051_v3 = vld [vmem:[#allocation2 + $0x208] ss:$16 sps:$4 sm:$0xff]  }
 0x1d5   :  { %v5073_v27 = vpop.f32.mrf.mxu1  ;;  %v9108_v31 = vadd.f32 %v5071_v29, %v5031_v34  ;;  %5325 = vmatpush1.bf16.msra.mxu0 %v8012_v19  ;;  %v8056_v18 = vld [vmem:[#allocation2 + $0x1ec] ss:$16 sps:$4 sm:$0xff]   ;;  %v8060_v61 = vld [vmem:[#allocation2 + $0x1c8] ss:$16 sps:$4 sm:$0xff]  }
 0x1d6   :  { %5366 = vmatpush1.bf16.msra.mxu1 %v8015_v20  ;;  %v5033_v44 = vpop.f32.mrf.mxu0  ;;  %5326 = vmatprep.subr.bf16.mxu0 %v8020_v30  ;;  %v8059_v19 = vld [vmem:[#allocation2 + $0x3ec] ss:$16 sps:$4 sm:$0xff]   ;;  %v8054_v20 = vld [vmem:[#allocation2 + $0x1e8] ss:$16 sps:$4 sm:$0xff]  }
 0x1d7   :  { %v5074_v45 = vpop.f32.mrf.mxu1  ;;  %5367 = vmatprep.subr.bf16.mxu1 %v8023_v32  ;;  %v8062_v28 = vld [vmem:[#allocation2 + $0x1cc] ss:$16 sps:$4 sm:$0xff]   ;;  %v8063_v29 = vld [vmem:[#allocation2 + $0x3c8] ss:$16 sps:$4 sm:$0xff]  }
 0x1d8   :  { %v8065_v60 = vld [vmem:[#allocation2 + $0x3cc] ss:$16 sps:$4 sm:$0xff]   ;;  %v8066_v34 = vld [vmem:[#allocation2 + $0x1a8] ss:$16 sps:$4 sm:$0xff]  }
 0x1d9   :  { %5327 = vmatpush1.bf16.msra.mxu0 %v8018_v41  ;;  %v8068_v30 = vld [vmem:[#allocation2 + $0x1ac] ss:$16 sps:$4 sm:$0xff]   ;;  %v8069_v41 = vld [vmem:[#allocation2 + $0x3a8] ss:$16 sps:$4 sm:$0xff]  }
 0x1da   :  { %5368 = vmatpush1.bf16.msra.mxu1 %v8021_v42  ;;  %5328 = vmatprep.subr.bf16.mxu0 %v8026_v46  ;;  %v8071_v32 = vld [vmem:[#allocation2 + $0x3ac] ss:$16 sps:$4 sm:$0xff]   ;;  %v8072_v27 = vld [vmem:[#allocation2 + $0x188] ss:$16 sps:$4 sm:$0xff]  }
 0x1db   :  { %5369 = vmatprep.subr.bf16.mxu1 %v8029_v48  ;;  %v8074_v42 = vld [vmem:[#allocation2 + $0x18c] ss:$16 sps:$4 sm:$0xff]   ;;  %v8075_v44 = vld [vmem:[#allocation2 + $0x388] ss:$16 sps:$4 sm:$0xff]  }
 0x1dc   :  { %v8077_v43 = vld [vmem:[#allocation2 + $0x38c] ss:$16 sps:$4 sm:$0xff]   ;;  %v8078_v48 = vld [vmem:[#allocation2 + $0x168] ss:$16 sps:$4 sm:$0xff]  }
 0x1dd   :  { %5329 = vmatpush1.bf16.msra.mxu0 %v8024_v33  ;;  %v8080_v45 = vld [vmem:[#allocation2 + $0x16c] ss:$16 sps:$4 sm:$0xff]   ;;  %v8081_v33 = vld [vmem:[#allocation2 + $0x368] ss:$16 sps:$4 sm:$0xff]  }
 0x1de   :  { %5370 = vmatpush1.bf16.msra.mxu1 %v8027_v49  ;;  %5330 = vmatprep.subr.bf16.mxu0 %v8032_v47  ;;  %v8083_v46 = vld [vmem:[#allocation2 + $0x36c] ss:$16 sps:$4 sm:$0xff]  }
 0x1df   :  { %5371 = vmatprep.subr.bf16.mxu1 %v8035_v51  ;;  %v8086_v49 = vld [vmem:[#allocation2 + $0x14c] ss:$16 sps:$4 sm:$0xff]   ;;  %v8084_v51 = vld [vmem:[#allocation2 + $0x148] ss:$16 sps:$4 sm:$0xff]  }
 0x1e0   :  { %v8089_v47 = vld [vmem:[#allocation2 + $0x34c] ss:$16 sps:$4 sm:$0xff]  }
 0x1e1   :  { %5331 = vmatpush1.bf16.msra.mxu0 %v8030_v50  ;;  %v8087_v50 = vld [vmem:[#allocation2 + $0x348] ss:$16 sps:$4 sm:$0xff]  }
 0x1e2   :  { %5372 = vmatpush1.bf16.msra.mxu1 %v8033_v52  ;;  %5332 = vmatprep.subr.bf16.mxu0 %v8038_v53  ;;  %v8092_v52 = vld [vmem:[#allocation2 + $0x12c] ss:$16 sps:$4 sm:$0xff]  }
 0x1e3   :  { %5373 = vmatprep.subr.bf16.mxu1 %v8041_v55  ;;  %v8095_v53 = vld [vmem:[#allocation2 + $0x32c] ss:$16 sps:$4 sm:$0xff]   ;;  %v8090_v55 = vld [vmem:[#allocation2 + $0x128] ss:$16 sps:$4 sm:$0xff]  }
 0x1e5   :  { %5333 = vmatpush1.bf16.msra.mxu0 %v8036_v56  ;;  %v8093_v56 = vld [vmem:[#allocation2 + $0x328] ss:$16 sps:$4 sm:$0xff]  }
 0x1e6   :  { %5374 = vmatpush1.bf16.msra.mxu1 %v8039_v57  ;;  %5334 = vmatprep.subr.bf16.mxu0 %v8044_v58  ;;  %v8098_v57 = vld [vmem:[#allocation2 + $0x10c] ss:$16 sps:$4 sm:$0xff]  }
 0x1e7   :  { %5375 = vmatprep.subr.bf16.mxu1 %v8047_v62  ;;  %v8101_v58 = vld [vmem:[#allocation2 + $0x30c] ss:$16 sps:$4 sm:$0xff]   ;;  %v8096_v62 = vld [vmem:[#allocation2 + $0x108] ss:$16 sps:$4 sm:$0xff]  }
 0x1e9   :  { %5335 = vmatpush1.bf16.msra.mxu0 %v8042_v35  ;;  %v8099_v35 = vld [vmem:[#allocation2 + $0x308] ss:$16 sps:$4 sm:$0xff]  }
 0x1ea   :  { %5376 = vmatpush1.bf16.msra.mxu1 %v8045_v40  ;;  %5336 = vmatprep.subr.bf16.mxu0 %v8050_v8  ;;  %v8104_v40 = vld [vmem:[#allocation2 + $0x4ec] ss:$16 sps:$4 sm:$0xff]  }
 0x1eb   :  { %5377 = vmatprep.subr.bf16.mxu1 %v8053_v11  ;;  %v8107_v8 = vld [vmem:[#allocation2 + $0x6ec] ss:$16 sps:$4 sm:$0xff]   ;;  %v8102_v11 = vld [vmem:[#allocation2 + $0x4e8] ss:$16 sps:$4 sm:$0xff]  }
 0x1ed   :  { %5337 = vmatpush1.bf16.msra.mxu0 %v8048_v12  ;;  %v8105_v12 = vld [vmem:[#allocation2 + $0x6e8] ss:$16 sps:$4 sm:$0xff]  }
 0x1ee   :  { %5378 = vmatpush1.bf16.msra.mxu1 %v8051_v3  ;;  %5338 = vmatprep.subr.bf16.mxu0 %v8056_v18  ;;  %v8110_v3 = vld [vmem:[#allocation2 + $0x4cc] ss:$16 sps:$4 sm:$0xff]  }
 0x1ef   :  { %5379 = vmatprep.subr.bf16.mxu1 %v8059_v19  ;;  %v8113_v18 = vld [vmem:[#allocation2 + $0x6cc] ss:$16 sps:$4 sm:$0xff]   ;;  %v8108_v19 = vld [vmem:[#allocation2 + $0x4c8] ss:$16 sps:$4 sm:$0xff]  }
 0x1f1   :  { %5339 = vmatpush2.bf16.msra.mxu0 %v8054_v20  ;;  %v8111_v20 = vld [vmem:[#allocation2 + $0x6c8] ss:$16 sps:$4 sm:$0xff]  }
 0x1f2   :  { %5380 = vmatpush2.bf16.msra.mxu1 %v8057_v21  ;;  %5340 = vmatprep.subr.bf16.mxu0 %v8062_v28 }
 0x1f3   :  { %5381 = vmatprep.subr.bf16.mxu1 %v8065_v60 }
 0x1f5   :  { %5341 = vmatpush2.bf16.msra.mxu0 %v8060_v61 }
 0x1f6   :  { %5382 = vmatpush2.bf16.msra.mxu1 %v8063_v29  ;;  %5342 = vmatprep.subr.bf16.mxu0 %v8068_v30  ;;  %v8116_v30 = vld [vmem:[#allocation2 + $0x4ac] ss:$16 sps:$4 sm:$0xff]  }
 0x1f7   :  { %5383 = vmatprep.subr.bf16.mxu1 %v8071_v32  ;;  %v8119_v32 = vld [vmem:[#allocation2 + $0x6ac] ss:$16 sps:$4 sm:$0xff]  }
 0x1f9   :  { %5343 = vmatpush2.bf16.msra.mxu0 %v8066_v34 }
 0x1fa   :  { %5384 = vmatpush2.bf16.msra.mxu1 %v8069_v41  ;;  %5344 = vmatprep.subr.bf16.mxu0 %v8074_v42  ;;  %v8114_v42 = vld [vmem:[#allocation2 + $0x4a8] ss:$16 sps:$4 sm:$0xff]  }
 0x1fb   :  { %5385 = vmatprep.subr.bf16.mxu1 %v8077_v43  ;;  %v8117_v43 = vld [vmem:[#allocation2 + $0x6a8] ss:$16 sps:$4 sm:$0xff]  }
 0x1fd   :  { %5345 = vmatpush2.bf16.msra.mxu0 %v8072_v27 }
 0x1fe   :  { %5386 = vmatpush2.bf16.msra.mxu1 %v8075_v44  ;;  %5346 = vmatprep.subr.bf16.mxu0 %v8080_v45  ;;  %v8122_v45 = vld [vmem:[#allocation2 + $0x48c] ss:$16 sps:$4 sm:$0xff]  }
 0x1ff   :  { %5387 = vmatprep.subr.bf16.mxu1 %v8083_v46  ;;  %v8125_v46 = vld [vmem:[#allocation2 + $0x68c] ss:$16 sps:$4 sm:$0xff]  }
 0x201   :  { %5347 = vmatpush2.bf16.msra.mxu0 %v8078_v48  ;;  %v8123_v48 = vld [vmem:[#allocation2 + $0x688] ss:$16 sps:$4 sm:$0xff]  }
 0x202   :  { %5388 = vmatpush2.bf16.msra.mxu1 %v8081_v33  ;;  %5348 = vmatprep.subr.bf16.mxu0 %v8086_v49  ;;  %v8126_v33 = vld [vmem:[#allocation2 + $0x468] ss:$16 sps:$4 sm:$0xff]  }
 0x203   :  { %5389 = vmatprep.subr.bf16.mxu1 %v8089_v47  ;;  %v8129_v49 = vld [vmem:[#allocation2 + $0x668] ss:$16 sps:$4 sm:$0xff]   ;;  %v8134_v47 = vld [vmem:[#allocation2 + $0x44c] ss:$16 sps:$4 sm:$0xff]  }
 0x205   :  { %5349 = vmatpush2.bf16.msra.mxu0 %v8084_v51  ;;  %v8137_v51 = vld [vmem:[#allocation2 + $0x64c] ss:$16 sps:$4 sm:$0xff]  }
 0x206   :  { %5390 = vmatpush2.bf16.msra.mxu1 %v8087_v50  ;;  %5350 = vmatprep.subr.bf16.mxu0 %v8092_v52  ;;  %v8132_v50 = vld [vmem:[#allocation2 + $0x448] ss:$16 sps:$4 sm:$0xff]  }
 0x207   :  { %5391 = vmatprep.subr.bf16.mxu1 %v8095_v53  ;;  %v8135_v52 = vld [vmem:[#allocation2 + $0x648] ss:$16 sps:$4 sm:$0xff]   ;;  %v8140_v53 = vld [vmem:[#allocation2 + $0x42c] ss:$16 sps:$4 sm:$0xff]  }
 0x209   :  { %5351 = vmatpush2.bf16.msra.mxu0 %v8090_v55  ;;  %v8143_v55 = vld [vmem:[#allocation2 + $0x62c] ss:$16 sps:$4 sm:$0xff]  }
 0x20a   :  { %5392 = vmatpush2.bf16.msra.mxu1 %v8093_v56  ;;  %5352 = vmatprep.subr.bf16.mxu0 %v8098_v57  ;;  %v8138_v56 = vld [vmem:[#allocation2 + $0x428] ss:$16 sps:$4 sm:$0xff]  }
 0x20b   :  { %5393 = vmatprep.subr.bf16.mxu1 %v8101_v58  ;;  %v8141_v57 = vld [vmem:[#allocation2 + $0x628] ss:$16 sps:$4 sm:$0xff]   ;;  %v8146_v58 = vld [vmem:[#allocation2 + $0x40c] ss:$16 sps:$4 sm:$0xff]  }
 0x20d   :  { %5353 = vmatpush2.bf16.msra.mxu0 %v8096_v62  ;;  %v8149_v62 = vld [vmem:[#allocation2 + $0x60c] ss:$16 sps:$4 sm:$0xff]  }
 0x20e   :  { %5394 = vmatpush2.bf16.msra.mxu1 %v8099_v35  ;;  %5404 = vmatprep.subr.bf16.mxu0 %v8104_v40  ;;  %v8144_v35 = vld [vmem:[#allocation2 + $0x408] ss:$16 sps:$4 sm:$0xff]  }
 0x20f   :  { %5445 = vmatprep.subr.bf16.mxu1 %v8107_v8  ;;  %v8147_v40 = vld [vmem:[#allocation2 + $0x608] ss:$16 sps:$4 sm:$0xff]   ;;  %v8152_v8 = vld [vmem:[#allocation2 + $0x5ec] ss:$16 sps:$4 sm:$0xff]  }
 0x210   :  { %v5110_v21 = vpop.f32.mrf.mxu0  ;;  %5355 = vmatmul.mubr.bf16.vlgmr.msra.gmra.mxu0 %v8928_v6 }
 0x211   :  { %v5151_v28 = vpop.f32.mrf.mxu1  ;;  %5396 = vmatmul.mubr.bf16.vlgmr.msra.gmra.mxu1 %v8930_v7  ;;  %v5111_v60 = vadd.f32 %v5110_v21, %v9103_v26  ;;  %5405 = vmatpush1.bf16.msra.mxu0 %v8102_v11  ;;  %v8155_v11 = vld [vmem:[#allocation2 + $0x7ec] ss:$16 sps:$4 sm:$0xff]   ;;  %v8159_v21 = vld [vmem:[#allocation2 + $0x7c8] ss:$16 sps:$4 sm:$0xff]  }
 0x212   :  { %5446 = vmatpush1.bf16.msra.mxu1 %v8105_v12  ;;  %v5112_v61 = vpop.f32.mrf.mxu0  ;;  %5406 = vmatprep.subr.bf16.mxu0 %v8110_v3  ;;  %v8150_v12 = vld [vmem:[#allocation2 + $0x5e8] ss:$16 sps:$4 sm:$0xff]  }
 0x213   :  { %v5153_v29 = vpop.f32.mrf.mxu1  ;;  %5447 = vmatprep.subr.bf16.mxu1 %v8113_v18  ;;  %v9113_v34 = vadd.f32 %v5151_v28, %v5111_v60  ;;  %v5113_v41 = vadd.f32 %v5112_v61, %v9108_v31  ;;  %5436 = vmatprep.mubr.bf16.mxu0 %v8946_v36  ;;  %v8120_v31 = vld [vmem:[#allocation2 + $0x488] ss:$16 sps:$4 sm:$0xff]   ;;  %v8128_v36 = vld [vmem:[#allocation2 + $0x46c] ss:$16 sps:$4 sm:$0xff]  }
 0x214   :  { %5477 = vmatprep.mubr.bf16.mxu1 %v8950_v37  ;;  %v5114_v6 = vpop.f32.mrf.mxu0  ;;  %v8131_v37 = vld [vmem:[#allocation2 + $0x66c] ss:$16 sps:$4 sm:$0xff]   ;;  %v8153_v3 = vld [vmem:[#allocation2 + $0x7e8] ss:$16 sps:$4 sm:$0xff]  }
 0x215   :  { %v5155_v7 = vpop.f32.mrf.mxu1  ;;  %v9118_v26 = vadd.f32 %v5153_v29, %v5113_v41  ;;  %5407 = vmatpush1.bf16.msra.mxu0 %v8108_v19  ;;  %v8158_v18 = vld [vmem:[#allocation2 + $0x5cc] ss:$16 sps:$4 sm:$0xff]   ;;  %v8162_v61 = vld [vmem:[#allocation2 + $0x5a8] ss:$16 sps:$4 sm:$0xff]  }
 0x216   :  { %5448 = vmatpush1.bf16.msra.mxu1 %v8111_v20  ;;  %v5115_v27 = vpop.f32.mrf.mxu0  ;;  %5408 = vmatprep.subr.bf16.mxu0 %v8116_v30  ;;  %v8161_v19 = vld [vmem:[#allocation2 + $0x7cc] ss:$16 sps:$4 sm:$0xff]   ;;  %v8156_v20 = vld [vmem:[#allocation2 + $0x5c8] ss:$16 sps:$4 sm:$0xff]  }
 0x217   :  { %v5156_v44 = vpop.f32.mrf.mxu1  ;;  %5449 = vmatprep.subr.bf16.mxu1 %v8119_v32  ;;  %v8164_v28 = vld [vmem:[#allocation2 + $0x5ac] ss:$16 sps:$4 sm:$0xff]   ;;  %v8165_v29 = vld [vmem:[#allocation2 + $0x7a8] ss:$16 sps:$4 sm:$0xff]  }
 0x218   :  { %v8167_v60 = vld [vmem:[#allocation2 + $0x7ac] ss:$16 sps:$4 sm:$0xff]   ;;  %v8168_v41 = vld [vmem:[#allocation2 + $0x588] ss:$16 sps:$4 sm:$0xff]  }
 0x219   :  { %5409 = vmatpush1.bf16.msra.mxu0 %v8114_v42  ;;  %v8170_v30 = vld [vmem:[#allocation2 + $0x58c] ss:$16 sps:$4 sm:$0xff]   ;;  %v8171_v42 = vld [vmem:[#allocation2 + $0x788] ss:$16 sps:$4 sm:$0xff]  }
 0x21a   :  { %5450 = vmatpush1.bf16.msra.mxu1 %v8117_v43  ;;  %5410 = vmatprep.subr.bf16.mxu0 %v8122_v45  ;;  %v8173_v32 = vld [vmem:[#allocation2 + $0x78c] ss:$16 sps:$4 sm:$0xff]   ;;  %v8174_v7 = vld [vmem:[#allocation2 + $0x568] ss:$16 sps:$4 sm:$0xff]  }
 0x21b   :  { %5451 = vmatprep.subr.bf16.mxu1 %v8125_v46  ;;  %v8176_v43 = vld [vmem:[#allocation2 + $0x56c] ss:$16 sps:$4 sm:$0xff]   ;;  %v8177_v27 = vld [vmem:[#allocation2 + $0x768] ss:$16 sps:$4 sm:$0xff]  }
 0x21c   :  { %v8179_v6 = vld [vmem:[#allocation2 + $0x76c] ss:$16 sps:$4 sm:$0xff]   ;;  %v8180_v46 = vld [vmem:[#allocation2 + $0x548] ss:$16 sps:$4 sm:$0xff]  }
 0x21d   :  { %5411 = vmatpush1.bf16.msra.mxu0 %v8120_v31  ;;  %v8182_v44 = vld [vmem:[#allocation2 + $0x54c] ss:$16 sps:$4 sm:$0xff]   ;;  %v8183_v31 = vld [vmem:[#allocation2 + $0x748] ss:$16 sps:$4 sm:$0xff]  }
 0x21e   :  { %5452 = vmatpush1.bf16.msra.mxu1 %v8123_v48  ;;  %5412 = vmatprep.subr.bf16.mxu0 %v8128_v36  ;;  %v8185_v45 = vld [vmem:[#allocation2 + $0x74c] ss:$16 sps:$4 sm:$0xff]  }
 0x21f   :  { %5453 = vmatprep.subr.bf16.mxu1 %v8131_v37  ;;  %v8188_v48 = vld [vmem:[#allocation2 + $0x52c] ss:$16 sps:$4 sm:$0xff]   ;;  %v8186_v37 = vld [vmem:[#allocation2 + $0x528] ss:$16 sps:$4 sm:$0xff]  }
 0x220   :  { %v8191_v36 = vld [vmem:[#allocation2 + $0x72c] ss:$16 sps:$4 sm:$0xff]  }
 0x221   :  { %5413 = vmatpush1.bf16.msra.mxu0 %v8126_v33  ;;  %v8189_v33 = vld [vmem:[#allocation2 + $0x728] ss:$16 sps:$4 sm:$0xff]  }
 0x222   :  { %5454 = vmatpush1.bf16.msra.mxu1 %v8129_v49  ;;  %5414 = vmatprep.subr.bf16.mxu0 %v8134_v47  ;;  %v8194_v49 = vld [vmem:[#allocation2 + $0x50c] ss:$16 sps:$4 sm:$0xff]  }
 0x223   :  { %5455 = vmatprep.subr.bf16.mxu1 %v8137_v51  ;;  %v8197_v47 = vld [vmem:[#allocation2 + $0x70c] ss:$16 sps:$4 sm:$0xff]   ;;  %v8192_v51 = vld [vmem:[#allocation2 + $0x508] ss:$16 sps:$4 sm:$0xff]  }
 0x225   :  { %5415 = vmatpush1.bf16.msra.mxu0 %v8132_v50  ;;  %v8195_v50 = vld [vmem:[#allocation2 + $0x708] ss:$16 sps:$4 sm:$0xff]  }
 0x226   :  { %5456 = vmatpush1.bf16.msra.mxu1 %v8135_v52  ;;  %5416 = vmatprep.subr.bf16.mxu0 %v8140_v53  ;;  %v8200_v52 = vld [vmem:[#allocation2 + $0x8ec] ss:$16 sps:$4 sm:$0xff]  }
 0x227   :  { %5457 = vmatprep.subr.bf16.mxu1 %v8143_v55  ;;  %v8203_v53 = vld [vmem:[#allocation2 + $0xaec] ss:$16 sps:$4 sm:$0xff]   ;;  %v8198_v55 = vld [vmem:[#allocation2 + $0x8e8] ss:$16 sps:$4 sm:$0xff]  }
 0x229   :  { %5417 = vmatpush1.bf16.msra.mxu0 %v8138_v56  ;;  %v8201_v56 = vld [vmem:[#allocation2 + $0xae8] ss:$16 sps:$4 sm:$0xff]  }
 0x22a   :  { %5458 = vmatpush1.bf16.msra.mxu1 %v8141_v57  ;;  %5418 = vmatprep.subr.bf16.mxu0 %v8146_v58  ;;  %v8206_v57 = vld [vmem:[#allocation2 + $0x8cc] ss:$16 sps:$4 sm:$0xff]  }
 0x22b   :  { %5459 = vmatprep.subr.bf16.mxu1 %v8149_v62  ;;  %v8209_v58 = vld [vmem:[#allocation2 + $0xacc] ss:$16 sps:$4 sm:$0xff]  }
 0x22d   :  { %5419 = vmatpush1.bf16.msra.mxu0 %v8144_v35 }
 0x22e   :  { %5460 = vmatpush1.bf16.msra.mxu1 %v8147_v40  ;;  %5420 = vmatprep.subr.bf16.mxu0 %v8152_v8  ;;  %v8204_v8 = vld [vmem:[#allocation2 + $0x8c8] ss:$16 sps:$4 sm:$0xff]  }
 0x22f   :  { %5461 = vmatprep.subr.bf16.mxu1 %v8155_v11  ;;  %v8207_v11 = vld [vmem:[#allocation2 + $0xac8] ss:$16 sps:$4 sm:$0xff]  }
 0x231   :  { %5421 = vmatpush2.bf16.msra.mxu0 %v8150_v12 }
 0x232   :  { %5462 = vmatpush2.bf16.msra.mxu1 %v8153_v3  ;;  %5422 = vmatprep.subr.bf16.mxu0 %v8158_v18  ;;  %v8212_v18 = vld [vmem:[#allocation2 + $0x8ac] ss:$16 sps:$4 sm:$0xff]  }
 0x233   :  { %5463 = vmatprep.subr.bf16.mxu1 %v8161_v19  ;;  %v8215_v19 = vld [vmem:[#allocation2 + $0xaac] ss:$16 sps:$4 sm:$0xff]  }
 0x235   :  { %5423 = vmatpush2.bf16.msra.mxu0 %v8156_v20 }
 0x236   :  { %5464 = vmatpush2.bf16.msra.mxu1 %v8159_v21  ;;  %5424 = vmatprep.subr.bf16.mxu0 %v8164_v28  ;;  %v8210_v28 = vld [vmem:[#allocation2 + $0x8a8] ss:$16 sps:$4 sm:$0xff]  }
 0x237   :  { %5465 = vmatprep.subr.bf16.mxu1 %v8167_v60  ;;  %v8213_v60 = vld [vmem:[#allocation2 + $0xaa8] ss:$16 sps:$4 sm:$0xff]  }
 0x239   :  { %5425 = vmatpush2.bf16.msra.mxu0 %v8162_v61 }
 0x23a   :  { %5466 = vmatpush2.bf16.msra.mxu1 %v8165_v29  ;;  %5426 = vmatprep.subr.bf16.mxu0 %v8170_v30  ;;  %v8218_v30 = vld [vmem:[#allocation2 + $0x88c] ss:$16 sps:$4 sm:$0xff]  }
 0x23b   :  { %5467 = vmatprep.subr.bf16.mxu1 %v8173_v32  ;;  %v8221_v32 = vld [vmem:[#allocation2 + $0xa8c] ss:$16 sps:$4 sm:$0xff]  }
 0x23d   :  { %5427 = vmatpush2.bf16.msra.mxu0 %v8168_v41  ;;  %v8227_v41 = vld [vmem:[#allocation2 + $0xa6c] ss:$16 sps:$4 sm:$0xff]  }
 0x23e   :  { %5468 = vmatpush2.bf16.msra.mxu1 %v8171_v42  ;;  %5428 = vmatprep.subr.bf16.mxu0 %v8176_v43  ;;  %v8222_v42 = vld [vmem:[#allocation2 + $0x868] ss:$16 sps:$4 sm:$0xff]  }
 0x23f   :  { %5469 = vmatprep.subr.bf16.mxu1 %v8179_v6  ;;  %v8225_v43 = vld [vmem:[#allocation2 + $0xa68] ss:$16 sps:$4 sm:$0xff]   ;;  %v8230_v6 = vld [vmem:[#allocation2 + $0x84c] ss:$16 sps:$4 sm:$0xff]  }
 0x241   :  { %5429 = vmatpush2.bf16.msra.mxu0 %v8174_v7  ;;  %v8233_v7 = vld [vmem:[#allocation2 + $0xa4c] ss:$16 sps:$4 sm:$0xff]  }
 0x242   :  { %5470 = vmatpush2.bf16.msra.mxu1 %v8177_v27  ;;  %5430 = vmatprep.subr.bf16.mxu0 %v8182_v44  ;;  %v8228_v27 = vld [vmem:[#allocation2 + $0x848] ss:$16 sps:$4 sm:$0xff]  }
 0x243   :  { %5471 = vmatprep.subr.bf16.mxu1 %v8185_v45  ;;  %v8231_v44 = vld [vmem:[#allocation2 + $0xa48] ss:$16 sps:$4 sm:$0xff]   ;;  %v8236_v45 = vld [vmem:[#allocation2 + $0x82c] ss:$16 sps:$4 sm:$0xff]  }
 0x245   :  { %5431 = vmatpush2.bf16.msra.mxu0 %v8180_v46  ;;  %v8239_v46 = vld [vmem:[#allocation2 + $0xa2c] ss:$16 sps:$4 sm:$0xff]  }
 0x246   :  { %5472 = vmatpush2.bf16.msra.mxu1 %v8183_v31  ;;  %5432 = vmatprep.subr.bf16.mxu0 %v8188_v48  ;;  %v8234_v31 = vld [vmem:[#allocation2 + $0x828] ss:$16 sps:$4 sm:$0xff]  }
 0x247   :  { %5473 = vmatprep.subr.bf16.mxu1 %v8191_v36  ;;  %v8237_v48 = vld [vmem:[#allocation2 + $0xa28] ss:$16 sps:$4 sm:$0xff]   ;;  %v8242_v36 = vld [vmem:[#allocation2 + $0x80c] ss:$16 sps:$4 sm:$0xff]  }
 0x249   :  { %5433 = vmatpush2.bf16.msra.mxu0 %v8186_v37  ;;  %v8245_v37 = vld [vmem:[#allocation2 + $0xa0c] ss:$16 sps:$4 sm:$0xff]  }
 0x24a   :  { %5474 = vmatpush2.bf16.msra.mxu1 %v8189_v33  ;;  %5434 = vmatprep.subr.bf16.mxu0 %v8194_v49  ;;  %v8240_v33 = vld [vmem:[#allocation2 + $0x808] ss:$16 sps:$4 sm:$0xff]  }
 0x24b   :  { %5475 = vmatprep.subr.bf16.mxu1 %v8197_v47  ;;  %v8243_v49 = vld [vmem:[#allocation2 + $0xa08] ss:$16 sps:$4 sm:$0xff]   ;;  %v8248_v47 = vld [vmem:[#allocation2 + $0x9ec] ss:$16 sps:$4 sm:$0xff]  }
 0x24d   :  { %5435 = vmatpush2.bf16.msra.mxu0 %v8192_v51  ;;  %v8251_v51 = vld [vmem:[#allocation2 + $0xbec] ss:$16 sps:$4 sm:$0xff]  }
 0x24e   :  { %5476 = vmatpush2.bf16.msra.mxu1 %v8195_v50  ;;  %5486 = vmatprep.subr.bf16.mxu0 %v8200_v52  ;;  %v8246_v50 = vld [vmem:[#allocation2 + $0x9e8] ss:$16 sps:$4 sm:$0xff]  }
 0x24f   :  { %5527 = vmatprep.subr.bf16.mxu1 %v8203_v53  ;;  %v8249_v52 = vld [vmem:[#allocation2 + $0xbe8] ss:$16 sps:$4 sm:$0xff]   ;;  %v8254_v53 = vld [vmem:[#allocation2 + $0x9cc] ss:$16 sps:$4 sm:$0xff]  }
 0x250   :  { %v5192_v62 = vpop.f32.mrf.mxu0  ;;  %5437 = vmatmul.mubr.bf16.vlgmr.msra.gmra.mxu0 %v8956_v16 }
 0x251   :  { %v5233_v35 = vpop.f32.mrf.mxu1  ;;  %5478 = vmatmul.mubr.bf16.vlgmr.msra.gmra.mxu1 %v8960_v17  ;;  %v5193_v40 = vadd.f32 %v5192_v62, %v9113_v34  ;;  %5487 = vmatpush1.bf16.msra.mxu0 %v8198_v55  ;;  %v8257_v55 = vld [vmem:[#allocation2 + $0xbcc] ss:$16 sps:$4 sm:$0xff]  }
 0x252   :  { %5528 = vmatpush1.bf16.msra.mxu1 %v8201_v56  ;;  %v5194_v12 = vpop.f32.mrf.mxu0  ;;  %5488 = vmatprep.subr.bf16.mxu0 %v8206_v57  ;;  %v8252_v56 = vld [vmem:[#allocation2 + $0x9c8] ss:$16 sps:$4 sm:$0xff]   ;;  %v8263_v62 = vld [vmem:[#allocation2 + $0xbac] ss:$16 sps:$4 sm:$0xff]  }
 0x253   :  { %v5235_v3 = vpop.f32.mrf.mxu1  ;;  %5529 = vmatprep.subr.bf16.mxu1 %v8209_v58  ;;  %v9123_v20 = vadd.f32 %v5233_v35, %v5193_v40  ;;  %v5195_v21 = vadd.f32 %v5194_v12, %v9118_v26  ;;  %5518 = vmatprep.mubr.bf16.mxu0 %v8974_v24  ;;  %v8216_v26 = vld [vmem:[#allocation2 + $0x888] ss:$16 sps:$4 sm:$0xff]   ;;  %v8260_v58 = vld [vmem:[#allocation2 + $0x9ac] ss:$16 sps:$4 sm:$0xff]  }
 0x254   :  { %5559 = vmatprep.mubr.bf16.mxu1 %v8978_v25  ;;  %v5196_v16 = vpop.f32.mrf.mxu0  ;;  %v8219_v24 = vld [vmem:[#allocation2 + $0xa88] ss:$16 sps:$4 sm:$0xff]   ;;  %v8224_v25 = vld [vmem:[#allocation2 + $0x86c] ss:$16 sps:$4 sm:$0xff]  }
 0x255   :  { %v5237_v17 = vpop.f32.mrf.mxu1  ;;  %v9128_v34 = vadd.f32 %v5235_v3, %v5195_v21  ;;  %5489 = vmatpush1.bf16.msra.mxu0 %v8204_v8  ;;  %v8255_v57 = vld [vmem:[#allocation2 + $0xbc8] ss:$16 sps:$4 sm:$0xff]   ;;  %v8266_v8 = vld [vmem:[#allocation2 + $0x98c] ss:$16 sps:$4 sm:$0xff]  }
 0x256   :  { %5530 = vmatpush1.bf16.msra.mxu1 %v8207_v11  ;;  %v5197_v61 = vpop.f32.mrf.mxu0  ;;  %5490 = vmatprep.subr.bf16.mxu0 %v8212_v18  ;;  %v8258_v35 = vld [vmem:[#allocation2 + $0x9a8] ss:$16 sps:$4 sm:$0xff]   ;;  %v8269_v11 = vld [vmem:[#allocation2 + $0xb8c] ss:$16 sps:$4 sm:$0xff]  }
 0x257   :  { %v5238_v29 = vpop.f32.mrf.mxu1  ;;  %5531 = vmatprep.subr.bf16.mxu1 %v8215_v19  ;;  %v8261_v40 = vld [vmem:[#allocation2 + $0xba8] ss:$16 sps:$4 sm:$0xff]   ;;  %v8272_v18 = vld [vmem:[#allocation2 + $0x96c] ss:$16 sps:$4 sm:$0xff]  }
 0x258   :  { %v8264_v12 = vld [vmem:[#allocation2 + $0x988] ss:$16 sps:$4 sm:$0xff]   ;;  %v8275_v19 = vld [vmem:[#allocation2 + $0xb6c] ss:$16 sps:$4 sm:$0xff]  }
 0x259   :  { %5491 = vmatpush1.bf16.msra.mxu0 %v8210_v28  ;;  %v8267_v3 = vld [vmem:[#allocation2 + $0xb88] ss:$16 sps:$4 sm:$0xff]   ;;  %v8278_v17 = vld [vmem:[#allocation2 + $0x94c] ss:$16 sps:$4 sm:$0xff]  }
 0x25a   :  { %5532 = vmatpush1.bf16.msra.mxu1 %v8213_v60  ;;  %5492 = vmatprep.subr.bf16.mxu0 %v8218_v30  ;;  %v8270_v21 = vld [vmem:[#allocation2 + $0x968] ss:$16 sps:$4 sm:$0xff]   ;;  %v8281_v28 = vld [vmem:[#allocation2 + $0xb4c] ss:$16 sps:$4 sm:$0xff]  }
 0x25b   :  { %5533 = vmatprep.subr.bf16.mxu1 %v8221_v32  ;;  %v8273_v16 = vld [vmem:[#allocation2 + $0xb68] ss:$16 sps:$4 sm:$0xff]   ;;  %v8284_v29 = vld [vmem:[#allocation2 + $0x92c] ss:$16 sps:$4 sm:$0xff]  }
 0x25c   :  { %v8276_v60 = vld [vmem:[#allocation2 + $0x948] ss:$16 sps:$4 sm:$0xff]   ;;  %v8287_v30 = vld [vmem:[#allocation2 + $0xb2c] ss:$16 sps:$4 sm:$0xff]  }
 0x25d   :  { %5493 = vmatpush1.bf16.msra.mxu0 %v8216_v26  ;;  %v8279_v61 = vld [vmem:[#allocation2 + $0xb48] ss:$16 sps:$4 sm:$0xff]  }
 0x25e   :  { %5534 = vmatpush1.bf16.msra.mxu1 %v8219_v24  ;;  %5494 = vmatprep.subr.bf16.mxu0 %v8224_v25  ;;  %v8282_v32 = vld [vmem:[#allocation2 + $0x928] ss:$16 sps:$4 sm:$0xff]   ;;  %v8290_v24 = vld [vmem:[#allocation2 + $0x90c] ss:$16 sps:$4 sm:$0xff]  }
 0x25f   :  { %5535 = vmatprep.subr.bf16.mxu1 %v8227_v41  ;;  %v8285_v26 = vld [vmem:[#allocation2 + $0xb28] ss:$16 sps:$4 sm:$0xff]   ;;  %v8293_v25 = vld [vmem:[#allocation2 + $0xb0c] ss:$16 sps:$4 sm:$0xff]  }
 0x260   :  { %v8288_v41 = vld [vmem:[#allocation2 + $0x908] ss:$16 sps:$4 sm:$0xff]  }
 0x261   :  { %5495 = vmatpush1.bf16.msra.mxu0 %v8222_v42  ;;  %v8291_v42 = vld [vmem:[#allocation2 + $0xb08] ss:$16 sps:$4 sm:$0xff]  }
 0x262   :  { %5536 = vmatpush1.bf16.msra.mxu1 %v8225_v43  ;;  %5496 = vmatprep.subr.bf16.mxu0 %v8230_v6  ;;  %v8296_v43 = vld [vmem:[#allocation2 + $0xcec] ss:$16 sps:$4 sm:$0xff]  }
 0x263   :  { %5537 = vmatprep.subr.bf16.mxu1 %v8233_v7  ;;  %v8299_v6 = vld [vmem:[#allocation2 + $0xeec] ss:$16 sps:$4 sm:$0xff]   ;;  %v8294_v7 = vld [vmem:[#allocation2 + $0xce8] ss:$16 sps:$4 sm:$0xff]  }
 0x265   :  { %5497 = vmatpush1.bf16.msra.mxu0 %v8228_v27  ;;  %v8297_v27 = vld [vmem:[#allocation2 + $0xee8] ss:$16 sps:$4 sm:$0xff]  }
 0x266   :  { %5538 = vmatpush1.bf16.msra.mxu1 %v8231_v44  ;;  %5498 = vmatprep.subr.bf16.mxu0 %v8236_v45  ;;  %v8302_v44 = vld [vmem:[#allocation2 + $0xccc] ss:$16 sps:$4 sm:$0xff]  }
 0x267   :  { %5539 = vmatprep.subr.bf16.mxu1 %v8239_v46  ;;  %v8305_v45 = vld [vmem:[#allocation2 + $0xecc] ss:$16 sps:$4 sm:$0xff]  }
 0x269   :  { %5499 = vmatpush1.bf16.msra.mxu0 %v8234_v31 }
 0x26a   :  { %5540 = vmatpush1.bf16.msra.mxu1 %v8237_v48  ;;  %5500 = vmatprep.subr.bf16.mxu0 %v8242_v36  ;;  %v8300_v36 = vld [vmem:[#allocation2 + $0xcc8] ss:$16 sps:$4 sm:$0xff]  }
 0x26b   :  { %5541 = vmatprep.subr.bf16.mxu1 %v8245_v37  ;;  %v8303_v37 = vld [vmem:[#allocation2 + $0xec8] ss:$16 sps:$4 sm:$0xff]  }
 0x26d   :  { %5501 = vmatpush1.bf16.msra.mxu0 %v8240_v33 }
 0x26e   :  { %5542 = vmatpush1.bf16.msra.mxu1 %v8243_v49  ;;  %5502 = vmatprep.subr.bf16.mxu0 %v8248_v47  ;;  %v8308_v47 = vld [vmem:[#allocation2 + $0xcac] ss:$16 sps:$4 sm:$0xff]  }
 0x26f   :  { %5543 = vmatprep.subr.bf16.mxu1 %v8251_v51  ;;  %v8311_v51 = vld [vmem:[#allocation2 + $0xeac] ss:$16 sps:$4 sm:$0xff]  }
 0x271   :  { %5503 = vmatpush2.bf16.msra.mxu0 %v8246_v50 }
 0x272   :  { %5544 = vmatpush2.bf16.msra.mxu1 %v8249_v52  ;;  %5504 = vmatprep.subr.bf16.mxu0 %v8254_v53  ;;  %v8306_v53 = vld [vmem:[#allocation2 + $0xca8] ss:$16 sps:$4 sm:$0xff]  }
 0x273   :  { %5545 = vmatprep.subr.bf16.mxu1 %v8257_v55  ;;  %v8309_v55 = vld [vmem:[#allocation2 + $0xea8] ss:$16 sps:$4 sm:$0xff]  }
 0x275   :  { %5505 = vmatpush2.bf16.msra.mxu0 %v8252_v56 }
 0x276   :  { %5546 = vmatpush2.bf16.msra.mxu1 %v8255_v57  ;;  %5506 = vmatprep.subr.bf16.mxu0 %v8260_v58  ;;  %v8314_v58 = vld [vmem:[#allocation2 + $0xc8c] ss:$16 sps:$4 sm:$0xff]  }
 0x277   :  { %5547 = vmatprep.subr.bf16.mxu1 %v8263_v62  ;;  %v8317_v62 = vld [vmem:[#allocation2 + $0xe8c] ss:$16 sps:$4 sm:$0xff]  }
 0x279   :  { %5507 = vmatpush2.bf16.msra.mxu0 %v8258_v35  ;;  %v8323_v35 = vld [vmem:[#allocation2 + $0xe6c] ss:$16 sps:$4 sm:$0xff]  }
 0x27a   :  { %5548 = vmatpush2.bf16.msra.mxu1 %v8261_v40  ;;  %5508 = vmatprep.subr.bf16.mxu0 %v8266_v8  ;;  %v8318_v40 = vld [vmem:[#allocation2 + $0xc68] ss:$16 sps:$4 sm:$0xff]  }
 0x27b   :  { %5549 = vmatprep.subr.bf16.mxu1 %v8269_v11  ;;  %v8321_v8 = vld [vmem:[#allocation2 + $0xe68] ss:$16 sps:$4 sm:$0xff]   ;;  %v8326_v11 = vld [vmem:[#allocation2 + $0xc4c] ss:$16 sps:$4 sm:$0xff]  }
 0x27d   :  { %5509 = vmatpush2.bf16.msra.mxu0 %v8264_v12  ;;  %v8329_v12 = vld [vmem:[#allocation2 + $0xe4c] ss:$16 sps:$4 sm:$0xff]  }
 0x27e   :  { %5550 = vmatpush2.bf16.msra.mxu1 %v8267_v3  ;;  %5510 = vmatprep.subr.bf16.mxu0 %v8272_v18  ;;  %v8324_v3 = vld [vmem:[#allocation2 + $0xc48] ss:$16 sps:$4 sm:$0xff]  }
 0x27f   :  { %5551 = vmatprep.subr.bf16.mxu1 %v8275_v19  ;;  %v8327_v18 = vld [vmem:[#allocation2 + $0xe48] ss:$16 sps:$4 sm:$0xff]   ;;  %v8332_v19 = vld [vmem:[#allocation2 + $0xc2c] ss:$16 sps:$4 sm:$0xff]  }
 0x281   :  { %5511 = vmatpush2.bf16.msra.mxu0 %v8270_v21  ;;  %v8335_v21 = vld [vmem:[#allocation2 + $0xe2c] ss:$16 sps:$4 sm:$0xff]  }
 0x282   :  { %5552 = vmatpush2.bf16.msra.mxu1 %v8273_v16  ;;  %5512 = vmatprep.subr.bf16.mxu0 %v8278_v17  ;;  %v8330_v16 = vld [vmem:[#allocation2 + $0xc28] ss:$16 sps:$4 sm:$0xff]  }
 0x283   :  { %5553 = vmatprep.subr.bf16.mxu1 %v8281_v28  ;;  %v8333_v17 = vld [vmem:[#allocation2 + $0xe28] ss:$16 sps:$4 sm:$0xff]   ;;  %v8338_v28 = vld [vmem:[#allocation2 + $0xc0c] ss:$16 sps:$4 sm:$0xff]  }
 0x285   :  { %5513 = vmatpush2.bf16.msra.mxu0 %v8276_v60  ;;  %v8341_v60 = vld [vmem:[#allocation2 + $0xe0c] ss:$16 sps:$4 sm:$0xff]  }
 0x286   :  { %5554 = vmatpush2.bf16.msra.mxu1 %v8279_v61  ;;  %5514 = vmatprep.subr.bf16.mxu0 %v8284_v29  ;;  %v8336_v61 = vld [vmem:[#allocation2 + $0xc08] ss:$16 sps:$4 sm:$0xff]  }
 0x287   :  { %5555 = vmatprep.subr.bf16.mxu1 %v8287_v30  ;;  %v8339_v29 = vld [vmem:[#allocation2 + $0xe08] ss:$16 sps:$4 sm:$0xff]   ;;  %v8344_v30 = vld [vmem:[#allocation2 + $0xdec] ss:$16 sps:$4 sm:$0xff]  }
 0x289   :  { %5515 = vmatpush2.bf16.msra.mxu0 %v8282_v32  ;;  %v8347_v32 = vld [vmem:[#allocation2 + $0xfec] ss:$16 sps:$4 sm:$0xff]  }
 0x28a   :  { %5556 = vmatpush2.bf16.msra.mxu1 %v8285_v26  ;;  %5516 = vmatprep.subr.bf16.mxu0 %v8290_v24  ;;  %v8342_v26 = vld [vmem:[#allocation2 + $0xde8] ss:$16 sps:$4 sm:$0xff]  }
 0x28b   :  { %5557 = vmatprep.subr.bf16.mxu1 %v8293_v25  ;;  %v8345_v24 = vld [vmem:[#allocation2 + $0xfe8] ss:$16 sps:$4 sm:$0xff]   ;;  %v8350_v25 = vld [vmem:[#allocation2 + $0xdcc] ss:$16 sps:$4 sm:$0xff]  }
 0x28d   :  { %5517 = vmatpush2.bf16.msra.mxu0 %v8288_v41  ;;  %v8353_v41 = vld [vmem:[#allocation2 + $0xfcc] ss:$16 sps:$4 sm:$0xff]  }
 0x28e   :  { %5558 = vmatpush2.bf16.msra.mxu1 %v8291_v42  ;;  %5568 = vmatprep.subr.bf16.mxu0 %v8296_v43  ;;  %v8348_v42 = vld [vmem:[#allocation2 + $0xdc8] ss:$16 sps:$4 sm:$0xff]  }
 0x28f   :  { %5609 = vmatprep.subr.bf16.mxu1 %v8299_v6  ;;  %v8351_v43 = vld [vmem:[#allocation2 + $0xfc8] ss:$16 sps:$4 sm:$0xff]   ;;  %v8356_v6 = vld [vmem:[#allocation2 + $0xdac] ss:$16 sps:$4 sm:$0xff]  }
 0x290   :  { %v5274_v46 = vpop.f32.mrf.mxu0  ;;  %5519 = vmatmul.mubr.bf16.vlgmr.msra.gmra.mxu0 %v8991_v38 }
 0x291   :  { %v5315_v31 = vpop.f32.mrf.mxu1  ;;  %5560 = vmatmul.mubr.bf16.vlgmr.msra.gmra.mxu1 %v8995_v39  ;;  %v5275_v48 = vadd.f32 %v5274_v46, %v9123_v20  ;;  %5569 = vmatpush1.bf16.msra.mxu0 %v8294_v7  ;;  %v8359_v7 = vld [vmem:[#allocation2 + $0xfac] ss:$16 sps:$4 sm:$0xff]  }
 0x292   :  { %5610 = vmatpush1.bf16.msra.mxu1 %v8297_v27  ;;  %v5276_v33 = vpop.f32.mrf.mxu0  ;;  %5570 = vmatprep.subr.bf16.mxu0 %v8302_v44  ;;  %v8354_v27 = vld [vmem:[#allocation2 + $0xda8] ss:$16 sps:$4 sm:$0xff]   ;;  %v8365_v46 = vld [vmem:[#allocation2 + $0xf8c] ss:$16 sps:$4 sm:$0xff]  }
 0x293   :  { %v5317_v49 = vpop.f32.mrf.mxu1  ;;  %5611 = vmatprep.subr.bf16.mxu1 %v8305_v45  ;;  %v9133_v50 = vadd.f32 %v5315_v31, %v5275_v48  ;;  %v5277_v52 = vadd.f32 %v5276_v33, %v9128_v34  ;;  %5600 = vmatprep.mubr.bf16.mxu0 %v9004_v22  ;;  %v8312_v34 = vld [vmem:[#allocation2 + $0xc88] ss:$16 sps:$4 sm:$0xff]   ;;  %v8362_v45 = vld [vmem:[#allocation2 + $0xd8c] ss:$16 sps:$4 sm:$0xff]  }
 0x294   :  { %5641 = vmatprep.mubr.bf16.mxu1 %v9008_v23  ;;  %v5278_v38 = vpop.f32.mrf.mxu0  ;;  %v8315_v22 = vld [vmem:[#allocation2 + $0xe88] ss:$16 sps:$4 sm:$0xff]   ;;  %v8320_v23 = vld [vmem:[#allocation2 + $0xc6c] ss:$16 sps:$4 sm:$0xff]  }
 0x295   :  { %v5319_v39 = vpop.f32.mrf.mxu1  ;;  %v9138_v20 = vadd.f32 %v5317_v49, %v5277_v52  ;;  %5571 = vmatpush1.bf16.msra.mxu0 %v8300_v36  ;;  %v8357_v44 = vld [vmem:[#allocation2 + $0xfa8] ss:$16 sps:$4 sm:$0xff]   ;;  %v8368_v36 = vld [vmem:[#allocation2 + $0xd6c] ss:$16 sps:$4 sm:$0xff]  }
 0x296   :  { %5612 = vmatpush1.bf16.msra.mxu1 %v8303_v37  ;;  %v5279_v56 = vpop.f32.mrf.mxu0  ;;  %5572 = vmatprep.subr.bf16.mxu0 %v8308_v47  ;;  %v8360_v31 = vld [vmem:[#allocation2 + $0xd88] ss:$16 sps:$4 sm:$0xff]   ;;  %v8371_v37 = vld [vmem:[#allocation2 + $0xf6c] ss:$16 sps:$4 sm:$0xff]  }
 0x297   :  { %v5320_v57 = vpop.f32.mrf.mxu1  ;;  %5613 = vmatprep.subr.bf16.mxu1 %v8311_v51  ;;  %v8363_v48 = vld [vmem:[#allocation2 + $0xf88] ss:$16 sps:$4 sm:$0xff]   ;;  %v8374_v47 = vld [vmem:[#allocation2 + $0xd4c] ss:$16 sps:$4 sm:$0xff]  }
 0x298   :  { %v8366_v33 = vld [vmem:[#allocation2 + $0xd68] ss:$16 sps:$4 sm:$0xff]   ;;  %v8377_v51 = vld [vmem:[#allocation2 + $0xf4c] ss:$16 sps:$4 sm:$0xff]  }
 0x299   :  { %5573 = vmatpush1.bf16.msra.mxu0 %v8306_v53  ;;  %v8369_v49 = vld [vmem:[#allocation2 + $0xf68] ss:$16 sps:$4 sm:$0xff]   ;;  %v8380_v39 = vld [vmem:[#allocation2 + $0xd2c] ss:$16 sps:$4 sm:$0xff]  }
 0x29a   :  { %5614 = vmatpush1.bf16.msra.mxu1 %v8309_v55  ;;  %5574 = vmatprep.subr.bf16.mxu0 %v8314_v58  ;;  %v8372_v52 = vld [vmem:[#allocation2 + $0xd48] ss:$16 sps:$4 sm:$0xff]   ;;  %v8383_v53 = vld [vmem:[#allocation2 + $0xf2c] ss:$16 sps:$4 sm:$0xff]  }
 0x29b   :  { %5615 = vmatprep.subr.bf16.mxu1 %v8317_v62  ;;  %v8375_v38 = vld [vmem:[#allocation2 + $0xf48] ss:$16 sps:$4 sm:$0xff]   ;;  %v8386_v57 = vld [vmem:[#allocation2 + $0xd0c] ss:$16 sps:$4 sm:$0xff]  }
 0x29c   :  { %v8378_v55 = vld [vmem:[#allocation2 + $0xd28] ss:$16 sps:$4 sm:$0xff]   ;;  %v8389_v58 = vld [vmem:[#allocation2 + $0xf0c] ss:$16 sps:$4 sm:$0xff]  }
 0x29d   :  { %5575 = vmatpush1.bf16.msra.mxu0 %v8312_v34  ;;  %v8381_v56 = vld [vmem:[#allocation2 + $0xf28] ss:$16 sps:$4 sm:$0xff]  }
 0x29e   :  { %5616 = vmatpush1.bf16.msra.mxu1 %v8315_v22  ;;  %5576 = vmatprep.subr.bf16.mxu0 %v8320_v23  ;;  %v8384_v62 = vld [vmem:[#allocation2 + $0xd08] ss:$16 sps:$4 sm:$0xff]   ;;  %v896_v22 = vsub.s32 2, %v9014_v54  ;;  %v8392_v23 = vld [vmem:[#allocation2 + $0x10ec] ss:$16 sps:$4 sm:$0xff]  }
 0x29f   :  { %5617 = vmatprep.subr.bf16.mxu1 %v8323_v35  ;;  %v8387_v34 = vld [vmem:[#allocation2 + $0xf08] ss:$16 sps:$4 sm:$0xff]   ;;  %v8395_v35 = vld [vmem:[#allocation2 + $0x12ec] ss:$16 sps:$4 sm:$0xff]  }
 0x2a1   :  { %5577 = vmatpush1.bf16.msra.mxu0 %v8318_v40  ;;  %v900_v40 = vsub.s32 3, %v9014_v54 }
 0x2a2   :  { %5618 = vmatpush1.bf16.msra.mxu1 %v8321_v8  ;;  %5578 = vmatprep.subr.bf16.mxu0 %v8326_v11  ;;  %v8694_v8 = vld [vmem:[#allocation5] sm:$0xf] }
 0x2a3   :  { %5619 = vmatprep.subr.bf16.mxu1 %v8329_v12  ;;  %v897_v11 = vrot.slane %v8694_v8, %v896_v22  ;;  %v8390_v12 = vld [vmem:[#allocation2 + $0x10e8] ss:$16 sps:$4 sm:$0xff]   ;;  %v8446_v22 = vld [vmem:[#allocation2 + $0x11cc] ss:$16 sps:$4 sm:$0xff]  }
 0x2a5   :  { %5579 = vmatpush1.bf16.msra.mxu0 %v8324_v3  ;;  %v8393_v3 = vld [vmem:[#allocation2 + $0x12e8] ss:$16 sps:$4 sm:$0xff]  }
 0x2a6   :  { %5620 = vmatpush1.bf16.msra.mxu1 %v8327_v18  ;;  %5580 = vmatprep.subr.bf16.mxu0 %v8332_v19  ;;  %v8398_v18 = vld [vmem:[#allocation2 + $0x10cc] ss:$16 sps:$4 sm:$0xff]  }
 0x2a7   :  { %5621 = vmatprep.subr.bf16.mxu1 %v8335_v21  ;;  %v8401_v19 = vld [vmem:[#allocation2 + $0x12cc] ss:$16 sps:$4 sm:$0xff]   ;;  %v901_v21 = vrot.slane %v8694_v8, %v900_v40  ;;  %v8447_v40 = vld [vmem:[#allocation2 + $0x13c8] ss:$16 sps:$4 sm:$0xff]  }
 0x2a8   :  { %v8452_v8 = vld [vmem:[#allocation2 + $0x11ac] ss:$16 sps:$4 sm:$0xff]  }
 0x2a9   :  { %5581 = vmatpush1.bf16.msra.mxu0 %v8330_v16 }
 0x2aa   :  { %5622 = vmatpush1.bf16.msra.mxu1 %v8333_v17  ;;  %5582 = vmatprep.subr.bf16.mxu0 %v8338_v28 }
 0x2ab   :  { %5623 = vmatprep.subr.bf16.mxu1 %v8341_v60  ;;  %v8396_v60 = vld [vmem:[#allocation2 + $0x10c8] ss:$16 sps:$4 sm:$0xff]  }
 0x2ad   :  { %5583 = vmatpush1.bf16.msra.mxu0 %v8336_v61  ;;  %v8399_v61 = vld [vmem:[#allocation2 + $0x12c8] ss:$16 sps:$4 sm:$0xff]  }
 0x2ae   :  { %5624 = vmatpush1.bf16.msra.mxu1 %v8339_v29  ;;  %5584 = vmatprep.subr.bf16.mxu0 %v8344_v30 }
 0x2af   :  { %5625 = vmatprep.subr.bf16.mxu1 %v8347_v32  ;;  %v8404_v32 = vld [vmem:[#allocation2 + $0x10ac] ss:$16 sps:$4 sm:$0xff]  }
 0x2b1   :  { %5585 = vmatpush2.bf16.msra.mxu0 %v8342_v26  ;;  %v8407_v26 = vld [vmem:[#allocation2 + $0x12ac] ss:$16 sps:$4 sm:$0xff]  }
 0x2b2   :  { %5626 = vmatpush2.bf16.msra.mxu1 %v8345_v24  ;;  %5586 = vmatprep.subr.bf16.mxu0 %v8350_v25 }
 0x2b3   :  { %5627 = vmatprep.subr.bf16.mxu1 %v8353_v41 }
 0x2b5   :  { %5587 = vmatpush2.bf16.msra.mxu0 %v8348_v42  ;;  %v8402_v42 = vld [vmem:[#allocation2 + $0x10a8] ss:$16 sps:$4 sm:$0xff]  }
 0x2b6   :  { %5628 = vmatpush2.bf16.msra.mxu1 %v8351_v43  ;;  %5588 = vmatprep.subr.bf16.mxu0 %v8356_v6  ;;  %v8405_v43 = vld [vmem:[#allocation2 + $0x12a8] ss:$16 sps:$4 sm:$0xff]  }
 0x2b7   :  { %5629 = vmatprep.subr.bf16.mxu1 %v8359_v7 }
 0x2b9   :  { %5589 = vmatpush2.bf16.msra.mxu0 %v8354_v27  ;;  %v8410_v27 = vld [vmem:[#allocation2 + $0x108c] ss:$16 sps:$4 sm:$0xff]  }
 0x2ba   :  { %5630 = vmatpush2.bf16.msra.mxu1 %v8357_v44  ;;  %5590 = vmatprep.subr.bf16.mxu0 %v8362_v45  ;;  %v8413_v44 = vld [vmem:[#allocation2 + $0x128c] ss:$16 sps:$4 sm:$0xff]   ;;  %v8408_v45 = vld [vmem:[#allocation2 + $0x1088] ss:$16 sps:$4 sm:$0xff]  }
 0x2bb   :  { %5631 = vmatprep.subr.bf16.mxu1 %v8365_v46  ;;  %v8419_v46 = vld [vmem:[#allocation2 + $0x126c] ss:$16 sps:$4 sm:$0xff]  }
 0x2bd   :  { %5591 = vmatpush2.bf16.msra.mxu0 %v8360_v31  ;;  %v8414_v31 = vld [vmem:[#allocation2 + $0x1068] ss:$16 sps:$4 sm:$0xff]  }
 0x2be   :  { %5632 = vmatpush2.bf16.msra.mxu1 %v8363_v48  ;;  %5592 = vmatprep.subr.bf16.mxu0 %v8368_v36  ;;  %v8417_v48 = vld [vmem:[#allocation2 + $0x1268] ss:$16 sps:$4 sm:$0xff]   ;;  %v8422_v36 = vld [vmem:[#allocation2 + $0x104c] ss:$16 sps:$4 sm:$0xff]  }
 0x2bf   :  { %5633 = vmatprep.subr.bf16.mxu1 %v8371_v37  ;;  %v8425_v37 = vld [vmem:[#allocation2 + $0x124c] ss:$16 sps:$4 sm:$0xff]  }
 0x2c1   :  { %5593 = vmatpush2.bf16.msra.mxu0 %v8366_v33  ;;  %v8420_v33 = vld [vmem:[#allocation2 + $0x1048] ss:$16 sps:$4 sm:$0xff]  }
 0x2c2   :  { %5634 = vmatpush2.bf16.msra.mxu1 %v8369_v49  ;;  %5594 = vmatprep.subr.bf16.mxu0 %v8374_v47  ;;  %v8423_v49 = vld [vmem:[#allocation2 + $0x1248] ss:$16 sps:$4 sm:$0xff]   ;;  %v8428_v47 = vld [vmem:[#allocation2 + $0x102c] ss:$16 sps:$4 sm:$0xff]  }
 0x2c3   :  { %5635 = vmatprep.subr.bf16.mxu1 %v8377_v51  ;;  %v8431_v51 = vld [vmem:[#allocation2 + $0x122c] ss:$16 sps:$4 sm:$0xff]  }
 0x2c5   :  { %5595 = vmatpush2.bf16.msra.mxu0 %v8372_v52  ;;  %v8426_v52 = vld [vmem:[#allocation2 + $0x1028] ss:$16 sps:$4 sm:$0xff]  }
 0x2c6   :  { %5636 = vmatpush2.bf16.msra.mxu1 %v8375_v38  ;;  %5596 = vmatprep.subr.bf16.mxu0 %v8380_v39  ;;  %v8429_v38 = vld [vmem:[#allocation2 + $0x1228] ss:$16 sps:$4 sm:$0xff]   ;;  %v8434_v39 = vld [vmem:[#allocation2 + $0x100c] ss:$16 sps:$4 sm:$0xff]  }
 0x2c7   :  { %5637 = vmatprep.subr.bf16.mxu1 %v8383_v53  ;;  %v8437_v53 = vld [vmem:[#allocation2 + $0x120c] ss:$16 sps:$4 sm:$0xff]  }
 0x2c9   :  { %5597 = vmatpush2.bf16.msra.mxu0 %v8378_v55  ;;  %v8432_v55 = vld [vmem:[#allocation2 + $0x1008] ss:$16 sps:$4 sm:$0xff]  }
 0x2ca   :  { %5638 = vmatpush2.bf16.msra.mxu1 %v8381_v56  ;;  %5598 = vmatprep.subr.bf16.mxu0 %v8386_v57  ;;  %v8435_v56 = vld [vmem:[#allocation2 + $0x1208] ss:$16 sps:$4 sm:$0xff]   ;;  %v8440_v57 = vld [vmem:[#allocation2 + $0x11ec] ss:$16 sps:$4 sm:$0xff]  }
 0x2cb   :  { %5639 = vmatprep.subr.bf16.mxu1 %v8389_v58  ;;  %v8443_v58 = vld [vmem:[#allocation2 + $0x13ec] ss:$16 sps:$4 sm:$0xff]  }
 0x2cd   :  { %5599 = vmatpush2.bf16.msra.mxu0 %v8384_v62  ;;  %v8438_v62 = vld [vmem:[#allocation2 + $0x11e8] ss:$16 sps:$4 sm:$0xff]  }
 0x2ce   :  { %5640 = vmatpush2.bf16.msra.mxu1 %v8387_v34  ;;  %5650 = vmatprep.subr.bf16.mxu0 %v8392_v23  ;;  %v8441_v34 = vld [vmem:[#allocation2 + $0x13e8] ss:$16 sps:$4 sm:$0xff]   ;;  %v8449_v23 = vld [vmem:[#allocation2 + $0x13cc] ss:$16 sps:$4 sm:$0xff]  }
 0x2cf   :  { %5691 = vmatprep.subr.bf16.mxu1 %v8395_v35  ;;  %v8444_v35 = vld [vmem:[#allocation2 + $0x11c8] ss:$16 sps:$4 sm:$0xff]  }
 0x2d0   :  { %v5356_v16 = vpop.f32.mrf.mxu0  ;;  %5601 = vmatmul.mubr.bf16.vlgmr.msra.gmra.mxu0 %v9020_v0 }
 0x2d1   :  { %v5397_v17 = vpop.f32.mrf.mxu1  ;;  %5642 = vmatmul.mubr.bf16.vlgmr.msra.gmra.mxu1 %v9024_v1  ;;  %v5357_v28 = vadd.f32 %v5356_v16, %v897_v11  ;;  %5651 = vmatpush1.bf16.msra.mxu0 %v8390_v12  ;;  %v8455_v11 = vld [vmem:[#allocation2 + $0x13ac] ss:$16 sps:$4 sm:$0xff]   ;;  %v8450_v12 = vld [vmem:[#allocation2 + $0x11a8] ss:$16 sps:$4 sm:$0xff]  }
 0x2d2   :  { %5692 = vmatpush1.bf16.msra.mxu1 %v8393_v3  ;;  %v5358_v29 = vpop.f32.mrf.mxu0  ;;  %5652 = vmatprep.subr.bf16.mxu0 %v8398_v18  ;;  %v8453_v3 = vld [vmem:[#allocation2 + $0x13a8] ss:$16 sps:$4 sm:$0xff]   ;;  %v8458_v18 = vld [vmem:[#allocation2 + $0x118c] ss:$16 sps:$4 sm:$0xff]  }
 0x2d3   :  { %v5399_v30 = vpop.f32.mrf.mxu1  ;;  %5693 = vmatprep.subr.bf16.mxu1 %v8401_v19  ;;  %v9144_v24 = vadd.f32 %v5397_v17, %v5357_v28  ;;  %v5359_v25 = vadd.f32 %v5358_v29, %v901_v21  ;;  %5682 = vmatprep.mubr.bf16.mxu0 %v9042_v9  ;;  %v8411_v9 = vld [vmem:[#allocation2 + $0x1288] ss:$16 sps:$4 sm:$0xff]   ;;  %v8461_v19 = vld [vmem:[#allocation2 + $0x138c] ss:$16 sps:$4 sm:$0xff]  }
 0x2d4   :  { %5723 = vmatprep.mubr.bf16.mxu1 %v9046_v10  ;;  %v5360_v0 = vpop.f32.mrf.mxu0  ;;  %v8416_v10 = vld [vmem:[#allocation2 + $0x106c] ss:$16 sps:$4 sm:$0xff]   ;;  %v8456_v21 = vld [vmem:[#allocation2 + $0x1188] ss:$16 sps:$4 sm:$0xff]  }
 0x2d5   :  { %v5401_v1 = vpop.f32.mrf.mxu1  ;;  %v9148_v41 = vadd.f32 %v5399_v30, %v5359_v25  ;;  %5653 = vmatpush1.bf16.msra.mxu0 %v8396_v60  ;;  %v8459_v16 = vld [vmem:[#allocation2 + $0x1388] ss:$16 sps:$4 sm:$0xff]   ;;  %v8464_v17 = vld [vmem:[#allocation2 + $0x116c] ss:$16 sps:$4 sm:$0xff]  }
 0x2d6   :  { %5694 = vmatpush1.bf16.msra.mxu1 %v8399_v61  ;;  %v5361_v6 = vpop.f32.mrf.mxu0  ;;  %5654 = vmatprep.subr.bf16.mxu0 %v8404_v32  ;;  %v8467_v28 = vld [vmem:[#allocation2 + $0x136c] ss:$16 sps:$4 sm:$0xff]   ;;  %v8462_v60 = vld [vmem:[#allocation2 + $0x1168] ss:$16 sps:$4 sm:$0xff]  }
 0x2d7   :  { %v5402_v7 = vpop.f32.mrf.mxu1  ;;  %5695 = vmatprep.subr.bf16.mxu1 %v8407_v26  ;;  %v8465_v61 = vld [vmem:[#allocation2 + $0x1368] ss:$16 sps:$4 sm:$0xff]   ;;  %v8470_v29 = vld [vmem:[#allocation2 + $0x114c] ss:$16 sps:$4 sm:$0xff]  }
 0x2d8   :  { %v8473_v30 = vld [vmem:[#allocation2 + $0x134c] ss:$16 sps:$4 sm:$0xff]   ;;  %v8468_v32 = vld [vmem:[#allocation2 + $0x1148] ss:$16 sps:$4 sm:$0xff]  }
 0x2d9   :  { %5655 = vmatpush1.bf16.msra.mxu0 %v8402_v42  ;;  %v8471_v26 = vld [vmem:[#allocation2 + $0x1348] ss:$16 sps:$4 sm:$0xff]   ;;  %v8476_v25 = vld [vmem:[#allocation2 + $0x112c] ss:$16 sps:$4 sm:$0xff]  }
 0x2da   :  { %5696 = vmatpush1.bf16.msra.mxu1 %v8405_v43  ;;  %5656 = vmatprep.subr.bf16.mxu0 %v8410_v27  ;;  %v8479_v0 = vld [vmem:[#allocation2 + $0x132c] ss:$16 sps:$4 sm:$0xff]   ;;  %v8474_v1 = vld [vmem:[#allocation2 + $0x1128] ss:$16 sps:$4 sm:$0xff]  }
 0x2db   :  { %5697 = vmatprep.subr.bf16.mxu1 %v8413_v44  ;;  %v8477_v42 = vld [vmem:[#allocation2 + $0x1328] ss:$16 sps:$4 sm:$0xff]   ;;  %v8482_v43 = vld [vmem:[#allocation2 + $0x110c] ss:$16 sps:$4 sm:$0xff]  }
 0x2dc   :  { %v8485_v6 = vld [vmem:[#allocation2 + $0x130c] ss:$16 sps:$4 sm:$0xff]   ;;  %v8480_v7 = vld [vmem:[#allocation2 + $0x1108] ss:$16 sps:$4 sm:$0xff]  }
 0x2dd   :  { %5657 = vmatpush1.bf16.msra.mxu0 %v8408_v45  ;;  %v8483_v27 = vld [vmem:[#allocation2 + $0x1308] ss:$16 sps:$4 sm:$0xff]   ;;  %v8488_v44 = vld [vmem:[#allocation2 + $0x14ec] ss:$16 sps:$4 sm:$0xff]  }
 0x2de   :  { %5698 = vmatpush1.bf16.msra.mxu1 %v8411_v9  ;;  %5658 = vmatprep.subr.bf16.mxu0 %v8416_v10  ;;  %v8491_v45 = vld [vmem:[#allocation2 + $0x16ec] ss:$16 sps:$4 sm:$0xff]   ;;  %v8486_v9 = vld [vmem:[#allocation2 + $0x14e8] ss:$16 sps:$4 sm:$0xff]  }
 0x2df   :  { %5699 = vmatprep.subr.bf16.mxu1 %v8419_v46  ;;  %v8489_v10 = vld [vmem:[#allocation2 + $0x16e8] ss:$16 sps:$4 sm:$0xff]   ;;  %v8494_v46 = vld [vmem:[#allocation2 + $0x14cc] ss:$16 sps:$4 sm:$0xff]  }
 0x2e1   :  { %5659 = vmatpush1.bf16.msra.mxu0 %v8414_v31  ;;  %v8497_v31 = vld [vmem:[#allocation2 + $0x16cc] ss:$16 sps:$4 sm:$0xff]  }
 0x2e2   :  { %5700 = vmatpush1.bf16.msra.mxu1 %v8417_v48  ;;  %5660 = vmatprep.subr.bf16.mxu0 %v8422_v36 }
 0x2e3   :  { %5701 = vmatprep.subr.bf16.mxu1 %v8425_v37 }
 0x2e5   :  { %5661 = vmatpush1.bf16.msra.mxu0 %v8420_v33  ;;  %v8492_v33 = vld [vmem:[#allocation2 + $0x14c8] ss:$16 sps:$4 sm:$0xff]  }
 0x2e6   :  { %5702 = vmatpush1.bf16.msra.mxu1 %v8423_v49  ;;  %5662 = vmatprep.subr.bf16.mxu0 %v8428_v47  ;;  %v8495_v49 = vld [vmem:[#allocation2 + $0x16c8] ss:$16 sps:$4 sm:$0xff]  }
 0x2e7   :  { %5703 = vmatprep.subr.bf16.mxu1 %v8431_v51 }
 0x2e9   :  { %5663 = vmatpush1.bf16.msra.mxu0 %v8426_v52  ;;  %v8500_v52 = vld [vmem:[#allocation2 + $0x14ac] ss:$16 sps:$4 sm:$0xff]  }
 0x2ea   :  { %5704 = vmatpush1.bf16.msra.mxu1 %v8429_v38  ;;  %5664 = vmatprep.subr.bf16.mxu0 %v8434_v39  ;;  %v8503_v38 = vld [vmem:[#allocation2 + $0x16ac] ss:$16 sps:$4 sm:$0xff]  }
 0x2eb   :  { %5705 = vmatprep.subr.bf16.mxu1 %v8437_v53 }
 0x2ed   :  { %5665 = vmatpush1.bf16.msra.mxu0 %v8432_v55  ;;  %v8498_v55 = vld [vmem:[#allocation2 + $0x14a8] ss:$16 sps:$4 sm:$0xff]  }
 0x2ee   :  { %5706 = vmatpush1.bf16.msra.mxu1 %v8435_v56  ;;  %5666 = vmatprep.subr.bf16.mxu0 %v8440_v57  ;;  %v8501_v56 = vld [vmem:[#allocation2 + $0x16a8] ss:$16 sps:$4 sm:$0xff]  }
 0x2ef   :  { %5707 = vmatprep.subr.bf16.mxu1 %v8443_v58 }
 0x2f1   :  { %5667 = vmatpush2.bf16.msra.mxu0 %v8438_v62  ;;  %v8506_v62 = vld [vmem:[#allocation2 + $0x148c] ss:$16 sps:$4 sm:$0xff]  }
 0x2f2   :  { %5708 = vmatpush2.bf16.msra.mxu1 %v8441_v34  ;;  %5668 = vmatprep.subr.bf16.mxu0 %v8446_v22  ;;  %v8509_v34 = vld [vmem:[#allocation2 + $0x168c] ss:$16 sps:$4 sm:$0xff]  }
 0x2f3   :  { %5709 = vmatprep.subr.bf16.mxu1 %v8449_v23  ;;  %v8515_v22 = vld [vmem:[#allocation2 + $0x166c] ss:$16 sps:$4 sm:$0xff]   ;;  %v8510_v23 = vld [vmem:[#allocation2 + $0x1468] ss:$16 sps:$4 sm:$0xff]  }
 0x2f5   :  { %5669 = vmatpush2.bf16.msra.mxu0 %v8444_v35  ;;  %v8513_v35 = vld [vmem:[#allocation2 + $0x1668] ss:$16 sps:$4 sm:$0xff]  }
 0x2f6   :  { %5710 = vmatpush2.bf16.msra.mxu1 %v8447_v40  ;;  %5670 = vmatprep.subr.bf16.mxu0 %v8452_v8  ;;  %v8518_v40 = vld [vmem:[#allocation2 + $0x144c] ss:$16 sps:$4 sm:$0xff]  }
 0x2f7   :  { %5711 = vmatprep.subr.bf16.mxu1 %v8455_v11  ;;  %v8521_v8 = vld [vmem:[#allocation2 + $0x164c] ss:$16 sps:$4 sm:$0xff]   ;;  %v8516_v11 = vld [vmem:[#allocation2 + $0x1448] ss:$16 sps:$4 sm:$0xff]  }
 0x2f9   :  { %5671 = vmatpush2.bf16.msra.mxu0 %v8450_v12  ;;  %v8519_v12 = vld [vmem:[#allocation2 + $0x1648] ss:$16 sps:$4 sm:$0xff]  }
 0x2fa   :  { %5712 = vmatpush2.bf16.msra.mxu1 %v8453_v3  ;;  %5672 = vmatprep.subr.bf16.mxu0 %v8458_v18  ;;  %v8524_v3 = vld [vmem:[#allocation2 + $0x142c] ss:$16 sps:$4 sm:$0xff]  }
 0x2fb   :  { %5713 = vmatprep.subr.bf16.mxu1 %v8461_v19  ;;  %v8527_v18 = vld [vmem:[#allocation2 + $0x162c] ss:$16 sps:$4 sm:$0xff]   ;;  %v8522_v19 = vld [vmem:[#allocation2 + $0x1428] ss:$16 sps:$4 sm:$0xff]  }
 0x2fd   :  { %5673 = vmatpush2.bf16.msra.mxu0 %v8456_v21  ;;  %v8525_v21 = vld [vmem:[#allocation2 + $0x1628] ss:$16 sps:$4 sm:$0xff]  }
 0x2fe   :  { %5714 = vmatpush2.bf16.msra.mxu1 %v8459_v16  ;;  %5674 = vmatprep.subr.bf16.mxu0 %v8464_v17  ;;  %v8530_v16 = vld [vmem:[#allocation2 + $0x140c] ss:$16 sps:$4 sm:$0xff]  }
 0x2ff   :  { %5715 = vmatprep.subr.bf16.mxu1 %v8467_v28  ;;  %v8533_v17 = vld [vmem:[#allocation2 + $0x160c] ss:$16 sps:$4 sm:$0xff]   ;;  %v8528_v28 = vld [vmem:[#allocation2 + $0x1408] ss:$16 sps:$4 sm:$0xff]  }
 0x301   :  { %5675 = vmatpush2.bf16.msra.mxu0 %v8462_v60  ;;  %v8531_v60 = vld [vmem:[#allocation2 + $0x1608] ss:$16 sps:$4 sm:$0xff]  }
 0x302   :  { %5716 = vmatpush2.bf16.msra.mxu1 %v8465_v61  ;;  %5676 = vmatprep.subr.bf16.mxu0 %v8470_v29  ;;  %v8536_v61 = vld [vmem:[#allocation2 + $0x15ec] ss:$16 sps:$4 sm:$0xff]  }
 0x303   :  { %5717 = vmatprep.subr.bf16.mxu1 %v8473_v30  ;;  %v8539_v29 = vld [vmem:[#allocation2 + $0x17ec] ss:$16 sps:$4 sm:$0xff]   ;;  %v8534_v30 = vld [vmem:[#allocation2 + $0x15e8] ss:$16 sps:$4 sm:$0xff]  }
 0x305   :  { %5677 = vmatpush2.bf16.msra.mxu0 %v8468_v32  ;;  %v8537_v32 = vld [vmem:[#allocation2 + $0x17e8] ss:$16 sps:$4 sm:$0xff]  }
 0x306   :  { %5718 = vmatpush2.bf16.msra.mxu1 %v8471_v26  ;;  %5678 = vmatprep.subr.bf16.mxu0 %v8476_v25  ;;  %v8542_v26 = vld [vmem:[#allocation2 + $0x15cc] ss:$16 sps:$4 sm:$0xff]  }
 0x307   :  { %5719 = vmatprep.subr.bf16.mxu1 %v8479_v0  ;;  %v8545_v25 = vld [vmem:[#allocation2 + $0x17cc] ss:$16 sps:$4 sm:$0xff]   ;;  %v8540_v0 = vld [vmem:[#allocation2 + $0x15c8] ss:$16 sps:$4 sm:$0xff]  }
 0x309   :  { %5679 = vmatpush2.bf16.msra.mxu0 %v8474_v1  ;;  %v8543_v1 = vld [vmem:[#allocation2 + $0x17c8] ss:$16 sps:$4 sm:$0xff]  }
 0x30a   :  { %5720 = vmatpush2.bf16.msra.mxu1 %v8477_v42  ;;  %5680 = vmatprep.subr.bf16.mxu0 %v8482_v43  ;;  %v8548_v42 = vld [vmem:[#allocation2 + $0x15ac] ss:$16 sps:$4 sm:$0xff]  }
 0x30b   :  { %5721 = vmatprep.subr.bf16.mxu1 %v8485_v6  ;;  %v8551_v43 = vld [vmem:[#allocation2 + $0x17ac] ss:$16 sps:$4 sm:$0xff]   ;;  %v8546_v6 = vld [vmem:[#allocation2 + $0x15a8] ss:$16 sps:$4 sm:$0xff]  }
 0x30d   :  { %5681 = vmatpush2.bf16.msra.mxu0 %v8480_v7  ;;  %v8549_v7 = vld [vmem:[#allocation2 + $0x17a8] ss:$16 sps:$4 sm:$0xff]  }
 0x30e   :  { %5722 = vmatpush2.bf16.msra.mxu1 %v8483_v27  ;;  %5732 = vmatprep.subr.bf16.mxu0 %v8488_v44  ;;  %v8554_v27 = vld [vmem:[#allocation2 + $0x158c] ss:$16 sps:$4 sm:$0xff]  }
 0x30f   :  { %5773 = vmatprep.subr.bf16.mxu1 %v8491_v45  ;;  %v8557_v44 = vld [vmem:[#allocation2 + $0x178c] ss:$16 sps:$4 sm:$0xff]   ;;  %v8552_v45 = vld [vmem:[#allocation2 + $0x1588] ss:$16 sps:$4 sm:$0xff]  }
 0x310   :  { %v5438_v48 = vpop.f32.mrf.mxu0  ;;  %5683 = vmatmul.mubr.bf16.vlgmr.msra.gmra.mxu0 %v9068_v4 }
 0x311   :  { %v5479_v36 = vpop.f32.mrf.mxu1  ;;  %5724 = vmatmul.mubr.bf16.vlgmr.msra.gmra.mxu1 %v9072_v5  ;;  %v5439_v37 = vadd.f32 %v5438_v48, %v9144_v24  ;;  %5733 = vmatpush1.bf16.msra.mxu0 %v8486_v9  ;;  %v8555_v9 = vld [vmem:[#allocation2 + $0x1788] ss:$16 sps:$4 sm:$0xff]  }
 0x312   :  { %5774 = vmatpush1.bf16.msra.mxu1 %v8489_v10  ;;  %v5440_v47 = vpop.f32.mrf.mxu0  ;;  %5734 = vmatprep.subr.bf16.mxu0 %v8494_v46  ;;  %v8560_v10 = vld [vmem:[#allocation2 + $0x156c] ss:$16 sps:$4 sm:$0xff]   ;;  %v8561_v48 = vld [vmem:[#allocation2 + $0x1768] ss:$16 sps:$4 sm:$0xff]  }
 0x313   :  { %v5481_v51 = vpop.f32.mrf.mxu1  ;;  %5775 = vmatprep.subr.bf16.mxu1 %v8497_v31  ;;  %v9153_v39 = vadd.f32 %v5479_v36, %v5439_v37  ;;  %v5441_v53 = vadd.f32 %v5440_v47, %v9148_v41  ;;  %5764 = vmatprep.mubr.bf16.mxu0 %v9076_v13  ;;  %v8504_v41 = vld [vmem:[#allocation2 + $0x1488] ss:$16 sps:$4 sm:$0xff]   ;;  %v8563_v46 = vld [vmem:[#allocation2 + $0x176c] ss:$16 sps:$4 sm:$0xff]  }
 0x314   :  { %5805 = vmatprep.mubr.bf16.mxu1 %v9080_v2  ;;  %v5442_v4 = vpop.f32.mrf.mxu0  ;;  %v8507_v13 = vld [vmem:[#allocation2 + $0x1688] ss:$16 sps:$4 sm:$0xff]   ;;  %v8512_v2 = vld [vmem:[#allocation2 + $0x146c] ss:$16 sps:$4 sm:$0xff]  }
 0x315   :  { %v5483_v5 = vpop.f32.mrf.mxu1  ;;  %v9158_v24 = vadd.f32 %v5481_v51, %v5441_v53  ;;  %5735 = vmatpush1.bf16.msra.mxu0 %v8492_v33  ;;  %v8558_v31 = vld [vmem:[#allocation2 + $0x1568] ss:$16 sps:$4 sm:$0xff]   ;;  %v8566_v36 = vld [vmem:[#allocation2 + $0x154c] ss:$16 sps:$4 sm:$0xff]  }
 0x316   :  { %5776 = vmatpush1.bf16.msra.mxu1 %v8495_v49  ;;  %v5443_v57 = vpop.f32.mrf.mxu0  ;;  %5736 = vmatprep.subr.bf16.mxu0 %v8500_v52  ;;  %v8569_v37 = vld [vmem:[#allocation2 + $0x174c] ss:$16 sps:$4 sm:$0xff]   ;;  %v8564_v33 = vld [vmem:[#allocation2 + $0x1548] ss:$16 sps:$4 sm:$0xff]  }
 0x317   :  { %v5484_v58 = vpop.f32.mrf.mxu1  ;;  %5777 = vmatprep.subr.bf16.mxu1 %v8503_v38  ;;  %v8567_v49 = vld [vmem:[#allocation2 + $0x1748] ss:$16 sps:$4 sm:$0xff]   ;;  %v8572_v47 = vld [vmem:[#allocation2 + $0x152c] ss:$16 sps:$4 sm:$0xff]   ;;  %v5815_v57 = vmax.f32 %v9138_v20, 0.0 }
 0x318   :  { %v8575_v51 = vld [vmem:[#allocation2 + $0x172c] ss:$16 sps:$4 sm:$0xff]   ;;  %v8570_v52 = vld [vmem:[#allocation2 + $0x1528] ss:$16 sps:$4 sm:$0xff]  }
 0x319   :  { %5737 = vmatpush1.bf16.msra.mxu0 %v8498_v55  ;;  %v8573_v38 = vld [vmem:[#allocation2 + $0x1728] ss:$16 sps:$4 sm:$0xff]   ;;  %v8578_v53 = vld [vmem:[#allocation2 + $0x150c] ss:$16 sps:$4 sm:$0xff]  }
 0x31a   :  { %5778 = vmatpush1.bf16.msra.mxu1 %v8501_v56  ;;  %5738 = vmatprep.subr.bf16.mxu0 %v8506_v62  ;;  %v8581_v4 = vld [vmem:[#allocation2 + $0x170c] ss:$16 sps:$4 sm:$0xff]   ;;  %v8576_v5 = vld [vmem:[#allocation2 + $0x1508] ss:$16 sps:$4 sm:$0xff]  }
 0x31b   :  { %5779 = vmatprep.subr.bf16.mxu1 %v8509_v34  ;;  %v8579_v55 = vld [vmem:[#allocation2 + $0x1708] ss:$16 sps:$4 sm:$0xff]   ;;  %v8582_v58 = vld [vmem:[#allocation7 + $0x70] ss:$8 sps:$4 sm:$0xff]   ;;  %v5819_v34 = vpack.c.bf16 %v5815_v57, %v5815_v57 }
 0x31c   :  { %v8584_v56 = vld [vmem:[#allocation7 + $0x74] ss:$8 sps:$4 sm:$0xff]   ;;  %v8587_v62 = vld [vmem:[#allocation7 + $0x64] ss:$8 sps:$4 sm:$0xff]   ;;  %v8660_v57 = vld [vmem:[#allocation7 + $0x1d0] ss:$8 sps:$4 sm:$0xff]  }
 0x31d   :  { %5739 = vmatpush1.bf16.msra.mxu0 %v8504_v41  ;;  %v8590_v20 = vld [vmem:[#allocation7 + $0x54] ss:$8 sps:$4 sm:$0xff]  }
 0x31e   :  { %5780 = vmatpush1.bf16.msra.mxu1 %v8507_v13  ;;  %5740 = vmatprep.subr.bf16.mxu0 %v8512_v2 }
 0x31f   :  { %5781 = vmatprep.subr.bf16.mxu1 %v8515_v22  ;;  %v8585_v22 = vld [vmem:[#allocation7 + $0x60] ss:$8 sps:$4 sm:$0xff]  }
 0x321   :  { %5741 = vmatpush1.bf16.msra.mxu0 %v8510_v23 }
 0x322   :  { %5782 = vmatpush1.bf16.msra.mxu1 %v8513_v35  ;;  %5742 = vmatprep.subr.bf16.mxu0 %v8518_v40 }
 0x323   :  { %5783 = vmatprep.subr.bf16.mxu1 %v8521_v8 }
 0x325   :  { %5743 = vmatpush1.bf16.msra.mxu0 %v8516_v11 }
 0x326   :  { %5784 = vmatpush1.bf16.msra.mxu1 %v8519_v12  ;;  %5744 = vmatprep.subr.bf16.mxu0 %v8524_v3 }
 0x327   :  { %5785 = vmatprep.subr.bf16.mxu1 %v8527_v18 }
 0x329   :  { %5745 = vmatpush1.bf16.msra.mxu0 %v8522_v19  ;;  %v8630_v19 = vld [vmem:[#allocation7 + $0x170] ss:$8 sps:$4 sm:$0xff]  }
 0x32a   :  { %5786 = vmatpush1.bf16.msra.mxu1 %v8525_v21  ;;  %5746 = vmatprep.subr.bf16.mxu0 %v8530_v16  ;;  %v8632_v21 = vld [vmem:[#allocation7 + $0x174] ss:$8 sps:$4 sm:$0xff]   ;;  %v8635_v16 = vld [vmem:[#allocation7 + $0x164] ss:$8 sps:$4 sm:$0xff]  }
 0x32b   :  { %5787 = vmatprep.subr.bf16.mxu1 %v8533_v17  ;;  %v8591_v17 = vld [vmem:[#allocation7 + $0x40] ss:$8 sps:$4 sm:$0xff]  }
 0x32d   :  { %5747 = vmatpush1.bf16.msra.mxu0 %v8528_v28  ;;  %v8633_v28 = vld [vmem:[#allocation7 + $0x160] ss:$8 sps:$4 sm:$0xff]  }
 0x32e   :  { %5788 = vmatpush1.bf16.msra.mxu1 %v8531_v60  ;;  %5748 = vmatprep.subr.bf16.mxu0 %v8536_v61  ;;  %v8638_v60 = vld [vmem:[#allocation7 + $0x154] ss:$8 sps:$4 sm:$0xff]   ;;  %v8594_v61 = vld [vmem:[#allocation7 + $0x30] ss:$8 sps:$4 sm:$0xff]  }
 0x32f   :  { %5789 = vmatprep.subr.bf16.mxu1 %v8539_v29  ;;  %v8636_v29 = vld [vmem:[#allocation7 + $0x150] ss:$8 sps:$4 sm:$0xff]  }
 0x331   :  { %5749 = vmatpush2.bf16.msra.mxu0 %v8534_v30  ;;  %v8599_v30 = vld [vmem:[#allocation7 + $0x24] ss:$8 sps:$4 sm:$0xff]  }
 0x332   :  { %5790 = vmatpush2.bf16.msra.mxu1 %v8537_v32  ;;  %5750 = vmatprep.subr.bf16.mxu0 %v8542_v26  ;;  %v8641_v32 = vld [vmem:[#allocation7 + $0x144] ss:$8 sps:$4 sm:$0xff]   ;;  %v8597_v26 = vld [vmem:[#allocation7 + $0x20] ss:$8 sps:$4 sm:$0xff]  }
 0x333   :  { %5791 = vmatprep.subr.bf16.mxu1 %v8545_v25  ;;  %v8639_v25 = vld [vmem:[#allocation7 + $0x140] ss:$8 sps:$4 sm:$0xff]  }
 0x335   :  { %5751 = vmatpush2.bf16.msra.mxu0 %v8540_v0  ;;  %v8602_v0 = vld [vmem:[#allocation7 + $0x14] ss:$8 sps:$4 sm:$0xff]  }
 0x336   :  { %5792 = vmatpush2.bf16.msra.mxu1 %v8543_v1  ;;  %5752 = vmatprep.subr.bf16.mxu0 %v8548_v42  ;;  %v8644_v1 = vld [vmem:[#allocation7 + $0x134] ss:$8 sps:$4 sm:$0xff]   ;;  %v8600_v42 = vld [vmem:[#allocation7 + $0x10] ss:$8 sps:$4 sm:$0xff]  }
 0x337   :  { %5793 = vmatprep.subr.bf16.mxu1 %v8551_v43  ;;  %v8642_v43 = vld [vmem:[#allocation7 + $0x130] ss:$8 sps:$4 sm:$0xff]  }
 0x339   :  { %5753 = vmatpush2.bf16.msra.mxu0 %v8546_v6  ;;  %v8605_v6 = vld [vmem:[#allocation7 + $0x4] ss:$8 sps:$4 sm:$0xff]  }
 0x33a   :  { %5794 = vmatpush2.bf16.msra.mxu1 %v8549_v7  ;;  %5754 = vmatprep.subr.bf16.mxu0 %v8554_v27  ;;  %v8647_v7 = vld [vmem:[#allocation7 + $0x124] ss:$8 sps:$4 sm:$0xff]   ;;  %v8603_v27 = vld [vmem:[#allocation7] ss:$8 sps:$4 sm:$0xff]  }
 0x33b   :  { %5795 = vmatprep.subr.bf16.mxu1 %v8557_v44  ;;  %v8645_v44 = vld [vmem:[#allocation7 + $0x120] ss:$8 sps:$4 sm:$0xff]  }
 0x33d   :  { %5755 = vmatpush2.bf16.msra.mxu0 %v8552_v45  ;;  %v8608_v45 = vld [vmem:[#allocation7 + $0xf4] ss:$8 sps:$4 sm:$0xff]  }
 0x33e   :  { %5796 = vmatpush2.bf16.msra.mxu1 %v8555_v9  ;;  %5756 = vmatprep.subr.bf16.mxu0 %v8560_v10  ;;  %v8650_v9 = vld [vmem:[#allocation7 + $0x114] ss:$8 sps:$4 sm:$0xff]   ;;  %v8606_v10 = vld [vmem:[#allocation7 + $0xf0] ss:$8 sps:$4 sm:$0xff]  }
 0x33f   :  { %5797 = vmatprep.subr.bf16.mxu1 %v8563_v46  ;;  %v8648_v46 = vld [vmem:[#allocation7 + $0x110] ss:$8 sps:$4 sm:$0xff]  }
 0x341   :  { %5757 = vmatpush2.bf16.msra.mxu0 %v8558_v31  ;;  %v8611_v31 = vld [vmem:[#allocation7 + $0xe4] ss:$8 sps:$4 sm:$0xff]  }
 0x342   :  { %5798 = vmatpush2.bf16.msra.mxu1 %v8561_v48  ;;  %5758 = vmatprep.subr.bf16.mxu0 %v8566_v36  ;;  %v8653_v48 = vld [vmem:[#allocation7 + $0x104] ss:$8 sps:$4 sm:$0xff]   ;;  %v8609_v36 = vld [vmem:[#allocation7 + $0xe0] ss:$8 sps:$4 sm:$0xff]  }
 0x343   :  { %5799 = vmatprep.subr.bf16.mxu1 %v8569_v37  ;;  %v8651_v37 = vld [vmem:[#allocation7 + $0x100] ss:$8 sps:$4 sm:$0xff]  }
 0x345   :  { %5759 = vmatpush2.bf16.msra.mxu0 %v8564_v33  ;;  %v8614_v33 = vld [vmem:[#allocation7 + $0xd4] ss:$8 sps:$4 sm:$0xff]  }
 0x346   :  { %5800 = vmatpush2.bf16.msra.mxu1 %v8567_v49  ;;  %5760 = vmatprep.subr.bf16.mxu0 %v8572_v47  ;;  %v8656_v49 = vld [vmem:[#allocation7 + $0x1f4] ss:$8 sps:$4 sm:$0xff]   ;;  %v8612_v47 = vld [vmem:[#allocation7 + $0xd0] ss:$8 sps:$4 sm:$0xff]  }
 0x347   :  { %5801 = vmatprep.subr.bf16.mxu1 %v8575_v51  ;;  %v8654_v51 = vld [vmem:[#allocation7 + $0x1f0] ss:$8 sps:$4 sm:$0xff]  }
 0x349   :  { %5761 = vmatpush2.bf16.msra.mxu0 %v8570_v52  ;;  %v8617_v52 = vld [vmem:[#allocation7 + $0xc4] ss:$8 sps:$4 sm:$0xff]  }
 0x34a   :  { %5802 = vmatpush2.bf16.msra.mxu1 %v8573_v38  ;;  %5762 = vmatprep.subr.bf16.mxu0 %v8578_v53  ;;  %v8659_v38 = vld [vmem:[#allocation7 + $0x1e4] ss:$8 sps:$4 sm:$0xff]   ;;  %v8615_v53 = vld [vmem:[#allocation7 + $0xc0] ss:$8 sps:$4 sm:$0xff]  }
 0x34b   :  { %5803 = vmatprep.subr.bf16.mxu1 %v8581_v4  ;;  %v8657_v4 = vld [vmem:[#allocation7 + $0x1e0] ss:$8 sps:$4 sm:$0xff]  }
 0x34d   :  { %5763 = vmatpush2.bf16.msra.mxu0 %v8576_v5  ;;  %v8620_v5 = vld [vmem:[#allocation7 + $0xb4] ss:$8 sps:$4 sm:$0xff]  }
 0x34e   :  { %5804 = vmatpush2.bf16.msra.mxu1 %v8579_v55  ;;  %6218 = vmatprep.subr.bf16.mxu0 %v8584_v56  ;;  %v8662_v55 = vld [vmem:[#allocation7 + $0x1d4] ss:$8 sps:$4 sm:$0xff]   ;;  %v8618_v56 = vld [vmem:[#allocation7 + $0xb0] ss:$8 sps:$4 sm:$0xff]  }
 0x34f   :  { %6259 = vmatprep.subr.bf16.mxu1 %v8632_v21 }
 0x350   :  { %v5520_v41 = vpop.f32.mrf.mxu0  ;;  %5765 = vmatmul.mubr.bf16.vlgmr.msra.gmra.mxu0 %v9094_v14  ;;  %v8588_v14 = vld [vmem:[#allocation7 + $0x50] ss:$8 sps:$4 sm:$0xff]  }
 0x351   :  { %v5561_v13 = vpop.f32.mrf.mxu1  ;;  %5806 = vmatmul.mubr.bf16.vlgmr.msra.gmra.mxu1 %v9098_v15  ;;  %v5521_v2 = vadd.f32 %v5520_v41, %v9153_v39  ;;  %6219 = vmatpush1.bf16.msra.mxu0 %v8582_v58  ;;  %v8593_v39 = vld [vmem:[#allocation7 + $0x44] ss:$8 sps:$4 sm:$0xff]   ;;  %v8663_v41 = vld [vmem:[#allocation7 + $0x1c0] ss:$8 sps:$4 sm:$0xff]  }
 0x352   :  { %6250 = vmatprep.mubr.bf16.mxu0 %v5819_v34  ;;  %v5522_v23 = vpop.f32.mrf.mxu0  ;;  %6220 = vmatprep.subr.bf16.mxu0 %v8587_v62  ;;  %v8623_v58 = vld [vmem:[#allocation7 + $0xa4] ss:$8 sps:$4 sm:$0xff]   ;;  %v8621_v34 = vld [vmem:[#allocation7 + $0xa0] ss:$8 sps:$4 sm:$0xff]  }
 0x353   :  { %v5563_v35 = vpop.f32.mrf.mxu1  ;;  %v9164_v40 = vadd.f32 %v5561_v13, %v5521_v2  ;;  %v5523_v8 = vadd.f32 %v5522_v23, %v9158_v24  ;;  %6260 = vmatpush1.bf16.msra.mxu1 %v8630_v19  ;;  %v8596_v24 = vld [vmem:[#allocation7 + $0x34] ss:$8 sps:$4 sm:$0xff]   ;;  %v8665_v62 = vld [vmem:[#allocation7 + $0x1c4] ss:$8 sps:$4 sm:$0xff]   ;;  %v8666_v23 = vld [vmem:[#allocation7 + $0x1b0] ss:$8 sps:$4 sm:$0xff]  }
 0x354   :  { %v5524_v11 = vpop.f32.mrf.mxu0  ;;  %6261 = vmatprep.subr.bf16.mxu1 %v8635_v16  ;;  %v8626_v13 = vld [vmem:[#allocation7 + $0x94] ss:$8 sps:$4 sm:$0xff]  }
 0x355   :  { %v5565_v12 = vpop.f32.mrf.mxu1  ;;  %v9167_v3 = vadd.f32 %v5563_v35, %v5523_v8  ;;  %6221 = vmatpush1.bf16.msra.mxu0 %v8585_v22  ;;  %v8668_v2 = vld [vmem:[#allocation7 + $0x1b4] ss:$8 sps:$4 sm:$0xff]   ;;  %v8624_v22 = vld [vmem:[#allocation7 + $0x90] ss:$8 sps:$4 sm:$0xff]   ;;  %v8629_v35 = vld [vmem:[#allocation7 + $0x84] ss:$8 sps:$4 sm:$0xff]  }
 0x356   :  { %v5525_v15 = vpop.f32.mrf.mxu0  ;;  %6222 = vmatprep.subr.bf16.mxu0 %v8590_v20  ;;  %v8627_v20 = vld [vmem:[#allocation7 + $0x80] ss:$8 sps:$4 sm:$0xff]   ;;  %v5814_v8 = vmax.f32 %v9133_v50, 0.0  ;;  %v8671_v12 = vld [vmem:[#allocation7 + $0x1a4] ss:$8 sps:$4 sm:$0xff]  }
 0x357   :  { %v5566_v18 = vpop.f32.mrf.mxu1  ;;  %6262 = vmatpush1.bf16.msra.mxu1 %v8633_v28  ;;  %v8674_v16 = vld [vmem:[#allocation7 + $0x194] ss:$8 sps:$4 sm:$0xff]  }
 0x358   :  { %6263 = vmatprep.subr.bf16.mxu1 %v8638_v60  ;;  %v5818_v11 = vpack.c.bf16 %v5814_v8, %v5814_v8 }
 0x359   :  { %6223 = vmatpush1.bf16.msra.mxu0 %v8588_v14  ;;  %v8669_v14 = vld [vmem:[#allocation7 + $0x1a0] ss:$8 sps:$4 sm:$0xff]  }
 0x35a   :  { %6224 = vmatprep.subr.bf16.mxu0 %v8593_v39 }
 0x35b   :  { %6264 = vmatpush1.bf16.msra.mxu1 %v8636_v29 }
 0x35c   :  { %6265 = vmatprep.subr.bf16.mxu1 %v8641_v32  ;;  %v8677_v32 = vld [vmem:[#allocation7 + $0x184] ss:$8 sps:$4 sm:$0xff]  }
 0x35d   :  { %6225 = vmatpush1.bf16.msra.mxu0 %v8591_v17 }
 0x35e   :  { %6226 = vmatprep.subr.bf16.mxu0 %v8596_v24  ;;  %v8672_v24 = vld [vmem:[#allocation7 + $0x190] ss:$8 sps:$4 sm:$0xff]  }
 0x35f   :  { %6266 = vmatpush1.bf16.msra.mxu1 %v8639_v25 }
 0x360   :  { %6267 = vmatprep.subr.bf16.mxu1 %v8644_v1 }
 0x361   :  { %6227 = vmatpush1.bf16.msra.mxu0 %v8594_v61 }
 0x362   :  { %6228 = vmatprep.subr.bf16.mxu0 %v8599_v30 }
 0x363   :  { %6268 = vmatpush1.bf16.msra.mxu1 %v8642_v43 }
 0x364   :  { %6269 = vmatprep.subr.bf16.mxu1 %v8647_v7 }
 0x365   :  { %6229 = vmatpush1.bf16.msra.mxu0 %v8597_v26  ;;  %v8675_v26 = vld [vmem:[#allocation7 + $0x180] ss:$8 sps:$4 sm:$0xff]  }
 0x366   :  { %6230 = vmatprep.subr.bf16.mxu0 %v8602_v0 }
 0x367   :  { %6270 = vmatpush1.bf16.msra.mxu1 %v8645_v44  ;;  %v8678_v44 = vld [vmem:[#allocation10 + $0x78] sm:$0xff]  }
 0x368   :  { %6271 = vmatprep.subr.bf16.mxu1 %v8650_v9  ;;  %v8680_v9 = vld [vmem:[#allocation10 + $0x70] sm:$0xff]  }
 0x369   :  { %6231 = vmatpush1.bf16.msra.mxu0 %v8600_v42 }
 0x36a   :  { %6232 = vmatprep.subr.bf16.mxu0 %v8605_v6 }
 0x36b   :  { %6272 = vmatpush1.bf16.msra.mxu1 %v8648_v46  ;;  %v8682_v46 = vld [vmem:[#allocation10 + $0x68] sm:$0xff]  }
 0x36c   :  { %6273 = vmatprep.subr.bf16.mxu1 %v8653_v48  ;;  %v8684_v48 = vld [vmem:[#allocation10 + $0x60] sm:$0xff]  }
 0x36d   :  { %6233 = vmatpush1.bf16.msra.mxu0 %v8603_v27 }
 0x36e   :  { %6234 = vmatprep.subr.bf16.mxu0 %v8608_v45  ;;  %v8679_v45 = vld [vmem:[#allocation10 + $0x38] sm:$0xff]  }
 0x36f   :  { %6274 = vmatpush1.bf16.msra.mxu1 %v8651_v37  ;;  %v8686_v37 = vld [vmem:[#allocation10 + $0x58] sm:$0xff]  }
 0x370   :  { %6275 = vmatprep.subr.bf16.mxu1 %v8656_v49  ;;  %v8688_v49 = vld [vmem:[#allocation10 + $0x50] sm:$0xff]  }
 0x371   :  { %6235 = vmatpush2.bf16.msra.mxu0 %v8606_v10  ;;  %v8681_v10 = vld [vmem:[#allocation10 + $0x30] sm:$0xff]  }
 0x372   :  { %6236 = vmatprep.subr.bf16.mxu0 %v8611_v31  ;;  %v8683_v31 = vld [vmem:[#allocation10 + $0x28] sm:$0xff]  }
 0x373   :  { %6276 = vmatpush2.bf16.msra.mxu1 %v8654_v51 }
 0x374   :  { %6277 = vmatprep.subr.bf16.mxu1 %v8659_v38 }
 0x375   :  { %6237 = vmatpush2.bf16.msra.mxu0 %v8609_v36  ;;  %v8685_v36 = vld [vmem:[#allocation10 + $0x20] sm:$0xff]  }
 0x376   :  { %6238 = vmatprep.subr.bf16.mxu0 %v8614_v33  ;;  %v8687_v33 = vld [vmem:[#allocation10 + $0x18] sm:$0xff]  }
 0x377   :  { %6278 = vmatpush2.bf16.msra.mxu1 %v8657_v4 }
 0x378   :  { %6279 = vmatprep.subr.bf16.mxu1 %v8662_v55 }
 0x379   :  { %6239 = vmatpush2.bf16.msra.mxu0 %v8612_v47  ;;  %v8689_v47 = vld [vmem:[#allocation10 + $0x10] sm:$0xff]  }
 0x37a   :  { %6240 = vmatprep.subr.bf16.mxu0 %v8617_v52 }
 0x37b   :  { %6280 = vmatpush2.bf16.msra.mxu1 %v8660_v57 }
 0x37c   :  { %6281 = vmatprep.subr.bf16.mxu1 %v8665_v62 }
 0x37d   :  { %6241 = vmatpush2.bf16.msra.mxu0 %v8615_v53 }
 0x37e   :  { %6242 = vmatprep.subr.bf16.mxu0 %v8620_v5 }
 0x37f   :  { %6282 = vmatpush2.bf16.msra.mxu1 %v8663_v41 }
 0x380   :  { %6283 = vmatprep.subr.bf16.mxu1 %v8668_v2 }
 0x381   :  { %6243 = vmatpush2.bf16.msra.mxu0 %v8618_v56 }
 0x382   :  { %6244 = vmatprep.subr.bf16.mxu0 %v8623_v58 }
 0x383   :  { %6284 = vmatpush2.bf16.msra.mxu1 %v8666_v23 }
 0x384   :  { %6285 = vmatprep.subr.bf16.mxu1 %v8671_v12 }
 0x385   :  { %6245 = vmatpush2.bf16.msra.mxu0 %v8621_v34 }
 0x386   :  { %6246 = vmatprep.subr.bf16.mxu0 %v8626_v13 }
 0x387   :  { %6286 = vmatpush2.bf16.msra.mxu1 %v8669_v14  ;;  %v8690_v14 = vld [vmem:[#allocation10 + $0x48] sm:$0xff]  }
 0x388   :  { %6287 = vmatprep.subr.bf16.mxu1 %v8674_v16 }
 0x389   :  { %6247 = vmatpush2.bf16.msra.mxu0 %v8624_v22 }
 0x38a   :  { %6248 = vmatprep.subr.bf16.mxu0 %v8629_v35 }
 0x38b   :  { %6288 = vmatpush2.bf16.msra.mxu1 %v8672_v24 }
 0x38c   :  { %6289 = vmatprep.subr.bf16.mxu1 %v8677_v32 }
 0x38d   :  { %6249 = vmatpush2.bf16.msra.mxu0 %v8627_v20 }
 0x38e   :  { %7371 = vmatprep.subr.bf16.mxu0 %v8678_v44 }
 0x38f   :  { %6290 = vmatpush2.bf16.msra.mxu1 %v8675_v26 }
 0x390   :  { %v5602_v15 = vpop.f32.mrf.mxu0  ;;  %6251 = vmatmul.mubr.bf16.vlgmr.msra.gmra.mxu0 %v5818_v11 }
 0x391   :  { %v5643_v18 = vpop.f32.mrf.mxu1  ;;  %v5603_v39 = vadd.f32 %v5602_v15, %v9164_v40  ;;  %7372 = vmatpush3.bf16.msra.mxu0 %v8679_v45  ;;  %v8691_v15 = vld [vmem:[#allocation10 + $0x8] sm:$0xff]  }
 0x392   :  { %v5604_v19 = vpop.f32.mrf.mxu0  ;;  %7373 = vmatprep.subr.bf16.mxu0 %v8680_v9 }
 0x393   :  { %v5645_v21 = vpop.f32.mrf.mxu1  ;;  %v5644_v17 = vadd.f32 %v5643_v18, %v5603_v39  ;;  %v5605_v28 = vadd.f32 %v5604_v19, %v9167_v3  ;;  %v8692_v18 = vld [vmem:[#allocation10 + $0x40] sm:$0xff]   ;;  %v5886_v19 = vld [vmem:[#allocation8] sm:$0x3] }
 0x394   :  { %v5606_v50 = vpop.f32.mrf.mxu0  ;;  %v8693_v39 = vld [vmem:[#allocation10] sm:$0xff]   ;;  %v5895_v16 = vrot.slane %v5886_v19, %v892_v63 }
 0x395   :  { %v5647_v60 = vpop.f32.mrf.mxu1  ;;  %v5646_v61 = vadd.f32 %v5645_v21, %v5605_v28  ;;  %7374 = vmatpush3.bf16.msra.mxu0 %v8681_v10  ;;  %v5891_v21 = vrot.slane %v5886_v19, %v888_v59 }
 0x396   :  { %v5607_v29 = vpop.f32.mrf.mxu0  ;;  %7375 = vmatprep.subr.bf16.mxu0 %v8682_v46 }
 0x397   :  { %v5648_v30 = vpop.f32.mrf.mxu1 }
 0x399   :  { %7376 = vmatpush3.bf16.msra.mxu0 %v8683_v31 }
 0x39a   :  { %7377 = vmatprep.subr.bf16.mxu0 %v8684_v48 }
 0x39d   :  { %7378 = vmatpush3.bf16.msra.mxu0 %v8685_v36 }
 0x39e   :  { %7379 = vmatprep.subr.bf16.mxu0 %v8686_v37 }
 0x3a1   :  { %7380 = vmatpush3.bf16.msra.mxu0 %v8687_v33 }
 0x3a2   :  { %7381 = vmatprep.subr.bf16.mxu0 %v8688_v49 }
 0x3a5   :  { %7382 = vmatpush3.bf16.msra.mxu0 %v8689_v47 }
 0x3a6   :  { %7383 = vmatprep.subr.bf16.mxu0 %v8690_v14 }
 0x3a9   :  { %7384 = vmatpush3.bf16.msra.mxu0 %v8691_v15 }
 0x3aa   :  { %7385 = vmatprep.subr.bf16.mxu0 %v8692_v18 }
 0x3ad   :  { %7386 = vmatpush3.bf16.msra.mxu0 %v8693_v39 }
 0x3d0   :  { %v5684_v40 = vpop.f32.mrf.mxu0 }
 0x3d1   :  { %v5725_v25 = vpop.f32.mrf.mxu1  ;;  %v5685_v0 = vadd.f32 %v5684_v40, %v5644_v17 }
 0x3d2   :  { %v5686_v1 = vpop.f32.mrf.mxu0 }
 0x3d3   :  { %v5727_v42 = vpop.f32.mrf.mxu1  ;;  %v5726_v43 = vadd.f32 %v5725_v25, %v5685_v0  ;;  %v5687_v51 = vadd.f32 %v5686_v1, %v5646_v61  ;;  %v7354_v1 = vld [vmem:[#allocation11] ss:$0 sm:$0xff] }
 0x3d4   :  { %v5688_v6 = vpop.f32.mrf.mxu0 }
 0x3d5   :  { %v5729_v3 = vpop.f32.mrf.mxu1  ;;  %v5728_v53 = vadd.f32 %v5727_v42, %v5687_v51 }
 0x3d6   :  { %v5689_v7 = vpop.f32.mrf.mxu0 }
 0x3d7   :  { %v5730_v27 = vpop.f32.mrf.mxu1 }
 0x410   :  { %v5766_v52 = vpop.f32.mrf.mxu0 }
 0x411   :  { %v5807_v38 = vpop.f32.mrf.mxu1  ;;  %v5767_v4 = vadd.f32 %v5766_v52, %v5726_v43 }
 0x412   :  { %v5768_v5 = vpop.f32.mrf.mxu0 }
 0x413   :  { %v5809_v55 = vpop.f32.mrf.mxu1  ;;  %v5808_v56 = vadd.f32 %v5807_v38, %v5767_v4  ;;  %v5769_v57 = vadd.f32 %v5768_v5, %v5728_v53 }
 0x414   :  { %v5770_v58 = vpop.f32.mrf.mxu0 }
 0x415   :  { %v5811_v62 = vpop.f32.mrf.mxu1  ;;  %v5810_v34 = vadd.f32 %v5809_v55, %v5769_v57  ;;  %v5816_v41 = vmax.f32 %v5808_v56, 0.0 }
 0x416   :  { %v5771_v13 = vpop.f32.mrf.mxu0 }
 0x417   :  { %v5812_v2 = vpop.f32.mrf.mxu1  ;;  %v5817_v22 = vmax.f32 %v5810_v34, 0.0  ;;  %v5820_v35 = vpack.c.bf16 %v5816_v41, %v5816_v41 }
 0x419   :  { %v5821_v23 = vpack.c.bf16 %v5817_v22, %v5817_v22 }
 0x41b   :  { %6291 = vmatprep.mubr.bf16.mxu1 %v5821_v23 }
 0x41c   :  { %6292 = vmatmul.mubr.bf16.vlgmr.msra.gmra.mxu1 %v5820_v35 }
 0x450   :  { %v6252_v20 = vpop.f32.mrf.mxu0 }
 0x451   :  { %v6253_v17 = vadd.f32 %v6252_v20, %v5891_v21 }
 0x452   :  { %v6254_v8 = vpop.f32.mrf.mxu0 }
 0x453   :  { %v6255_v24 = vadd.f32 %v6254_v8, %v5895_v16 }
 0x454   :  { %v6256_v11 = vpop.f32.mrf.mxu0 }
 0x456   :  { %v6257_v12 = vpop.f32.mrf.mxu0 }
 0x4dc   :  { %v6293_v28 = vpop.f32.mrf.mxu1 }
 0x4dd   :  { %v6294_v50 = vadd.f32 %v6293_v28, %v6253_v17 }
 0x4de   :  { %v6295_v60 = vpop.f32.mrf.mxu1 }
 0x4df   :  { %v6296_v61 = vadd.f32 %v6295_v60, %v6255_v24  ;;  %v6300_v29 = vmax.f32 %v6294_v50, 0.0 }
 0x4e0   :  { %v6297_v30 = vpop.f32.mrf.mxu1 }
 0x4e1   :  { %v6301_v32 = vmax.f32 %v6296_v61, 0.0  ;;  %v6302_v25 = vpack.c.bf16 %v6300_v29, %v6300_v29 }
 0x4e2   :  { %v6298_v26 = vpop.f32.mrf.mxu1 }
 0x4e3   :  { %v6303_v40 = vpack.c.bf16 %v6301_v32, %v6301_v32 }
 0x4e5   :  { %6471 = vmatprep.mubr.bf16.mxu0 %v6303_v40 }
 0x4e6   :  { %6472 = vmatmul.mubr.bf16.vlgmr.msra.gmra.mxu0 %v6302_v25 }
 0x5a6   :  { %v7387_v0 = vpop.f32.mrf.mxu0 }
 0x5a8   :  { %v7388_v59 = vpop.f32.mrf.mxu0 }
 0x5a9   :  { %v7389_v54 = vadd.f32 %v7388_v59, %v7387_v0 }
 0x5aa   :  { %v7390_v63 = vpop.f32.mrf.mxu0 }
 0x5ab   :  { %v6474_v42 = vadd.f32 %v7389_v54, %v7354_v1 }
 0x5ac   :  { %v7391_v43 = vpop.f32.mrf.mxu0 }
 0x5ad   :  { %6479 = vst [vmem:[#allocation13] sm:$0xff] %v6474_v42 }
 0x5ae   :  { %8826 = shalt.err (!%p8823_p6)
}
 0x5af   :  { %6489 = dma.vmem_to_hbm [thread:$0]  %s6487_s30, 128, %s9186_s7, [#allocation4]  }
 0x5b0   :  { %8843 = dma.done.wait [#allocation4], 128  }
 0x5b1   :  { %8844 = vsyncadd [#allocation4], 4294967168 }
 0x5b2   :  { %6493 = vsyncpa [#allocation3], 1 }
 0x5b3   :  { %6494 = vsyncpa [#allocation6], 1 }
 0x5b4   :  { %6495 = vsyncpa [#allocation9], 1 }
 0x5b5   :  { %6496 = vsyncpa [#allocation12], 1 }
 0x5b6   :  { %6497 = vsyncpa [#allocation4], 1 }

</bundles_post_ra>
